<compile_context>
chip_gen: v6e
topology: v6e:2x2x1
jax: 0.10.0
libtpu: 0.0.40
codegen_flags: <defaults>
</compile_context>

<pallas_src>
import functools

import jax
import jax.numpy as jnp
from jax.experimental import pallas as pl
from jax.experimental.pallas import tpu as pltpu

# ---- constants from the PyTorch module ----
NUM_BOND_TYPE = 6
NUM_BOND_DIRECTION = 3
NUM_ATOM_TYPE = 120
NUM_CHIRALITY_TAG = 3
BN_EPS = 1e-5

LANE = 128
NODE_PAD = 128  # node padding: lane-dense A_hat contraction + dense MXU M tiles


def _round_up(x, m):
    return (x + m - 1) // m * m


def _pick_vmem_limit():
    """~100 MiB on 128-MiB chips (v5e/v6e); ~56 MiB on v7x (64 MiB physical)."""
    try:
        cap = pltpu.get_tpu_info().vmem_capacity_bytes
    except Exception:
        cap = 64 * 1024 * 1024
    return int(min(cap - 8 * 1024 * 1024, 100 * 1024 * 1024))


# ---------------------------------------------------------------------------
# Pallas kernel: all GIN layers fused, grid = (num_layer,)
# ---------------------------------------------------------------------------
def _gnn_layers_kernel(nvalid_ref, a_ref, h0_ref, ebias_ref,
                       w1_ref, b1_ref, w2_ref, b2_ref,
                       gamma_ref, beta_ref,
                       out_ref, h_ref, *, num_layer, last_only):
    l = pl.program_id(0)

    # seed the resident node features at the first layer
    @pl.when(l == 0)
    def _():
        h_ref[...] = h0_ref[...]

    h = h_ref[...]                                            # (Np, Dp) bf16, VMEM-resident

    # --- message passing (aggr='add'): A_hat @ h + segment_sum(edge_emb by dst) ---
    aggr = jnp.dot(a_ref[...], h,                             # bf16 MXU, fp32 accumulate
                   preferred_element_type=jnp.float32) + ebias_ref[...]

    # --- GIN update MLP: Linear(D, 2D) -> ReLU -> Linear(2D, D) ---
    z1 = jnp.maximum(
        jnp.dot(aggr.astype(jnp.bfloat16), w1_ref[...],
                preferred_element_type=jnp.float32) + b1_ref[...], 0.0)
    z2 = jnp.dot(z1.astype(jnp.bfloat16), w2_ref[...],
                 preferred_element_type=jnp.float32) + b2_ref[...]

    # --- BatchNorm1d (training-mode batch stats, biased var) over valid rows only ---
    n_valid = jnp.maximum(nvalid_ref[0], 1)                   # guard empty-graph div-by-0
    inv_n = 1.0 / n_valid.astype(jnp.float32)
    row_ids = jax.lax.broadcasted_iota(jnp.int32, (h_ref.shape[0], 1), 0)
    mask = (row_ids < n_valid).astype(jnp.float32)            # (Np, 1): 1 valid, 0 pad
    mean = jnp.sum(z2 * mask, axis=0, keepdims=True) * inv_n
    zc = z2 - mean                                            # reused for var AND output
    zcm = zc * mask
    var = jnp.sum(zcm * zcm, axis=0, keepdims=True) * inv_n
    h_bn = zc * jax.lax.rsqrt(var + BN_EPS) * gamma_ref[...] + beta_ref[...]
    # TODO(synk): BatchNorm running statistics are not updated (forward output only).

    is_last = l == num_layer - 1

    # F.relu for all but the last layer; dropout(p=0) is identity.
    @pl.when(jnp.logical_not(is_last))
    def _():
        v = jnp.maximum(h_bn, 0.0) * mask                     # keep padded rows at 0
        h_ref[...] = v.astype(h_ref.dtype)                    # carry (bf16) to next layer
        if not last_only:
            out_ref[...] = v                                  # per-layer output (JK != 'last')

    @pl.when(is_last)
    def _():
        v = h_bn * mask
        h_ref[...] = v.astype(h_ref.dtype)
        out_ref[...] = v                                      # final (or per-layer) output


def _build_gnn_call(np_pad, dp, dp2, num_layer, last_only, single_buffer_consts):
    kernel = functools.partial(_gnn_layers_kernel,
                               num_layer=num_layer, last_only=last_only)

    const_kw = {}
    if single_buffer_consts:
        # A_hat / h0 have constant index maps across layers -> single-buffer them,
        # halving their VMEM residency (matters most under v7x's 64 MiB VMEM).
        const_kw = dict(pipeline_mode=pl.Buffered(1))

    in_specs = [
        pl.BlockSpec((np_pad, np_pad), lambda l, nv: (0, 0), **const_kw),  # A_hat (bf16)
        pl.BlockSpec((np_pad, dp), lambda l, nv: (0, 0), **const_kw),      # h0 (bf16)
        pl.BlockSpec((None, np_pad, dp), lambda l, nv: (l, 0, 0)),         # edge bias / layer
        pl.BlockSpec((None, dp, dp2), lambda l, nv: (l, 0, 0)),            # w1 (bf16)
        pl.BlockSpec((None, 1, dp2), lambda l, nv: (l, 0, 0)),             # b1
        pl.BlockSpec((None, dp2, dp), lambda l, nv: (l, 0, 0)),            # w2 (bf16)
        pl.BlockSpec((None, 1, dp), lambda l, nv: (l, 0, 0)),              # b2
        pl.BlockSpec((None, 1, dp), lambda l, nv: (l, 0, 0)),              # bn gamma
        pl.BlockSpec((None, 1, dp), lambda l, nv: (l, 0, 0)),              # bn beta
    ]
    if last_only:
        # JK == 'last': one resident output block, written only at the final layer.
        out_specs = pl.BlockSpec((np_pad, dp), lambda l, nv: (0, 0))
        out_shape = jax.ShapeDtypeStruct((np_pad, dp), jnp.float32)
    else:
        out_specs = pl.BlockSpec((None, np_pad, dp), lambda l, nv: (l, 0, 0))
        out_shape = jax.ShapeDtypeStruct((num_layer, np_pad, dp), jnp.float32)

    grid_spec = pltpu.PrefetchScalarGridSpec(
        num_scalar_prefetch=1,                      # n_valid lives in SMEM
        grid=(num_layer,),
        in_specs=in_specs,
        out_specs=out_specs,
        scratch_shapes=[pltpu.VMEM((np_pad, dp), jnp.bfloat16)],   # resident node features
    )
    return pl.pallas_call(
        kernel,
        out_shape=out_shape,
        grid_spec=grid_spec,
        compiler_params=pltpu.CompilerParams(
            dimension_semantics=("arbitrary",),     # layers carry state -> sequential
            vmem_limit_bytes=_pick_vmem_limit(),
        ),
    )


def gnn_pallas(nvalid, a_hat, h0, ebias, w1, b1, w2, b2, gamma, beta,
               *, num_layer, last_only):
    np_pad, dp = h0.shape
    dp2 = w1.shape[2]
    args = (nvalid, a_hat, h0, ebias, w1, b1, w2, b2, gamma, beta)
    try:
        return _build_gnn_call(np_pad, dp, dp2, num_layer, last_only, True)(*args)
    except Exception:
        # pipeline_mode=pl.Buffered(1) unsupported on this jax version -> default buffering.
        return _build_gnn_call(np_pad, dp, dp2, num_layer, last_only, False)(*args)


# ---------------------------------------------------------------------------
# Parameter init (deterministic, xavier-uniform-style)
# ---------------------------------------------------------------------------
def _xavier_uniform(key, shape):
    fan_in, fan_out = shape[0], shape[1]
    bound = (6.0 / (fan_in + fan_out)) ** 0.5
    return jax.random.uniform(key, shape, jnp.float32, -bound, bound)


def init_gnn_params(key, num_layer, emb_dim):
    keys = jax.random.split(key, 2 + 6 * num_layer)
    params = {
        "x_embedding1": _xavier_uniform(keys[0], (NUM_ATOM_TYPE, emb_dim)),
        "x_embedding2": _xavier_uniform(keys[1], (NUM_CHIRALITY_TAG, emb_dim)),
        "layers": [],
    }
    k = 2
    for _ in range(num_layer):
        layer = {
            "w1": _xavier_uniform(keys[k + 0], (emb_dim, 2 * emb_dim)),
            "b1": jnp.zeros((1, 2 * emb_dim), jnp.float32),
            "w2": _xavier_uniform(keys[k + 1], (2 * emb_dim, emb_dim)),
            "b2": jnp.zeros((1, emb_dim), jnp.float32),
            "edge_embedding1": _xavier_uniform(keys[k + 2], (NUM_BOND_TYPE, emb_dim)),
            "edge_embedding2": _xavier_uniform(keys[k + 3], (NUM_BOND_DIRECTION, emb_dim)),
            "bn_gamma": jnp.ones((1, emb_dim), jnp.float32),
            "bn_beta": jnp.zeros((1, emb_dim), jnp.float32),
        }
        params["layers"].append(layer)
        k += 6
    return params


# ---------------------------------------------------------------------------
# GNN forward (glue in JAX, hot path in one fused Pallas kernel)
# ---------------------------------------------------------------------------
def gnn_forward(params, x, edge_index, edge_attr, *, num_layer, JK="last",
                drop_ratio=0.0):
    """
    x:          (N, 2)   int32  -- atom type index, chirality tag index
    edge_index: (2, E)   int32  -- [src; dst]   (batch graphs by concatenation, PyG-style)
    edge_attr:  (E, 2)   int32  -- bond type index, bond direction index
    """
    assert drop_ratio == 0.0  # TODO(synk): dropout with p>0 not implemented (module default is 0)
    if num_layer < 2:
        raise ValueError("Number of GNN layers must be greater than 1.")
    n = int(x.shape[0])
    assert n > 0, "empty graph"
    d = int(params["x_embedding1"].shape[1])
    np_pad = _round_up(n, NODE_PAD)
    dp = _round_up(max(d, LANE), LANE)
    dp2 = _round_up(max(2 * d, LANE), LANE)

    # initial node embeddings (gather glue), zero-padded, bf16 for the A_hat @ h MXU path
    h0 = (jnp.take(params["x_embedding1"], x[:, 0], axis=0)
          + jnp.take(params["x_embedding2"], x[:, 1], axis=0)).astype(jnp.float32)
    h0_pad = jnp.zeros((np_pad, dp), jnp.float32).at[:n, :d].set(h0).astype(jnp.bfloat16)

    # add self loops (bond type 4, direction 0 — matches the reference GIN code)
    self_loops = jnp.tile(jnp.arange(n, dtype=jnp.int32)[None, :], (2, 1))
    ei_full = jnp.concatenate([edge_index.astype(jnp.int32), self_loops], axis=1)
    self_loop_attr = jnp.concatenate(
        [jnp.full((n, 1), 4, jnp.int32), jnp.zeros((n, 1), jnp.int32)], axis=1)
    ea_full = jnp.concatenate([edge_attr.astype(jnp.int32), self_loop_attr], axis=0)
    src, dst = ei_full[0], ei_full[1]

    # one-hot incidence matrices: one MXU matmul replaces L+1 serialized XLA scatter-adds
    node_ids = jnp.arange(np_pad, dtype=jnp.int32)
    dst_oh = (dst[None, :] == node_ids[:, None]).astype(jnp.float32)    # (Np, Et)
    src_oh = (src[:, None] == node_ids[None, :]).astype(jnp.float32)    # (Et, Np)

    # dense adjacency with self-loops: A_hat[dst, src] = multiplicity
    # TODO(synk): guard per-pair multiplicities >= 256 (not exact in bf16; fine for molecules)
    a_hat = jnp.dot(dst_oh, src_oh,
                    precision=jax.lax.Precision.HIGHEST).astype(jnp.bfloat16)

    # all-layer edge embeddings, aggregated by destination with a SINGLE matmul
    eemb_all = jnp.concatenate(
        [jnp.take(lp["edge_embedding1"], ea_full[:, 0], axis=0)
         + jnp.take(lp["edge_embedding2"], ea_full[:, 1], axis=0)
         for lp in params["layers"]], axis=1).astype(jnp.float32)        # (Et, L*d)
    ebias = jnp.dot(dst_oh, eemb_all, precision=jax.lax.Precision.HIGHEST)
    ebias = ebias.reshape(np_pad, num_layer, d).transpose(1, 0, 2)       # (L, Np, d)
    ebias = jnp.pad(ebias, ((0, 0), (0, 0), (0, dp - d)))                # (L, Np, Dp)

    # stacked, lane-padded per-layer parameters (bf16 for MXU operands)
    layers = params["layers"]
    w1s = jnp.stack([jnp.zeros((dp, dp2), jnp.float32).at[:d, :2 * d].set(lp["w1"])
                     for lp in layers]).astype(jnp.bfloat16)
    b1s = jnp.stack([jnp.zeros((1, dp2), jnp.float32).at[:, :2 * d].set(lp["b1"])
                     for lp in layers])
    w2s = jnp.stack([jnp.zeros((dp2, dp), jnp.float32).at[:2 * d, :d].set(lp["w2"])
                     for lp in layers]).astype(jnp.bfloat16)
    b2s = jnp.stack([jnp.zeros((1, dp), jnp.float32).at[:, :d].set(lp["b2"])
                     for lp in layers])
    gms = jnp.stack([jnp.ones((1, dp), jnp.float32).at[:, :d].set(lp["bn_gamma"])
                     for lp in layers])
    bts = jnp.stack([jnp.zeros((1, dp), jnp.float32).at[:, :d].set(lp["bn_beta"])
                     for lp in layers])

    nvalid = jnp.array([n], jnp.int32)   # scalar-prefetch: no recompile per graph size
    last_only = (JK == "last")
    out = gnn_pallas(nvalid, a_hat, h0_pad, ebias, w1s, b1s, w2s, b2s, gms, bts,
                     num_layer=num_layer, last_only=last_only)

    if last_only:
        return out[:n, :d]

    h_list = [h0] + [out[l, :n, :d] for l in range(num_layer)]
    if JK == "concat":
        return jnp.concatenate(h_list, axis=1)
    elif JK == "max":
        return jnp.max(jnp.stack(h_list, axis=0), axis=0)
    elif JK == "sum":
        return jnp.sum(jnp.stack(h_list, axis=0), axis=0)
    else:
        raise ValueError(JK)


# ---------------------------------------------------------------------------
# Pure-JAX fp32 reference (matches the PyTorch training-mode forward)
# ---------------------------------------------------------------------------
def gnn_reference(params, x, edge_index, edge_attr, *, num_layer):
    n = x.shape[0]
    h = (jnp.take(params["x_embedding1"], x[:, 0], axis=0)
         + jnp.take(params["x_embedding2"], x[:, 1], axis=0)).astype(jnp.float32)
    self_loops = jnp.tile(jnp.arange(n, dtype=jnp.int32)[None, :], (2, 1))
    ei = jnp.concatenate([edge_index.astype(jnp.int32), self_loops], axis=1)
    sl_attr = jnp.concatenate(
        [jnp.full((n, 1), 4, jnp.int32), jnp.zeros((n, 1), jnp.int32)], axis=1)
    ea = jnp.concatenate([edge_attr.astype(jnp.int32), sl_attr], axis=0)
    src, dst = ei[0], ei[1]
    h_list = [h]
    for layer in range(num_layer):
        lp = params["layers"][layer]
        eemb = (jnp.take(lp["edge_embedding1"], ea[:, 0], axis=0)
                + jnp.take(lp["edge_embedding2"], ea[:, 1], axis=0))
        msg = h_list[layer][src] + eemb
        aggr = jnp.zeros((n, h.shape[1]), jnp.float32).at[dst].add(msg)
        z1 = jnp.maximum(aggr @ lp["w1"] + lp["b1"], 0.0)
        z2 = z1 @ lp["w2"] + lp["b2"]
        mean = jnp.mean(z2, axis=0, keepdims=True)
        var = jnp.mean((z2 - mean) ** 2, axis=0, keepdims=True)
        hb = (z2 - mean) * jax.lax.rsqrt(var + BN_EPS) * lp["bn_gamma"] + lp["bn_beta"]
        if layer != num_layer - 1:
            hb = jnp.maximum(hb, 0.0)
        h_list.append(hb)
    return h_list[-1]


# ---------------------------------------------------------------------------
if __name__ == "__main__":
    key = jax.random.PRNGKey(0)
    num_layer = 3
    emb_dim = 32

    # A small PyG-style batch of graphs (concatenated nodes, block-diagonal adjacency):
    # 4 graphs x 30 nodes = 120 nodes -> pads to 128, filling the MXU M dimension.
    num_graphs = 4
    nodes_per_graph = 30
    edges_per_graph = 64
    n_nodes = num_graphs * nodes_per_graph
    n_edges = num_graphs * edges_per_graph

    k_par, k_x, k_c, k_edges, k_et, k_ed = jax.random.split(key, 6)
    params = init_gnn_params(k_par, num_layer, emb_dim)

    x = jnp.stack(
        [jax.random.randint(k_x, (n_nodes,), 0, NUM_ATOM_TYPE, jnp.int32),
         jax.random.randint(k_c, (n_nodes,), 0, NUM_CHIRALITY_TAG, jnp.int32)],
        axis=1)                                                     # (N, 2)

    edge_chunks = []
    for g in range(num_graphs):
        kg = jax.random.fold_in(k_edges, g)
        ei = jax.random.randint(kg, (2, edges_per_graph), 0, nodes_per_graph, jnp.int32)
        edge_chunks.append(ei + g * nodes_per_graph)                # offset per graph
    edge_index = jnp.concatenate(edge_chunks, axis=1)               # (2, E)

    edge_attr = jnp.stack(
        [jax.random.randint(k_et, (n_edges,), 0, NUM_BOND_TYPE, jnp.int32),
         jax.random.randint(k_ed, (n_edges,), 0, NUM_BOND_DIRECTION, jnp.int32)],
        axis=1)                                                     # (E, 2)

    out = gnn_forward(params, x, edge_index, edge_attr,
                      num_layer=num_layer, JK="last", drop_ratio=0.0)
    out = jax.block_until_ready(out)

    assert out.shape == (n_nodes, emb_dim) and out.dtype == jnp.float32
    assert bool(jnp.all(jnp.isfinite(out)))

    # fp32 reference check; bf16 MXU operands give ~<0.05 drift on unit-variance BN
    # outputs, so 0.15 gives margin while still catching real bugs.
    ref = gnn_reference(params, x, edge_index, edge_attr, num_layer=num_layer)
    max_err = float(jnp.max(jnp.abs(out - ref)))
    assert max_err < 0.15, f"kernel output diverges from reference (max_err={max_err})"

    print("KERNEL_OK")
</pallas_src>

<mosaic_0001>
module attributes {stable_mosaic.version = 11 : i64} {
  func.func @_gnn_layers_kernel(%arg0: i32, %arg1: memref<1xi32, #tpu.memory_space<smem>>, %arg2: memref<128x128xbf16, #tpu.memory_space<vmem>>, %arg3: memref<128x128xbf16, #tpu.memory_space<vmem>>, %arg4: memref<1x128x128xf32, #tpu.memory_space<vmem>>, %arg5: memref<1x128x128xbf16, #tpu.memory_space<vmem>>, %arg6: memref<1x1x128xf32, #tpu.memory_space<vmem>>, %arg7: memref<1x128x128xbf16, #tpu.memory_space<vmem>>, %arg8: memref<1x1x128xf32, #tpu.memory_space<vmem>>, %arg9: memref<1x1x128xf32, #tpu.memory_space<vmem>>, %arg10: memref<1x1x128xf32, #tpu.memory_space<vmem>>, %arg11: memref<128x128xf32, #tpu.memory_space<vmem>>, %arg12: memref<128x128xbf16, #tpu.memory_space<vmem>>) attributes {dimension_semantics = [#tpu.dimension_semantics<arbitrary>], iteration_bounds = array<i64: 3>, scalar_prefetch = 1 : i64, scratch_operands = 1 : i64, tpu.core_type = #tpu.core_type<tc>, window_params = [{pipeline_mode = #tpu.pipeline_mode<synchronous>, transform_indices = @transform_0, window_bounds = array<i64: 128, 128>}, {pipeline_mode = #tpu.pipeline_mode<synchronous>, transform_indices = @transform_1, window_bounds = array<i64: 128, 128>}, {transform_indices = @transform_2, window_bounds = array<i64: 1, 128, 128>}, {transform_indices = @transform_3, window_bounds = array<i64: 1, 128, 128>}, {transform_indices = @transform_4, window_bounds = array<i64: 1, 1, 128>}, {transform_indices = @transform_5, window_bounds = array<i64: 1, 128, 128>}, {transform_indices = @transform_6, window_bounds = array<i64: 1, 1, 128>}, {transform_indices = @transform_7, window_bounds = array<i64: 1, 1, 128>}, {transform_indices = @transform_8, window_bounds = array<i64: 1, 1, 128>}, {pipeline_mode = #tpu.pipeline_mode<synchronous>, transform_indices = @transform_9, window_bounds = array<i64: 128, 128>}]} {
    %c0_i32 = arith.constant 0 : i32
    %0 = arith.cmpi eq, %arg0, %c0_i32 : i32
    %1 = arith.extui %0 : i1 to i32
    %c0_i32_0 = arith.constant 0 : i32
    %2 = arith.cmpi ne, %1, %c0_i32_0 : i32
    scf.if %2 {
      %c0_35 = arith.constant 0 : index
      %c0_36 = arith.constant 0 : index
      %70 = vector.load %arg3[%c0_35, %c0_36] : memref<128x128xbf16, #tpu.memory_space<vmem>>, vector<128x128xbf16>
      %c0_37 = arith.constant 0 : index
      %c0_38 = arith.constant 0 : index
      %71 = vector.load %arg12[%c0_37, %c0_38] : memref<128x128xbf16, #tpu.memory_space<vmem>>, vector<128x128xbf16>
      tpu.vector_store %arg12[%c0_37, %c0_38], %70 {strides = array<i32>} : memref<128x128xbf16, #tpu.memory_space<vmem>>, vector<128x128xbf16>,
    } else {
    }
    %c0 = arith.constant 0 : index
    %c0_1 = arith.constant 0 : index
    %3 = vector.load %arg12[%c0, %c0_1] : memref<128x128xbf16, #tpu.memory_space<vmem>>, vector<128x128xbf16>
    %c0_2 = arith.constant 0 : index
    %c0_3 = arith.constant 0 : index
    %4 = vector.load %arg2[%c0_2, %c0_3] : memref<128x128xbf16, #tpu.memory_space<vmem>>, vector<128x128xbf16>
    %cst = arith.constant dense<0.000000e+00> : vector<128x128xf32>
    %5 = tpu.matmul %4, %3, %cst {dimension_numbers = #tpu.dot_dimension_numbers<[1], [0], [0], [1], [0, 0, 1, 1], [], []>} : vector<128x128xbf16>, vector<128x128xbf16>, vector<128x128xf32> -> vector<128x128xf32>
    %c0_4 = arith.constant 0 : index
    %c0_5 = arith.constant 0 : index
    %c0_6 = arith.constant 0 : index
    %6 = vector.load %arg4[%c0_4, %c0_5, %c0_6] : memref<1x128x128xf32, #tpu.memory_space<vmem>>, vector<1x128x128xf32>
    %7 = vector.shape_cast %6 : vector<1x128x128xf32> to vector<128x128xf32>
    %8 = arith.addf %5, %7 : vector<128x128xf32>
    %9 = arith.truncf %8 : vector<128x128xf32> to vector<128x128xbf16>
    %c0_7 = arith.constant 0 : index
    %c0_8 = arith.constant 0 : index
    %c0_9 = arith.constant 0 : index
    %10 = vector.load %arg5[%c0_7, %c0_8, %c0_9] : memref<1x128x128xbf16, #tpu.memory_space<vmem>>, vector<1x128x128xbf16>
    %11 = vector.shape_cast %10 : vector<1x128x128xbf16> to vector<128x128xbf16>
    %cst_10 = arith.constant dense<0.000000e+00> : vector<128x128xf32>
    %12 = tpu.matmul %9, %11, %cst_10 {dimension_numbers = #tpu.dot_dimension_numbers<[1], [0], [0], [1], [0, 0, 1, 1], [], []>} : vector<128x128xbf16>, vector<128x128xbf16>, vector<128x128xf32> -> vector<128x128xf32>
    %c0_11 = arith.constant 0 : index
    %c0_12 = arith.constant 0 : index
    %c0_13 = arith.constant 0 : index
    %13 = vector.load %arg6[%c0_11, %c0_12, %c0_13] : memref<1x1x128xf32, #tpu.memory_space<vmem>>, vector<1x1x128xf32>
    %14 = vector.shape_cast %13 : vector<1x1x128xf32> to vector<1x128xf32>
    %15 = vector.broadcast %14 : vector<1x128xf32> to vector<128x128xf32>
    %16 = arith.addf %12, %15 : vector<128x128xf32>
    %cst_14 = arith.constant 0.000000e+00 : f32
    %17 = vector.broadcast %cst_14 : f32 to vector<128x128xf32>
    %18 = arith.maximumf %16, %17 : vector<128x128xf32>
    %19 = arith.truncf %18 : vector<128x128xf32> to vector<128x128xbf16>
    %c0_15 = arith.constant 0 : index
    %c0_16 = arith.constant 0 : index
    %c0_17 = arith.constant 0 : index
    %20 = vector.load %arg7[%c0_15, %c0_16, %c0_17] : memref<1x128x128xbf16, #tpu.memory_space<vmem>>, vector<1x128x128xbf16>
    %21 = vector.shape_cast %20 : vector<1x128x128xbf16> to vector<128x128xbf16>
    %cst_18 = arith.constant dense<0.000000e+00> : vector<128x128xf32>
    %22 = tpu.matmul %19, %21, %cst_18 {dimension_numbers = #tpu.dot_dimension_numbers<[1], [0], [0], [1], [0, 0, 1, 1], [], []>} : vector<128x128xbf16>, vector<128x128xbf16>, vector<128x128xf32> -> vector<128x128xf32>
    %c0_19 = arith.constant 0 : index
    %c0_20 = arith.constant 0 : index
    %c0_21 = arith.constant 0 : index
    %23 = vector.load %arg8[%c0_19, %c0_20, %c0_21] : memref<1x1x128xf32, #tpu.memory_space<vmem>>, vector<1x1x128xf32>
    %24 = vector.shape_cast %23 : vector<1x1x128xf32> to vector<1x128xf32>
    %25 = vector.broadcast %24 : vector<1x128xf32> to vector<128x128xf32>
    %26 = arith.addf %22, %25 : vector<128x128xf32>
    %c0_22 = arith.constant 0 : index
    %27 = memref.load %arg1[%c0_22] : memref<1xi32, #tpu.memory_space<smem>>
    %c1_i32 = arith.constant 1 : i32
    %28 = arith.maxsi %27, %c1_i32 : i32
    %29 = arith.sitofp %28 : i32 to f32
    %cst_23 = arith.constant 1.000000e+00 : f32
    %30 = arith.divf %cst_23, %29 : f32
    %31 = tpu.iota {dimensions = array<i32: 0>} : vector<128x1xi32>
    %32 = vector.broadcast %28 : i32 to vector<128x1xi32>
    %33 = arith.cmpi slt, %31, %32 : vector<128x1xi32>
    %34 = arith.extui %33 : vector<128x1xi1> to vector<128x1xi32>
    %35 = arith.sitofp %34 : vector<128x1xi32> to vector<128x1xf32>
    %36 = vector.broadcast %35 : vector<128x1xf32> to vector<128x128xf32>
    %37 = arith.mulf %26, %36 : vector<128x128xf32>
    %cst_24 = arith.constant dense<0.000000e+00> : vector<128xf32>
    %38 = vector.multi_reduction <add>, %37, %cst_24 [0] : vector<128x128xf32> to vector<128xf32>
    %39 = vector.shape_cast %38 : vector<128xf32> to vector<1x128xf32>
    %40 = vector.broadcast %30 : f32 to vector<1x128xf32>
    %41 = arith.mulf %39, %40 : vector<1x128xf32>
    %42 = vector.broadcast %41 : vector<1x128xf32> to vector<128x128xf32>
    %43 = arith.subf %26, %42 : vector<128x128xf32>
    %44 = vector.broadcast %35 : vector<128x1xf32> to vector<128x128xf32>
    %45 = arith.mulf %43, %44 : vector<128x128xf32>
    %46 = arith.mulf %45, %45 : vector<128x128xf32>
    %cst_25 = arith.constant dense<0.000000e+00> : vector<128xf32>
    %47 = vector.multi_reduction <add>, %46, %cst_25 [0] : vector<128x128xf32> to vector<128xf32>
    %48 = vector.shape_cast %47 : vector<128xf32> to vector<1x128xf32>
    %49 = vector.broadcast %30 : f32 to vector<1x128xf32>
    %50 = arith.mulf %48, %49 : vector<1x128xf32>
    %cst_26 = arith.constant 9.99999974E-6 : f32
    %51 = vector.broadcast %cst_26 : f32 to vector<1x128xf32>
    %52 = arith.addf %50, %51 : vector<1x128xf32>
    %53 = math.rsqrt %52 : vector<1x128xf32>
    %54 = vector.broadcast %53 : vector<1x128xf32> to vector<128x128xf32>
    %55 = arith.mulf %43, %54 : vector<128x128xf32>
    %c0_27 = arith.constant 0 : index
    %c0_28 = arith.constant 0 : index
    %c0_29 = arith.constant 0 : index
    %56 = vector.load %arg9[%c0_27, %c0_28, %c0_29] : memref<1x1x128xf32, #tpu.memory_space<vmem>>, vector<1x1x128xf32>
    %57 = vector.shape_cast %56 : vector<1x1x128xf32> to vector<1x128xf32>
    %58 = vector.broadcast %57 : vector<1x128xf32> to vector<128x128xf32>
    %59 = arith.mulf %55, %58 : vector<128x128xf32>
    %c0_30 = arith.constant 0 : index
    %c0_31 = arith.constant 0 : index
    %c0_32 = arith.constant 0 : index
    %60 = vector.load %arg10[%c0_30, %c0_31, %c0_32] : memref<1x1x128xf32, #tpu.memory_space<vmem>>, vector<1x1x128xf32>
    %61 = vector.shape_cast %60 : vector<1x1x128xf32> to vector<1x128xf32>
    %62 = vector.broadcast %61 : vector<1x128xf32> to vector<128x128xf32>
    %63 = arith.addf %59, %62 : vector<128x128xf32>
    %c2_i32 = arith.constant 2 : i32
    %64 = arith.cmpi eq, %arg0, %c2_i32 : i32
    %true = arith.constant true
    %65 = arith.xori %64, %true : i1
    %66 = arith.extui %65 : i1 to i32
    %c0_i32_33 = arith.constant 0 : i32
    %67 = arith.cmpi ne, %66, %c0_i32_33 : i32
    scf.if %67 {
      %cst_35 = arith.constant 0.000000e+00 : f32
      %70 = vector.broadcast %cst_35 : f32 to vector<128x128xf32>
      %71 = arith.maximumf %63, %70 : vector<128x128xf32>
      %72 = vector.broadcast %35 : vector<128x1xf32> to vector<128x128xf32>
      %73 = arith.mulf %71, %72 : vector<128x128xf32>
      %74 = arith.truncf %73 : vector<128x128xf32> to vector<128x128xbf16>
      %c0_36 = arith.constant 0 : index
      %c0_37 = arith.constant 0 : index
      %75 = vector.load %arg12[%c0_36, %c0_37] : memref<128x128xbf16, #tpu.memory_space<vmem>>, vector<128x128xbf16>
      tpu.vector_store %arg12[%c0_36, %c0_37], %74 {strides = array<i32>} : memref<128x128xbf16, #tpu.memory_space<vmem>>, vector<128x128xbf16>,
    } else {
    }
    %68 = arith.extui %64 : i1 to i32
    %c0_i32_34 = arith.constant 0 : i32
    %69 = arith.cmpi ne, %68, %c0_i32_34 : i32
    scf.if %69 {
      %70 = vector.broadcast %35 : vector<128x1xf32> to vector<128x128xf32>
      %71 = arith.mulf %63, %70 : vector<128x128xf32>
      %72 = arith.truncf %71 : vector<128x128xf32> to vector<128x128xbf16>
      %c0_35 = arith.constant 0 : index
      %c0_36 = arith.constant 0 : index
      %73 = vector.load %arg12[%c0_35, %c0_36] : memref<128x128xbf16, #tpu.memory_space<vmem>>, vector<128x128xbf16>
      tpu.vector_store %arg12[%c0_35, %c0_36], %72 {strides = array<i32>} : memref<128x128xbf16, #tpu.memory_space<vmem>>, vector<128x128xbf16>,
      %c0_37 = arith.constant 0 : index
      %c0_38 = arith.constant 0 : index
      %74 = vector.load %arg11[%c0_37, %c0_38] : memref<128x128xf32, #tpu.memory_space<vmem>>, vector<128x128xf32>
      tpu.vector_store %arg11[%c0_37, %c0_38], %71 {strides = array<i32>} : memref<128x128xf32, #tpu.memory_space<vmem>>, vector<128x128xf32>,
    } else {
    }
    return
  }
  func.func @transform_0(%arg0: i32, %arg1: memref<1xi32, #tpu.memory_space<smem>>) -> (i32, i32) {
    %c0_i32 = arith.constant 0 : i32
    %c0_i32_0 = arith.constant 0 : i32
    %c0_i32_1 = arith.constant 0 : i32
    return %c0_i32, %c0_i32_0 : i32, i32
  }
  func.func @transform_1(%arg0: i32, %arg1: memref<1xi32, #tpu.memory_space<smem>>) -> (i32, i32) {
    %c0_i32 = arith.constant 0 : i32
    %c0_i32_0 = arith.constant 0 : i32
    %c0_i32_1 = arith.constant 0 : i32
    return %c0_i32, %c0_i32_0 : i32, i32
  }
  func.func @transform_2(%arg0: i32, %arg1: memref<1xi32, #tpu.memory_space<smem>>) -> (i32, i32, i32) {
    %c0_i32 = arith.constant 0 : i32
    %c0_i32_0 = arith.constant 0 : i32
    %c0_i32_1 = arith.constant 0 : i32
    return %arg0, %c0_i32, %c0_i32_0 : i32, i32, i32
  }
  func.func @transform_3(%arg0: i32, %arg1: memref<1xi32, #tpu.memory_space<smem>>) -> (i32, i32, i32) {
    %c0_i32 = arith.constant 0 : i32
    %c0_i32_0 = arith.constant 0 : i32
    %c0_i32_1 = arith.constant 0 : i32
    return %arg0, %c0_i32, %c0_i32_0 : i32, i32, i32
  }
  func.func @transform_4(%arg0: i32, %arg1: memref<1xi32, #tpu.memory_space<smem>>) -> (i32, i32, i32) {
    %c0_i32 = arith.constant 0 : i32
    %c0_i32_0 = arith.constant 0 : i32
    %c0_i32_1 = arith.constant 0 : i32
    return %arg0, %c0_i32, %c0_i32_0 : i32, i32, i32
  }
  func.func @transform_5(%arg0: i32, %arg1: memref<1xi32, #tpu.memory_space<smem>>) -> (i32, i32, i32) {
    %c0_i32 = arith.constant 0 : i32
    %c0_i32_0 = arith.constant 0 : i32
    %c0_i32_1 = arith.constant 0 : i32
    return %arg0, %c0_i32, %c0_i32_0 : i32, i32, i32
  }
  func.func @transform_6(%arg0: i32, %arg1: memref<1xi32, #tpu.memory_space<smem>>) -> (i32, i32, i32) {
    %c0_i32 = arith.constant 0 : i32
    %c0_i32_0 = arith.constant 0 : i32
    %c0_i32_1 = arith.constant 0 : i32
    return %arg0, %c0_i32, %c0_i32_0 : i32, i32, i32
  }
  func.func @transform_7(%arg0: i32, %arg1: memref<1xi32, #tpu.memory_space<smem>>) -> (i32, i32, i32) {
    %c0_i32 = arith.constant 0 : i32
    %c0_i32_0 = arith.constant 0 : i32
    %c0_i32_1 = arith.constant 0 : i32
    return %arg0, %c0_i32, %c0_i32_0 : i32, i32, i32
  }
  func.func @transform_8(%arg0: i32, %arg1: memref<1xi32, #tpu.memory_space<smem>>) -> (i32, i32, i32) {
    %c0_i32 = arith.constant 0 : i32
    %c0_i32_0 = arith.constant 0 : i32
    %c0_i32_1 = arith.constant 0 : i32
    return %arg0, %c0_i32, %c0_i32_0 : i32, i32, i32
  }
  func.func @transform_9(%arg0: i32, %arg1: memref<1xi32, #tpu.memory_space<smem>>) -> (i32, i32) {
    %c0_i32 = arith.constant 0 : i32
    %c0_i32_0 = arith.constant 0 : i32
    %c0_i32_1 = arith.constant 0 : i32
    return %c0_i32, %c0_i32_0 : i32, i32
  }
}

module attributes {stable_mosaic.version = 11 : i64} {
  func.func @_gnn_layers_kernel(%arg0: i32, %arg1: memref<1xi32, #tpu.memory_space<smem>>, %arg2: memref<128x128xbf16, #tpu.memory_space<vmem>>, %arg3: memref<128x128xbf16, #tpu.memory_space<vmem>>, %arg4: memref<1x128x128xf32, #tpu.memory_space<vmem>>, %arg5: memref<1x128x128xbf16, #tpu.memory_space<vmem>>, %arg6: memref<1x1x128xf32, #tpu.memory_space<vmem>>, %arg7: memref<1x128x128xbf16, #tpu.memory_space<vmem>>, %arg8: memref<1x1x128xf32, #tpu.memory_space<vmem>>, %arg9: memref<1x1x128xf32, #tpu.memory_space<vmem>>, %arg10: memref<1x1x128xf32, #tpu.memory_space<vmem>>, %arg11: memref<128x128xf32, #tpu.memory_space<vmem>>, %arg12: memref<128x128xbf16, #tpu.memory_space<vmem>>) attributes {dimension_semantics = [#tpu.dimension_semantics<arbitrary>], iteration_bounds = array<i64: 3>, scalar_prefetch = 1 : i64, scratch_operands = 1 : i64, tpu.core_type = #tpu.core_type<tc>, window_params = [{pipeline_mode = #tpu.pipeline_mode<synchronous>, transform_indices = @transform_0, window_bounds = array<i64: 128, 128>}, {pipeline_mode = #tpu.pipeline_mode<synchronous>, transform_indices = @transform_1, window_bounds = array<i64: 128, 128>}, {transform_indices = @transform_2, window_bounds = array<i64: 1, 128, 128>}, {transform_indices = @transform_3, window_bounds = array<i64: 1, 128, 128>}, {transform_indices = @transform_4, window_bounds = array<i64: 1, 1, 128>}, {transform_indices = @transform_5, window_bounds = array<i64: 1, 128, 128>}, {transform_indices = @transform_6, window_bounds = array<i64: 1, 1, 128>}, {transform_indices = @transform_7, window_bounds = array<i64: 1, 1, 128>}, {transform_indices = @transform_8, window_bounds = array<i64: 1, 1, 128>}, {pipeline_mode = #tpu.pipeline_mode<synchronous>, transform_indices = @transform_9, window_bounds = array<i64: 128, 128>}]} {
    %c0_i32 = arith.constant 0 : i32
    %0 = arith.cmpi eq, %arg0, %c0_i32 : i32
    %1 = arith.extui %0 : i1 to i32
    %c0_i32_0 = arith.constant 0 : i32
    %2 = arith.cmpi ne, %1, %c0_i32_0 : i32
    scf.if %2 {
      %c0_35 = arith.constant 0 : index
      %c0_36 = arith.constant 0 : index
      %70 = vector.load %arg3[%c0_35, %c0_36] : memref<128x128xbf16, #tpu.memory_space<vmem>>, vector<128x128xbf16>
      %c0_37 = arith.constant 0 : index
      %c0_38 = arith.constant 0 : index
      %71 = vector.load %arg12[%c0_37, %c0_38] : memref<128x128xbf16, #tpu.memory_space<vmem>>, vector<128x128xbf16>
      tpu.vector_store %arg12[%c0_37, %c0_38], %70 {strides = array<i32>} : memref<128x128xbf16, #tpu.memory_space<vmem>>, vector<128x128xbf16>,
    } else {
    }
    %c0 = arith.constant 0 : index
    %c0_1 = arith.constant 0 : index
    %3 = vector.load %arg12[%c0, %c0_1] : memref<128x128xbf16, #tpu.memory_space<vmem>>, vector<128x128xbf16>
    %c0_2 = arith.constant 0 : index
    %c0_3 = arith.constant 0 : index
    %4 = vector.load %arg2[%c0_2, %c0_3] : memref<128x128xbf16, #tpu.memory_space<vmem>>, vector<128x128xbf16>
    %cst = arith.constant dense<0.000000e+00> : vector<128x128xf32>
    %5 = tpu.matmul %4, %3, %cst {dimension_numbers = #tpu.dot_dimension_numbers<[1], [0], [0], [1], [0, 0, 1, 1], [], []>} : vector<128x128xbf16>, vector<128x128xbf16>, vector<128x128xf32> -> vector<128x128xf32>
    %c0_4 = arith.constant 0 : index
    %c0_5 = arith.constant 0 : index
    %c0_6 = arith.constant 0 : index
    %6 = vector.load %arg4[%c0_4, %c0_5, %c0_6] : memref<1x128x128xf32, #tpu.memory_space<vmem>>, vector<1x128x128xf32>
    %7 = vector.shape_cast %6 : vector<1x128x128xf32> to vector<128x128xf32>
    %8 = arith.addf %5, %7 : vector<128x128xf32>
    %9 = arith.truncf %8 : vector<128x128xf32> to vector<128x128xbf16>
    %c0_7 = arith.constant 0 : index
    %c0_8 = arith.constant 0 : index
    %c0_9 = arith.constant 0 : index
    %10 = vector.load %arg5[%c0_7, %c0_8, %c0_9] : memref<1x128x128xbf16, #tpu.memory_space<vmem>>, vector<1x128x128xbf16>
    %11 = vector.shape_cast %10 : vector<1x128x128xbf16> to vector<128x128xbf16>
    %cst_10 = arith.constant dense<0.000000e+00> : vector<128x128xf32>
    %12 = tpu.matmul %9, %11, %cst_10 {dimension_numbers = #tpu.dot_dimension_numbers<[1], [0], [0], [1], [0, 0, 1, 1], [], []>} : vector<128x128xbf16>, vector<128x128xbf16>, vector<128x128xf32> -> vector<128x128xf32>
    %c0_11 = arith.constant 0 : index
    %c0_12 = arith.constant 0 : index
    %c0_13 = arith.constant 0 : index
    %13 = vector.load %arg6[%c0_11, %c0_12, %c0_13] : memref<1x1x128xf32, #tpu.memory_space<vmem>>, vector<1x1x128xf32>
    %14 = vector.shape_cast %13 : vector<1x1x128xf32> to vector<1x128xf32>
    %15 = vector.broadcast %14 : vector<1x128xf32> to vector<128x128xf32>
    %16 = arith.addf %12, %15 : vector<128x128xf32>
    %cst_14 = arith.constant 0.000000e+00 : f32
    %17 = vector.broadcast %cst_14 : f32 to vector<128x128xf32>
    %18 = arith.maximumf %16, %17 : vector<128x128xf32>
    %19 = arith.truncf %18 : vector<128x128xf32> to vector<128x128xbf16>
    %c0_15 = arith.constant 0 : index
    %c0_16 = arith.constant 0 : index
    %c0_17 = arith.constant 0 : index
    %20 = vector.load %arg7[%c0_15, %c0_16, %c0_17] : memref<1x128x128xbf16, #tpu.memory_space<vmem>>, vector<1x128x128xbf16>
    %21 = vector.shape_cast %20 : vector<1x128x128xbf16> to vector<128x128xbf16>
    %cst_18 = arith.constant dense<0.000000e+00> : vector<128x128xf32>
    %22 = tpu.matmul %19, %21, %cst_18 {dimension_numbers = #tpu.dot_dimension_numbers<[1], [0], [0], [1], [0, 0, 1, 1], [], []>} : vector<128x128xbf16>, vector<128x128xbf16>, vector<128x128xf32> -> vector<128x128xf32>
    %c0_19 = arith.constant 0 : index
    %c0_20 = arith.constant 0 : index
    %c0_21 = arith.constant 0 : index
    %23 = vector.load %arg8[%c0_19, %c0_20, %c0_21] : memref<1x1x128xf32, #tpu.memory_space<vmem>>, vector<1x1x128xf32>
    %24 = vector.shape_cast %23 : vector<1x1x128xf32> to vector<1x128xf32>
    %25 = vector.broadcast %24 : vector<1x128xf32> to vector<128x128xf32>
    %26 = arith.addf %22, %25 : vector<128x128xf32>
    %c0_22 = arith.constant 0 : index
    %27 = memref.load %arg1[%c0_22] : memref<1xi32, #tpu.memory_space<smem>>
    %c1_i32 = arith.constant 1 : i32
    %28 = arith.maxsi %27, %c1_i32 : i32
    %29 = arith.sitofp %28 : i32 to f32
    %cst_23 = arith.constant 1.000000e+00 : f32
    %30 = arith.divf %cst_23, %29 : f32
    %31 = tpu.iota {dimensions = array<i32: 0>} : vector<128x1xi32>
    %32 = vector.broadcast %28 : i32 to vector<128x1xi32>
    %33 = arith.cmpi slt, %31, %32 : vector<128x1xi32>
    %34 = arith.extui %33 : vector<128x1xi1> to vector<128x1xi32>
    %35 = arith.sitofp %34 : vector<128x1xi32> to vector<128x1xf32>
    %36 = vector.broadcast %35 : vector<128x1xf32> to vector<128x128xf32>
    %37 = arith.mulf %26, %36 : vector<128x128xf32>
    %cst_24 = arith.constant dense<0.000000e+00> : vector<128xf32>
    %38 = vector.multi_reduction <add>, %37, %cst_24 [0] : vector<128x128xf32> to vector<128xf32>
    %39 = vector.shape_cast %38 : vector<128xf32> to vector<1x128xf32>
    %40 = vector.broadcast %30 : f32 to vector<1x128xf32>
    %41 = arith.mulf %39, %40 : vector<1x128xf32>
    %42 = vector.broadcast %41 : vector<1x128xf32> to vector<128x128xf32>
    %43 = arith.subf %26, %42 : vector<128x128xf32>
    %44 = vector.broadcast %35 : vector<128x1xf32> to vector<128x128xf32>
    %45 = arith.mulf %43, %44 : vector<128x128xf32>
    %46 = arith.mulf %45, %45 : vector<128x128xf32>
    %cst_25 = arith.constant dense<0.000000e+00> : vector<128xf32>
    %47 = vector.multi_reduction <add>, %46, %cst_25 [0] : vector<128x128xf32> to vector<128xf32>
    %48 = vector.shape_cast %47 : vector<128xf32> to vector<1x128xf32>
    %49 = vector.broadcast %30 : f32 to vector<1x128xf32>
    %50 = arith.mulf %48, %49 : vector<1x128xf32>
    %cst_26 = arith.constant 9.99999974E-6 : f32
    %51 = vector.broadcast %cst_26 : f32 to vector<1x128xf32>
    %52 = arith.addf %50, %51 : vector<1x128xf32>
    %53 = math.rsqrt %52 : vector<1x128xf32>
    %54 = vector.broadcast %53 : vector<1x128xf32> to vector<128x128xf32>
    %55 = arith.mulf %43, %54 : vector<128x128xf32>
    %c0_27 = arith.constant 0 : index
    %c0_28 = arith.constant 0 : index
    %c0_29 = arith.constant 0 : index
    %56 = vector.load %arg9[%c0_27, %c0_28, %c0_29] : memref<1x1x128xf32, #tpu.memory_space<vmem>>, vector<1x1x128xf32>
    %57 = vector.shape_cast %56 : vector<1x1x128xf32> to vector<1x128xf32>
    %58 = vector.broadcast %57 : vector<1x128xf32> to vector<128x128xf32>
    %59 = arith.mulf %55, %58 : vector<128x128xf32>
    %c0_30 = arith.constant 0 : index
    %c0_31 = arith.constant 0 : index
    %c0_32 = arith.constant 0 : index
    %60 = vector.load %arg10[%c0_30, %c0_31, %c0_32] : memref<1x1x128xf32, #tpu.memory_space<vmem>>, vector<1x1x128xf32>
    %61 = vector.shape_cast %60 : vector<1x1x128xf32> to vector<1x128xf32>
    %62 = vector.broadcast %61 : vector<1x128xf32> to vector<128x128xf32>
    %63 = arith.addf %59, %62 : vector<128x128xf32>
    %c2_i32 = arith.constant 2 : i32
    %64 = arith.cmpi eq, %arg0, %c2_i32 : i32
    %true = arith.constant true
    %65 = arith.xori %64, %true : i1
    %66 = arith.extui %65 : i1 to i32
    %c0_i32_33 = arith.constant 0 : i32
    %67 = arith.cmpi ne, %66, %c0_i32_33 : i32
    scf.if %67 {
      %cst_35 = arith.constant 0.000000e+00 : f32
      %70 = vector.broadcast %cst_35 : f32 to vector<128x128xf32>
      %71 = arith.maximumf %63, %70 : vector<128x128xf32>
      %72 = vector.broadcast %35 : vector<128x1xf32> to vector<128x128xf32>
      %73 = arith.mulf %71, %72 : vector<128x128xf32>
      %74 = arith.truncf %73 : vector<128x128xf32> to vector<128x128xbf16>
      %c0_36 = arith.constant 0 : index
      %c0_37 = arith.constant 0 : index
      %75 = vector.load %arg12[%c0_36, %c0_37] : memref<128x128xbf16, #tpu.memory_space<vmem>>, vector<128x128xbf16>
      tpu.vector_store %arg12[%c0_36, %c0_37], %74 {strides = array<i32>} : memref<128x128xbf16, #tpu.memory_space<vmem>>, vector<128x128xbf16>,
    } else {
    }
    %68 = arith.extui %64 : i1 to i32
    %c0_i32_34 = arith.constant 0 : i32
    %69 = arith.cmpi ne, %68, %c0_i32_34 : i32
    scf.if %69 {
      %70 = vector.broadcast %35 : vector<128x1xf32> to vector<128x128xf32>
      %71 = arith.mulf %63, %70 : vector<128x128xf32>
      %72 = arith.truncf %71 : vector<128x128xf32> to vector<128x128xbf16>
      %c0_35 = arith.constant 0 : index
      %c0_36 = arith.constant 0 : index
      %73 = vector.load %arg12[%c0_35, %c0_36] : memref<128x128xbf16, #tpu.memory_space<vmem>>, vector<128x128xbf16>
      tpu.vector_store %arg12[%c0_35, %c0_36], %72 {strides = array<i32>} : memref<128x128xbf16, #tpu.memory_space<vmem>>, vector<128x128xbf16>,
      %c0_37 = arith.constant 0 : index
      %c0_38 = arith.constant 0 : index
      %74 = vector.load %arg11[%c0_37, %c0_38] : memref<128x128xf32, #tpu.memory_space<vmem>>, vector<128x128xf32>
      tpu.vector_store %arg11[%c0_37, %c0_38], %71 {strides = array<i32>} : memref<128x128xf32, #tpu.memory_space<vmem>>, vector<128x128xf32>,
    } else {
    }
    return
  }
  func.func @transform_0(%arg0: i32, %arg1: memref<1xi32, #tpu.memory_space<smem>>) -> (i32, i32) {
    %c0_i32 = arith.constant 0 : i32
    %c0_i32_0 = arith.constant 0 : i32
    %c0_i32_1 = arith.constant 0 : i32
    return %c0_i32, %c0_i32_0 : i32, i32
  }
  func.func @transform_1(%arg0: i32, %arg1: memref<1xi32, #tpu.memory_space<smem>>) -> (i32, i32) {
    %c0_i32 = arith.constant 0 : i32
    %c0_i32_0 = arith.constant 0 : i32
    %c0_i32_1 = arith.constant 0 : i32
    return %c0_i32, %c0_i32_0 : i32, i32
  }
  func.func @transform_2(%arg0: i32, %arg1: memref<1xi32, #tpu.memory_space<smem>>) -> (i32, i32, i32) {
    %c0_i32 = arith.constant 0 : i32
    %c0_i32_0 = arith.constant 0 : i32
    %c0_i32_1 = arith.constant 0 : i32
    return %arg0, %c0_i32, %c0_i32_0 : i32, i32, i32
  }
  func.func @transform_3(%arg0: i32, %arg1: memref<1xi32, #tpu.memory_space<smem>>) -> (i32, i32, i32) {
    %c0_i32 = arith.constant 0 : i32
    %c0_i32_0 = arith.constant 0 : i32
    %c0_i32_1 = arith.constant 0 : i32
    return %arg0, %c0_i32, %c0_i32_0 : i32, i32, i32
  }
  func.func @transform_4(%arg0: i32, %arg1: memref<1xi32, #tpu.memory_space<smem>>) -> (i32, i32, i32) {
    %c0_i32 = arith.constant 0 : i32
    %c0_i32_0 = arith.constant 0 : i32
    %c0_i32_1 = arith.constant 0 : i32
    return %arg0, %c0_i32, %c0_i32_0 : i32, i32, i32
  }
  func.func @transform_5(%arg0: i32, %arg1: memref<1xi32, #tpu.memory_space<smem>>) -> (i32, i32, i32) {
    %c0_i32 = arith.constant 0 : i32
    %c0_i32_0 = arith.constant 0 : i32
    %c0_i32_1 = arith.constant 0 : i32
    return %arg0, %c0_i32, %c0_i32_0 : i32, i32, i32
  }
  func.func @transform_6(%arg0: i32, %arg1: memref<1xi32, #tpu.memory_space<smem>>) -> (i32, i32, i32) {
    %c0_i32 = arith.constant 0 : i32
    %c0_i32_0 = arith.constant 0 : i32
    %c0_i32_1 = arith.constant 0 : i32
    return %arg0, %c0_i32, %c0_i32_0 : i32, i32, i32
  }
  func.func @transform_7(%arg0: i32, %arg1: memref<1xi32, #tpu.memory_space<smem>>) -> (i32, i32, i32) {
    %c0_i32 = arith.constant 0 : i32
    %c0_i32_0 = arith.constant 0 : i32
    %c0_i32_1 = arith.constant 0 : i32
    return %arg0, %c0_i32, %c0_i32_0 : i32, i32, i32
  }
  func.func @transform_8(%arg0: i32, %arg1: memref<1xi32, #tpu.memory_space<smem>>) -> (i32, i32, i32) {
    %c0_i32 = arith.constant 0 : i32
    %c0_i32_0 = arith.constant 0 : i32
    %c0_i32_1 = arith.constant 0 : i32
    return %arg0, %c0_i32, %c0_i32_0 : i32, i32, i32
  }
  func.func @transform_9(%arg0: i32, %arg1: memref<1xi32, #tpu.memory_space<smem>>) -> (i32, i32) {
    %c0_i32 = arith.constant 0 : i32
    %c0_i32_0 = arith.constant 0 : i32
    %c0_i32_1 = arith.constant 0 : i32
    return %c0_i32, %c0_i32_0 : i32, i32
  }
}

</mosaic_0001>

<bundles_post_ra>
// kernel: tpu_custom_call.1
= control target key start
LH: loop header
LB: loop body
LE: loop exit
PB: predicated region body
PF: predicated region fallthrough
CT: control target
= control target key end

     0   :  { %s3238_s0 = inlined_call_operand.<no memory space> [shape: s32[1], index: 0, kind: input, shape index: {}]   ;;  %s3239_s1 = inlined_call_operand.hbm [shape: bf16[128,128], index: 1, kind: input, shape index: {}]   ;;  %s3240_s2 = inlined_call_operand.hbm [shape: bf16[128,128], index: 2, kind: input, shape index: {}]   ;;  %s3241_s3 = inlined_call_operand.hbm [shape: f32[3,128,128], index: 3, kind: input, shape index: {}]   ;;  %s3242_s4 = inlined_call_operand.hbm [shape: bf16[3,128,128], index: 4, kind: input, shape index: {}]   ;;  %s3243_s5 = inlined_call_operand.vmem [shape: f32[3,1,128], index: 5, kind: input, shape index: {}]   ;;  %s3244_s6 = inlined_call_operand.hbm [shape: bf16[3,128,128], index: 6, kind: input, shape index: {}]   ;;  %s3245_s7 = inlined_call_operand.vmem [shape: f32[3,1,128], index: 7, kind: input, shape index: {}]   ;;  %s3246_s8 = inlined_call_operand.vmem [shape: f32[3,1,128], index: 8, kind: input, shape index: {}]   ;;  %s3247_s9 = inlined_call_operand.vmem [shape: f32[3,1,128], index: 9, kind: input, shape index: {}]   ;;  %s3248_s10 = inlined_call_operand.hbm [shape: f32[128,128], index: 10, kind: output, shape index: {}]  }
   0x1   :  { %3259 = sst [smem:[#allocation20_spill]] %s3246_s8 }
   0x2   :  { %3260 = sst [smem:[#allocation21_spill]] %s3247_s9 }
   0x3   :  { %3261 = sst [smem:[#allocation22_spill]] %s3248_s10 }
   0x4   :  { %15 = sst [smem:[#allocation4]] %s3238_s0 }
   0x5   :  { %16 = vsyncpa [#allocation6], 0 }
   0x6   :  { %17 = vsyncpa [#allocation9], 0 }
   0x7   :  { %18 = vsyncpa [#allocation7], 0  ;;  %s2577_s15 = smov 0   ;;  %s2579_s16 = smov 0  }
   0x8   :  { %s2581_s17 = smov 0   ;;  %s2583_s18 = smov 0  }
   0x9 LB: > { %s2596_s0 = sadd.s32 4294967295, %s2504_s18   ;;  %s2599_s19 = sadd.s32 1, %s2504_s18   ;;  %s2504_s18 = sphi %s2583_s18, %s3285_s18   ;;  %s2500_s17 = sphi %s2581_s17, %s3289_s17   ;;  %s2496_s16 = sphi %s2579_s16, %s3288_s16   ;;  %s2492_s15 = sphi %s2577_s15, %s3287_s15  }
   0xa   : > { %3262 = sst [smem:[#allocation18_spill]] %s2599_s19  ;;  %s70_s20 = ssub.s32 %s2504_s18, %s2599_s19 }
   0xb   : > { %s73_s21 = sadd.s32 1, %s2500_s17  ;;  %p71_p0 = scmp.eq.s32.totalorder %s70_s20, 0 }
   0xc   : > { %p80_p1 = scmp.ne.s32.totalorder %s2500_s17, %s2496_s16  ;;  %p81_p2 = scmp.eq.s32.totalorder %s2504_s18, 0 }
   0xd   : > { %p86_p3 = scmp.ne.s32.totalorder %s2496_s16, %s2492_s15  ;;  %p3249_p5 = scmp.eq.s32.totalorder %s2596_s0, 0 }
   0xe   : > { %s2609_s22 = scalar_select %p71_p0, %s2500_s17, %s73_s21  }
   0xf   : > { %p2611_p4 = por %p81_p2, %p80_p1  ;;  %p1777_p6 = scmp.ge.s32.totalorder %s2504_s18, 1 }
  0x10   : > { %3263 = sst [smem:[#allocation19_spill]] %s2609_s22  ;;  %p274_p7 = scmp.lt.s32.totalorder %s2504_s18, 4 }
  0x11   : > { %p2620_p8 = por %p3249_p5, %p86_p3  ;;  %s2506_s26 = smov [#allocation5]  }
  0x12   : > { %p2625_p10 = pnand %p1777_p6, %p274_p7  ;;  %s286_s27 = sshll.u32 %s2506_s26, 4  ;;  %s287_s27 = int_to_ptr.vmem [resolvable:$true] %s286_s27 }
  0x13   : > { %s3265_s24 = scalar_select %p2620_p8, 1, 0 }
  0x14   : > { %s3266_s25 = scalar_select %p2625_p10, 1, 0 }
  0x15   : > { %p2196_p11 = pneg %p2625_p10  ;;  %p2215_p13 = scmp.lt.s32.totalorder %s2504_s18, 3 }
  0x16   : > { %s313_s29 = sand.u32 1, %s2504_s18   ;;  %s315_s30 = sand.u32 1, %s2500_s17  }
  0x17   : > { %p2633_p12 = pnand %p2196_p11, %p3249_p5  ;;  %p2642_p0 = pnand %p2215_p13, %p2611_p4 }
  0x18   : > { %s2309_s12 = scalar_lea.vmem %s287_s27, 1024  ;;  %p2317_p7 = scmp.lt.s32.totalorder %s287_s27, %s287_s27 }
  0x19   : > { %s3267_s28 = scalar_select %p2633_p12, 1, 0 }
  0x1a   : > { %p3252_p1 = pneg %p2633_p12  ;;  %p2310_p2 = scmp.ne.s32.totalorder %s287_s27, %s2309_s12 }
  0x1b   : > { %p2318_p11 = scmp.lt.s32.totalorder %s2309_s12, %s2309_s12 }
  0x1c   : > { %p2312_p3 = pnand %p2310_p2, %p3252_p1 }
  0x1d   : > { %p2319_p9 = por %p2318_p11, %p2317_p7 }
  0x1e   : > { %p2313_p6 = pneg %p2312_p3 }
  0x20   : > { %p2320_p5 = pnand %p2319_p9, %p2313_p6 }
  0x22   : > { %2323 = shalt.err (!%p2320_p5)
}
  0x23   : > { %s3257_s13 = smov 64   ;;  %s2508_s14 = smov 4  }
  0x24   : > { %2199 = dma.hbm_to_vmem [thread:$0]  (!%p2633_p12), %s3239_s1, 1024, %s287_s27, [#allocation6], %s3257_s13, %s3257_s13, %s2508_s14  }
  0x25   : > { %s1781_s21 = sshll.u32 %s315_s30, 7  ;;  %s1887_s23 = sshll.u32 %s2504_s18, 11 }
  0x26   : > { %s2665_s22 = scalar_lea.hbm %s3241_s3, %s1887_s23  ;;  %s317_s19 = scalar_lea.vmem [#allocation10], %s1781_s21 }
  0x27   : > { %s324_s10 = sshll.u32 %s317_s19, 4  ;;  %s2669_s9 = scalar_lea.sflag [#allocation6], %s313_s29  ;;  %s2667_s10 = int_to_ptr.vmem [resolvable:$true] %s324_s10 }
  0x28   : > { %s2324_s8 = scalar_lea.hbm %s2665_s22, 2048  ;;  %p2675_p5 = pneg %p2642_p0 }
  0x29   : > { %p2325_p4 = scmp.ne.s32.totalorder %s2665_s22, %s2324_s8  ;;  %s2329_s21 = scalar_lea.hbm %s3241_s3, 6144 }
  0x2a   : > { %p2330_p2 = scmp.lt.s32.totalorder %s2665_s22, %s3241_s3  ;;  %p2331_p3 = scmp.lt.s32.totalorder %s2329_s21, %s2324_s8 }
  0x2b   : > { %p2327_p9 = pnand %p2675_p5, %p2325_p4 }
  0x2c   : > { %p2332_p6 = por %p2331_p3, %p2330_p2 }
  0x2d   : > { %p2328_p13 = pneg %p2327_p9 }
  0x2f   : > { %p2333_p7 = pnand %p2332_p6, %p2328_p13 }
  0x31   : > { %2336 = shalt.err (!%p2333_p7)
}
  0x32   : > { %s2337_s29 = scalar_lea.vmem %s2667_s10, 2048  ;;  %s2509_s26 = smov [#allocation10]  }
  0x33   : > { %p2338_p11 = scmp.ne.s32.totalorder %s2667_s10, %s2337_s29  ;;  %s2342_s12 = sshll.u32 %s2509_s26, 4  ;;  %s2343_s12 = int_to_ptr.vmem [resolvable:$false] %s2342_s12 }
  0x34   : > { %s2344_s15 = scalar_lea.vmem %s2343_s12, 4096  ;;  %p2345_p1 = scmp.lt.s32.totalorder %s2667_s10, %s2343_s12 }
  0x35   : > { %p2340_p4 = pnand %p2338_p11, %p2675_p5  ;;  %p2346_p8 = scmp.lt.s32.totalorder %s2344_s15, %s2337_s29 }
  0x37   : > { %p2341_p9 = pneg %p2340_p4  ;;  %p2347_p10 = por %p2346_p8, %p2345_p1 }
  0x39   : > { %p2348_p12 = pnand %p2347_p10, %p2341_p9 }
  0x3b   : > { %2351 = shalt.err (!%p2348_p12)
}
  0x3c   : > { %s2510_s8 = smov 128   ;;  %s2511_s20 = smov 8  }
  0x3d   : > { %2206 = dma.hbm_to_vmem [thread:$0]  (!%p2642_p0), %s2665_s22, 2048, %s2667_s10, %s2669_s9, %s2510_s8, %s2510_s8, %s2511_s20  }
  0x3e   : > { %s2700_s21 = sshll.u32 %s315_s30, 6  ;;  %s1888_s19 = sshll.u32 %s2504_s18, 10 }
  0x3f   : > { %s2708_s26 = scalar_lea.hbm %s3242_s4, %s1888_s19  ;;  %s338_s12 = scalar_lea.vmem [#allocation11], %s2700_s21 }
  0x40   : > { %s345_s15 = sshll.u32 %s338_s12, 4  ;;  %s2512_s13 = smov [#allocation8]   ;;  %s2711_s15 = int_to_ptr.vmem [resolvable:$true] %s345_s15 }
  0x41   : > { %s2713_s10 = sshll.u32 %s2512_s13, 4  ;;  %s2352_s22 = scalar_lea.hbm %s2708_s26, 1024  ;;  %s300_s10 = int_to_ptr.vmem [resolvable:$true] %s2713_s10 }
  0x42   : > { %p2353_p8 = scmp.ne.s32.totalorder %s2708_s26, %s2352_s22  ;;  %s2357_s20 = scalar_lea.hbm %s3242_s4, 3072 }
  0x43   : > { %p2358_p1 = scmp.lt.s32.totalorder %s2708_s26, %s3242_s4  ;;  %p2359_p13 = scmp.lt.s32.totalorder %s2357_s20, %s2352_s22 }
  0x44   : > { %p2355_p10 = pnand %p2353_p8, %p2675_p5 }
  0x45   : > { %p2360_p2 = por %p2359_p13, %p2358_p1 }
  0x46   : > { %p2356_p12 = pneg %p2355_p10 }
  0x48   : > { %p2361_p3 = pnand %p2360_p2, %p2356_p12 }
  0x4a   : > { %2364 = shalt.err (!%p2361_p3)
}
  0x4b   : > { %s2365_s13 = scalar_lea.vmem %s2711_s15, 1024  ;;  %s2513_s12 = smov [#allocation11]  }
  0x4c   : > { %p2366_p6 = scmp.ne.s32.totalorder %s2711_s15, %s2365_s13  ;;  %s2370_s30 = sshll.u32 %s2513_s12, 4  ;;  %s2371_s30 = int_to_ptr.vmem [resolvable:$false] %s2370_s30 }
  0x4d   : > { %s2372_s8 = scalar_lea.vmem %s2371_s30, 2048  ;;  %p2373_p4 = scmp.lt.s32.totalorder %s2711_s15, %s2371_s30 }
  0x4e   : > { %p2368_p7 = pnand %p2366_p6, %p2675_p5  ;;  %p2374_p9 = scmp.lt.s32.totalorder %s2372_s8, %s2365_s13 }
  0x50   : > { %p2369_p11 = pneg %p2368_p7  ;;  %p2375_p8 = por %p2374_p9, %p2373_p4 }
  0x52   : > { %p2376_p10 = pnand %p2375_p8, %p2369_p11 }
  0x54   : > { %2379 = shalt.err (!%p2376_p10)
}
  0x55   : > { %s3270_s22 = smov 64   ;;  %s2391_s20 = scalar_lea.vmem %s300_s10, 1024 }
  0x56   : > { %2209 = dma.hbm_to_vmem [thread:$0]  (!%p2642_p0), %s2708_s26, 1024, %s2711_s15, %s2669_s9, %s3270_s22, %s3270_s22, %s2508_s14  }
  0x57   : > { %p2392_p12 = scmp.ne.s32.totalorder %s300_s10, %s2391_s20  ;;  %p3271_p1 = scmp.ne.s32.totalorder %s3267_s28, 0 }
  0x58   : > { %p2399_p6 = scmp.lt.s32.totalorder %s300_s10, %s300_s10  ;;  %p2400_p7 = scmp.lt.s32.totalorder %s2391_s20, %s2391_s20 }
  0x59   : > { %p3272_p13 = pneg %p3271_p1 }
  0x5a   : > { %p2401_p11 = por %p2400_p7, %p2399_p6 }
  0x5b   : > { %p2394_p2 = pnand %p2392_p12, %p3272_p13 }
  0x5d   : > { %p2395_p3 = pneg %p2394_p2 }
  0x5f   : > { %p2402_p4 = pnand %p2401_p11, %p2395_p3 }
  0x61   : > { %2405 = shalt.err (!%p2402_p4)
}
  0x62   : > { %2202 = dma.hbm_to_vmem [thread:$0]  (!%p3271_p1), %s3240_s2, 1024, %s300_s10, [#allocation9], %s3270_s22, %s3270_s22, %s2508_s14  }
  0x63   : > { %s2756_s13 = scalar_lea.hbm %s3244_s6, %s1888_s19  ;;  %s365_s28 = scalar_lea.vmem [#allocation12], %s2700_s21 }
  0x64   : > { %s372_s12 = sshll.u32 %s365_s28, 4  ;;  %s2406_s30 = scalar_lea.hbm %s2756_s13, 1024  ;;  %s373_s12 = int_to_ptr.vmem [resolvable:$true] %s372_s12 }
  0x65   : > { %p2407_p9 = scmp.ne.s32.totalorder %s2756_s13, %s2406_s30  ;;  %s2411_s18 = scalar_lea.hbm %s3244_s6, 3072 }
  0x66   : > { %p2412_p12 = scmp.lt.s32.totalorder %s2756_s13, %s3244_s6  ;;  %p2413_p1 = scmp.lt.s32.totalorder %s2411_s18, %s2406_s30 }
  0x67   : > { %p2409_p8 = pnand %p2407_p9, %p2675_p5 }
  0x68   : > { %p2414_p13 = por %p2413_p1, %p2412_p12 }
  0x69   : > { %p2410_p10 = pneg %p2409_p8 }
  0x6b   : > { %p2415_p2 = pnand %p2414_p13, %p2410_p10 }
  0x6d   : > { %2418 = shalt.err (!%p2415_p2)
}
  0x6e   : > { %s2419_s21 = scalar_lea.vmem %s373_s12, 1024  ;;  %s2514_s19 = smov [#allocation12]  }
  0x6f   : > { %p2420_p3 = scmp.ne.s32.totalorder %s373_s12, %s2419_s21  ;;  %s2424_s29 = sshll.u32 %s2514_s19, 4  ;;  %s2425_s29 = int_to_ptr.vmem [resolvable:$false] %s2424_s29 }
  0x70   : > { %s2426_s26 = scalar_lea.vmem %s2425_s29, 2048  ;;  %p2427_p11 = scmp.lt.s32.totalorder %s373_s12, %s2425_s29 }
  0x71   : > { %p2422_p6 = pnand %p2420_p3, %p2675_p5  ;;  %p2428_p4 = scmp.lt.s32.totalorder %s2426_s26, %s2419_s21 }
  0x73   : > { %p2423_p7 = pneg %p2422_p6  ;;  %p2429_p9 = por %p2428_p4, %p2427_p11 }
  0x75   : > { %p2430_p8 = pnand %p2429_p9, %p2423_p7 }
  0x77   : > { %2433 = shalt.err (!%p2430_p8)
}
  0x78   : > { %2212 = dma.hbm_to_vmem [thread:$0]  (!%p2642_p0), %s2756_s13, 1024, %s373_s12, %s2669_s9, %s3270_s22, %s3270_s22, %s2508_s14  }
  0x79   : > { %p3273_p5 = scmp.ne.s32.totalorder %s3266_s25, 0 }
  0x7a   : > { %p3274_p10 = scmp.eq.s32.totalorder (!%p3273_p5), %s2596_s0, 0 }
  0x7b   : > { %402 = sbr.rel (%p3273_p5) target bundleno = 985 (0x3d9), region = 56 }
  0x80   : > { %2475 = dma.done.wait (%p3274_p10), [#allocation6], 1024   ;;  %p3275_p12 = pmov %p3274_p10 }
  0x81   : > { %p3276_p1 = pmov %p3274_p10 }
  0x82   : > { %2477 = vsyncadd (%p3275_p12), [#allocation6], 4294966272 }
  0x83   : > { %2479 = dma.done.wait (%p3276_p1), [#allocation9], 1024   ;;  %p3277_p13 = pmov %p3276_p1 }
  0x84   : > { %s412_s11 = sand.u32 1, %s2596_s0   ;;  %s414_s9 = sand.u32 1, %s2496_s16  }
  0x85   : > { %2481 = vsyncadd (%p3277_p13), [#allocation9], 4294966272  ;;  %s1793_s14 = sshll.u32 %s414_s9, 7  ;;  %s413_s25 = scalar_lea.sflag [#allocation6], %s412_s11 }
  0x86   : > { %s2791_s27 = scalar_lea.vmem [#allocation10], %s1793_s14  ;;  %p3278_p0 = scmp.ne.s32.totalorder %s3265_s24, 0 }
  0x88   : > { %2483 = dma.done.wait (%p3278_p0), %s413_s25, 4096  }
  0x89   : > { %2485 = vsyncadd (%p3278_p0), %s413_s25, 4294963200  ;;  %s1794_s22 = sshll.u32 %s414_s9, 6  ;;  %p486_p2 = scmp.lt.s32.totalorder %s2596_s0, 2 }
  0x8a   : > { %s3279_s10 = sld [smem:[#allocation20_spill]]  ;;  %s2817_s11 = scalar_lea.vmem [#allocation11], %s1794_s22 }
  0x8b   : > { %s2799_s15 = scalar_select %p486_p2, %s2596_s0, 2 }
  0x8c   : > { %s3280_s29 = sld [smem:[#allocation21_spill]]  ;;  %s2819_s9 = scalar_lea.vmem [#allocation12], %s1794_s22 }
  0x8d   : > { %s488_s12 = scalar_lea.vmem %s3243_s5, %s2799_s15  ;;  %s491_s20 = scalar_lea.vmem %s3245_s7, %s2799_s15 }
  0x8e   : > { %p3281_p3 = scmp.ne.s32.totalorder %s2596_s0, 0 }
  0x90   : > { %s494_s23 = scalar_lea.vmem %s3279_s10, %s2799_s15  ;;  %502 = sbr.rel (%p3281_p3) target bundleno = 154 (0x9a), region = 80 }
  0x92   : > { %s497_s26 = scalar_lea.vmem %s3280_s29, %s2799_s15 }
  0x95   : > { %v503_v0 = vld [vmem:[#allocation8] sm:$0xff]   ;;  %v505_v1 = vld [vmem:[#allocation8 + $0x8] sm:$0xff]   ;;  %v507_v2 = vld [vmem:[#allocation8 + $0x10] sm:$0xff]  }
  0x96   : > { %519 = vst [vmem:[#allocation2] sm:$0xff] %v503_v0   ;;  %521 = vst [vmem:[#allocation2 + $0x8] sm:$0xff] %v505_v1   ;;  %v509_v3 = vld [vmem:[#allocation8 + $0x18] sm:$0xff]   ;;  %v511_v4 = vld [vmem:[#allocation8 + $0x20] sm:$0xff]  }
  0x97   : > { %523 = vst [vmem:[#allocation2 + $0x10] sm:$0xff] %v507_v2   ;;  %v513_v5 = vld [vmem:[#allocation8 + $0x28] sm:$0xff]   ;;  %525 = vst [vmem:[#allocation2 + $0x18] sm:$0xff] %v509_v3   ;;  %v515_v6 = vld [vmem:[#allocation8 + $0x30] sm:$0xff]  }
  0x98   : > { %527 = vst [vmem:[#allocation2 + $0x20] sm:$0xff] %v511_v4   ;;  %529 = vst [vmem:[#allocation2 + $0x28] sm:$0xff] %v513_v5   ;;  %v517_v7 = vld [vmem:[#allocation8 + $0x38] sm:$0xff]  }
  0x99   : > { %531 = vst [vmem:[#allocation2 + $0x30] sm:$0xff] %v515_v6   ;;  %533 = vst [vmem:[#allocation2 + $0x38] sm:$0xff] %v517_v7  }
  0x9a PF: > { %v2270_v12 = vld [vmem:[#allocation5] sm:$0xff]   ;;  %v2278_v15 = vld [vmem:[%s2817_s11 + $0x38] sm:$0xff]   ;;  %v2279_v16 = vld [vmem:[%s2817_s11 + $0x30] sm:$0xff]   ;;  %p1849_p7 = scmp.eq.s32.totalorder %s2596_s0, 2 }
  0x9b   : > { %2080 = vmatprep.mubr.bf16.mxu0 %v2270_v12  ;;  %2096 = vmatprep.subr.bf16.mxu1 %v2278_v15  ;;  %v2280_v18 = vld [vmem:[%s2817_s11 + $0x28] sm:$0xff]   ;;  %v2281_v20 = vld [vmem:[%s2817_s11 + $0x20] sm:$0xff]   ;;  %v2282_v21 = vld [vmem:[%s2817_s11 + $0x18] sm:$0xff]  }
  0x9c   : > { %2097 = vmatpush3.bf16.msra.mxu1 %v2278_v15  ;;  %v2271_v22 = vld [vmem:[#allocation5 + $0x8] sm:$0xff]   ;;  %v2272_v23 = vld [vmem:[#allocation5 + $0x10] sm:$0xff]   ;;  %v2273_v24 = vld [vmem:[#allocation5 + $0x18] sm:$0xff]  }
  0x9d   : > { %v2268_v17 = vld [vmem:[#allocation2 + $0x8] sm:$0xff]   ;;  %2098 = vmatprep.subr.bf16.mxu1 %v2279_v16  ;;  %v2269_v19 = vld [vmem:[#allocation2] sm:$0xff]   ;;  %v2276_v27 = vld [vmem:[#allocation5 + $0x30] sm:$0xff]  }
  0x9e   : > { %v2266_v13 = vld [vmem:[#allocation2 + $0x18] sm:$0xff]   ;;  %v2267_v14 = vld [vmem:[#allocation2 + $0x10] sm:$0xff]   ;;  %v2274_v25 = vld [vmem:[#allocation5 + $0x20] sm:$0xff]  }
  0x9f   : > { %v2264_v10 = vld [vmem:[#allocation2 + $0x28] sm:$0xff]   ;;  %v2265_v11 = vld [vmem:[#allocation2 + $0x20] sm:$0xff]   ;;  %v2277_v28 = vld [vmem:[#allocation5 + $0x38] sm:$0xff]  }
  0xa0   : > { %v2262_v8 = vld [vmem:[#allocation2 + $0x38] sm:$0xff]   ;;  %v2263_v9 = vld [vmem:[#allocation2 + $0x30] sm:$0xff]   ;;  %2099 = vmatpush3.bf16.msra.mxu1 %v2279_v16  ;;  %v2275_v26 = vld [vmem:[#allocation5 + $0x28] sm:$0xff]  }
  0xa1   : > { %2064 = vmatprep.subr.bf16.mxu0 %v2262_v8  ;;  %2100 = vmatprep.subr.bf16.mxu1 %v2280_v18  ;;  %v2283_v29 = vld [vmem:[%s2817_s11 + $0x10] sm:$0xff]   ;;  %v2284_v30 = vld [vmem:[%s2817_s11 + $0x8] sm:$0xff]   ;;  %v2285_v31 = vld [vmem:[%s2817_s11] sm:$0xff]  }
  0xa2   : > { %2065 = vmatpush3.bf16.msra.mxu0 %v2262_v8  ;;  %v2286_v32 = vld [vmem:[%s2819_s9 + $0x38] sm:$0xff]   ;;  %v2287_v33 = vld [vmem:[%s2819_s9 + $0x30] sm:$0xff]   ;;  %v2288_v34 = vld [vmem:[%s2819_s9 + $0x28] sm:$0xff]  }
  0xa3   : > { %2066 = vmatprep.subr.bf16.mxu0 %v2263_v9  ;;  %v2289_v35 = vld [vmem:[%s2819_s9 + $0x20] sm:$0xff]   ;;  %v2836_v36 = vld [vmem:[%s2819_s9 + $0x18] sm:$0xff]   ;;  %v568_v42 = vld [vmem:[%s2791_s27 + $0x8] sm:$0xff] }
  0xa4   : > { %2101 = vmatpush3.bf16.msra.mxu1 %v2280_v18  ;;  %v570_v39 = vld [vmem:[%s2791_s27 + $0x18] sm:$0xff]  ;;  %v567_v40 = vld [vmem:[%s2791_s27] sm:$0xff]  ;;  %v569_v43 = vld [vmem:[%s2791_s27 + $0x10] sm:$0xff] }
  0xa5   : > { %2102 = vmatprep.subr.bf16.mxu1 %v2281_v20  ;;  %v574_v53 = vld [vmem:[%s2791_s27 + $0x38] sm:$0xff]  ;;  %v571_v54 = vld [vmem:[%s2791_s27 + $0x20] sm:$0xff]  ;;  %v572_v56 = vld [vmem:[%s2791_s27 + $0x28] sm:$0xff] }
  0xa6   : > { %2067 = vmatpush3.bf16.msra.mxu0 %v2263_v9  ;;  %v573_v57 = vld [vmem:[%s2791_s27 + $0x30] sm:$0xff]  ;;  %v578_v3 = vld [vmem:[%s2791_s27 + $0x58] sm:$0xff]  ;;  %v575_v4 = vld [vmem:[%s2791_s27 + $0x40] sm:$0xff] }
  0xa7   : > { %2068 = vmatprep.subr.bf16.mxu0 %v2264_v10  ;;  %v576_v6 = vld [vmem:[%s2791_s27 + $0x48] sm:$0xff]  ;;  %v577_v7 = vld [vmem:[%s2791_s27 + $0x50] sm:$0xff]  ;;  %v579_v18 = vld [vmem:[%s2791_s27 + $0x60] sm:$0xff] }
  0xa8   : > { %2103 = vmatpush3.bf16.msra.mxu1 %v2281_v20  ;;  %v580_v20 = vld [vmem:[%s2791_s27 + $0x68] sm:$0xff] }
  0xa9   : > { %2104 = vmatprep.subr.bf16.mxu1 %v2282_v21 }
  0xaa   : > { %2069 = vmatpush3.bf16.msra.mxu0 %v2264_v10 }
  0xab   : > { %2070 = vmatprep.subr.bf16.mxu0 %v2265_v11 }
  0xac   : > { %2105 = vmatpush3.bf16.msra.mxu1 %v2282_v21  ;;  %v581_v21 = vld [vmem:[%s2791_s27 + $0x70] sm:$0xff] }
  0xad   : > { %2106 = vmatprep.subr.bf16.mxu1 %v2283_v29 }
  0xae   : > { %2071 = vmatpush3.bf16.msra.mxu0 %v2265_v11 }
  0xaf   : > { %2072 = vmatprep.subr.bf16.mxu0 %v2266_v13 }
  0xb0   : > { %2107 = vmatpush3.bf16.msra.mxu1 %v2283_v29  ;;  %v2291_v29 = vld [vmem:[%s2819_s9 + $0x10] sm:$0xff]  }
  0xb1   : > { %2108 = vmatprep.subr.bf16.mxu1 %v2284_v30 }
  0xb2   : > { %2073 = vmatpush3.bf16.msra.mxu0 %v2266_v13 }
  0xb3   : > { %2074 = vmatprep.subr.bf16.mxu0 %v2267_v14 }
  0xb4   : > { %2109 = vmatpush3.bf16.msra.mxu1 %v2284_v30  ;;  %v2292_v30 = vld [vmem:[%s2819_s9 + $0x8] sm:$0xff]  }
  0xb5   : > { %2110 = vmatprep.subr.bf16.mxu1 %v2285_v31 }
  0xb6   : > { %2075 = vmatpush3.bf16.msra.mxu0 %v2267_v14 }
  0xb7   : > { %2076 = vmatprep.subr.bf16.mxu0 %v2268_v17 }
  0xb8   : > { %2111 = vmatpush3.bf16.msra.mxu1 %v2285_v31  ;;  %v2293_v31 = vld [vmem:[%s2819_s9] sm:$0xff]  }
  0xb9   : > { %2160 = vmatprep.subr.bf16.mxu1 %v2286_v32 }
  0xba   : > { %2077 = vmatpush3.bf16.msra.mxu0 %v2268_v17  ;;  %v582_v17 = vld [vmem:[%s2791_s27 + $0x78] sm:$0xff]  ;;  %s1144_s27 = sld [smem:[#allocation4]] }
  0xbb   : > { %2078 = vmatprep.subr.bf16.mxu0 %v2269_v19 }
  0xbe   : > { %2079 = vmatpush3.bf16.msra.mxu0 %v2269_v19 }
  0xbf   : > { %2128 = vmatprep.subr.bf16.mxu0 %v2286_v32 }
  0xc0   : > { %p1145_p6 = scmp.gt.s32.totalorder %s1144_s27, 1 }
  0xc1   : > { %2081 = vmatmul.mubr.bf16.vlgmr.msra.gmra.mxu0 %v2271_v22 }
  0xc2   : > { %2084 = vmatprep.mubr.bf16.mxu0 %v2272_v23  ;;  %2129 = vmatpush3.bf16.msra.mxu0 %v2286_v32  ;;  %s3291_s27 = smov (!%p1145_p6, %s1144_s27), 1 }
  0xc3   : > { %2130 = vmatprep.subr.bf16.mxu0 %v2287_v33  ;;  %s1147_s22 = scvt.s32.f32 %s3291_s27 }
  0xc6   : > { %2131 = vmatpush3.bf16.msra.mxu0 %v2287_v33 }
  0xc7   : > { %2132 = vmatprep.subr.bf16.mxu0 %v2288_v34 }
  0xc9   : > { %2085 = vmatmul.mubr.bf16.gmra.mxu0 %v2273_v24 }
  0xca   : > { %2088 = vmatprep.mubr.bf16.mxu0 %v2274_v25  ;;  %2133 = vmatpush3.bf16.msra.mxu0 %v2288_v34 }
  0xcb   : > { %2134 = vmatprep.subr.bf16.mxu0 %v2289_v35 }
  0xce   : > { %2135 = vmatpush3.bf16.msra.mxu0 %v2289_v35 }
  0xcf   : > { %2136 = vmatprep.subr.bf16.mxu0 %v2836_v36 }
  0xd1   : > { %2089 = vmatmul.mubr.bf16.gmra.mxu0 %v2275_v26 }
  0xd2   : > { %2092 = vmatprep.mubr.bf16.mxu0 %v2276_v27  ;;  %2137 = vmatpush3.bf16.msra.mxu0 %v2836_v36 }
  0xd3   : > { %2138 = vmatprep.subr.bf16.mxu0 %v2291_v29 }
  0xd6   : > { %2139 = vmatpush3.bf16.msra.mxu0 %v2291_v29 }
  0xd7   : > { %2140 = vmatprep.subr.bf16.mxu0 %v2292_v30 }
  0xd9   : > { %2093 = vmatmul.mubr.bf16.gmra.mxu0 %v2277_v28 }
  0xda   : > { %2141 = vmatpush3.bf16.msra.mxu0 %v2292_v30 }
  0xdb   : > { %2142 = vmatprep.subr.bf16.mxu0 %v2293_v31 }
  0xde   : > { %2143 = vmatpush3.bf16.msra.mxu0 %v2293_v31 }
 0x181   : > { %v2082_v37 = vpop.f32.mrf.mxu0 }
 0x182   : > { %v722_v48 = vadd.f32 %v2082_v37, %v569_v43 }
 0x183   : > { %v713_v38 = vpop.f32.mrf.mxu0 }
 0x184   : > { %v714_v46 = vadd.f32 %v713_v38, %v567_v40 }
 0x185   : > { %v2083_v41 = vpop.f32.mrf.mxu0 }
 0x186   : > { %v725_v44 = vadd.f32 %v2083_v41, %v570_v39 }
 0x187   : > { %v716_v45 = vpop.f32.mrf.mxu0 }
 0x188   : > { %v717_v47 = vadd.f32 %v716_v45, %v568_v42  ;;  %v777_v51 = vpack.c.bf16 %v725_v44, %v722_v48 }
 0x189   : > { %v2086_v49 = vpop.f32.mrf.mxu0 }
 0x18a   : > { %v776_v50 = vpack.c.bf16 %v717_v47, %v714_v46  ;;  %v738_v62 = vadd.f32 %v2086_v49, %v573_v57 }
 0x18b   : > { %v729_v52 = vpop.f32.mrf.mxu0 }
 0x18c   : > { %2112 = vmatprep.mubr.bf16.mxu1 %v776_v50  ;;  %v730_v60 = vadd.f32 %v729_v52, %v571_v54 }
 0x18d   : > { %v2087_v55 = vpop.f32.mrf.mxu0  ;;  %2113 = vmatmul.mubr.bf16.vlgmr.msra.gmra.mxu1 %v777_v51 }
 0x18e   : > { %2168 = vmatpush3.bf16.msra.mxu1 %v2286_v32  ;;  %v741_v58 = vadd.f32 %v2087_v55, %v574_v53 }
 0x18f   : > { %v732_v59 = vpop.f32.mrf.mxu0  ;;  %2161 = vmatprep.subr.bf16.mxu1 %v2287_v33 }
 0x190   : > { %v733_v61 = vadd.f32 %v732_v59, %v572_v56  ;;  %v779_v1 = vpack.c.bf16 %v741_v58, %v738_v62 }
 0x191   : > { %v2090_v63 = vpop.f32.mrf.mxu0 }
 0x192   : > { %v778_v0 = vpack.c.bf16 %v733_v61, %v730_v60  ;;  %2169 = vmatpush3.bf16.msra.mxu1 %v2287_v33  ;;  %v754_v12 = vadd.f32 %v2090_v63, %v577_v7 }
 0x193   : > { %v745_v2 = vpop.f32.mrf.mxu0  ;;  %2162 = vmatprep.subr.bf16.mxu1 %v2288_v34 }
 0x194   : > { %2116 = vmatprep.mubr.bf16.mxu1 %v778_v0  ;;  %v746_v10 = vadd.f32 %v745_v2, %v575_v4 }
 0x195   : > { %v2091_v5 = vpop.f32.mrf.mxu0  ;;  %2117 = vmatmul.mubr.bf16.gmra.mxu1 %v779_v1 }
 0x196   : > { %2170 = vmatpush3.bf16.msra.mxu1 %v2288_v34  ;;  %v757_v8 = vadd.f32 %v2091_v5, %v578_v3  ;;  %v1813_v34 = vld [vmem:[%s488_s12] ss:$0 sm:$0xff] }
 0x197   : > { %v748_v9 = vpop.f32.mrf.mxu0  ;;  %2163 = vmatprep.subr.bf16.mxu1 %v2289_v35 }
 0x198   : > { %v749_v11 = vadd.f32 %v748_v9, %v576_v6  ;;  %v781_v15 = vpack.c.bf16 %v757_v8, %v754_v12 }
 0x199   : > { %v2094_v13 = vpop.f32.mrf.mxu0 }
 0x19a   : > { %v780_v14 = vpack.c.bf16 %v749_v11, %v746_v10  ;;  %2171 = vmatpush3.bf16.msra.mxu1 %v2289_v35  ;;  %v770_v26 = vadd.f32 %v2094_v13, %v581_v21 }
 0x19b   : > { %v761_v16 = vpop.f32.mrf.mxu0  ;;  %2164 = vmatprep.subr.bf16.mxu1 %v2836_v36 }
 0x19c   : > { %2120 = vmatprep.mubr.bf16.mxu1 %v780_v14  ;;  %v762_v24 = vadd.f32 %v761_v16, %v579_v18 }
 0x19d   : > { %v2095_v19 = vpop.f32.mrf.mxu0  ;;  %2121 = vmatmul.mubr.bf16.gmra.mxu1 %v781_v15 }
 0x19e   : > { %2172 = vmatpush3.bf16.msra.mxu1 %v2836_v36  ;;  %v773_v22 = vadd.f32 %v2095_v19, %v582_v17 }
 0x19f   : > { %v764_v23 = vpop.f32.mrf.mxu0  ;;  %2165 = vmatprep.subr.bf16.mxu1 %v2291_v29 }
 0x1a0   : > { %v765_v25 = vadd.f32 %v764_v23, %v580_v20  ;;  %v783_v28 = vpack.c.bf16 %v773_v22, %v770_v26 }
 0x1a2   : > { %v782_v27 = vpack.c.bf16 %v765_v25, %v762_v24  ;;  %2173 = vmatpush3.bf16.msra.mxu1 %v2291_v29  ;;  %v1148_v25 = vstv %s1147_s22 }
 0x1a3   : > { %2166 = vmatprep.subr.bf16.mxu1 %v2292_v30  ;;  %2294 = vrcp.f32 %v1148_v25 }
 0x1a4   : > { %2124 = vmatprep.mubr.bf16.mxu1 %v782_v27  ;;  %v1151_v27 = vlaneseq }
 0x1a5   : > { %2125 = vmatmul.mubr.bf16.gmra.mxu1 %v783_v28 }
 0x1a6   : > { %2174 = vmatpush3.bf16.msra.mxu1 %v2292_v30  ;;  %v2866_v28 = vshrl.u32 %v1151_v27, 7 }
 0x1a7   : > { %2167 = vmatprep.subr.bf16.mxu1 %v2293_v31 }
 0x1a8   : > { %v1153_v29 = vadd.s32 8, %v2866_v28  ;;  %v1165_v25 = vadd.s32 104, %v2866_v28 }
 0x1aa   : > { %2175 = vmatpush3.bf16.msra.mxu1 %v2293_v31  ;;  %v1154_v31 = vadd.s32 16, %v2866_v28 }
 0x1b0   : > { %v2295_v26 = vpop.eup %2294 }
 0x1b1   : > { %2176 = vpush %v2295_v26 }
 0x1e2   : > { %s3034_s12 = spop %2176 }
 0x24d   : > { %v2114_v32 = vpop.f32.mrf.mxu1 }
 0x24e   : > { %v898_v38 = vadd.f32 %v2114_v32, %v1813_v34  ;;  %v2870_v32 = vstv %s3291_s27 }
 0x24f   : > { %v889_v33 = vpop.f32.mrf.mxu1  ;;  %vm1169_vm0 = vcmp.lt.s32.totalorder %v2866_v28, %v2870_v32  ;;  %vm1170_vm1 = vcmp.lt.s32.totalorder %v1153_v29, %v2870_v32  ;;  %vm1171_vm2 = vcmp.lt.s32.totalorder %v1154_v31, %v2870_v32  ;;  %vm1182_vm13 = vcmp.lt.s32.totalorder %v1165_v25, %v2870_v32 }
 0x250   : > { %v890_v36 = vadd.f32 %v1813_v34, %v889_v33  ;;  %v954_v45 = vmax.f32 %v898_v38, 0.0  ;;  %v1156_v38 = vadd.s32 32, %v2866_v28 }
 0x251   : > { %v2115_v35 = vpop.f32.mrf.mxu1 }
 0x252   : > { %v901_v37 = vadd.f32 %v2115_v35, %v1813_v34  ;;  %v952_v43 = vmax.f32 %v890_v36, 0.0  ;;  %v2881_v35 = vld [vmem:[%s491_s20] ss:$0 sm:$0xff]  ;;  %vm1173_vm4 = vcmp.lt.s32.totalorder %v1156_v38, %v2870_v32 }
 0x253   : > { %v892_v39 = vpop.f32.mrf.mxu1 }
 0x254   : > { %v893_v40 = vadd.f32 %v1813_v34, %v892_v39  ;;  %v955_v41 = vmax.f32 %v901_v37, 0.0  ;;  %v2515_v39 = vmov 0.0  }
 0x255   : > { %v2118_v42 = vpop.f32.mrf.mxu1 }
 0x256   : > { %v953_v44 = vmax.f32 %v893_v40, 0.0  ;;  %v969_v48 = vpack.c.bf16 %v955_v41, %v954_v45  ;;  %v914_v52 = vadd.f32 %v2118_v42, %v1813_v34  ;;  %v2889_v40 = vsel %vm1169_vm0, 1.0, %v2515_v39 }
 0x257   : > { %v905_v46 = vpop.f32.mrf.mxu1  ;;  %v2892_v42 = vsel %vm1170_vm1, 1.0, %v2515_v39  ;;  %v1157_v45 = vadd.s32 40, %v2866_v28 }
 0x258   : > { %v968_v47 = vpack.c.bf16 %v953_v44, %v952_v43  ;;  %v906_v50 = vadd.f32 %v1813_v34, %v905_v46  ;;  %v958_v59 = vmax.f32 %v914_v52, 0.0  ;;  %v2903_v46 = vsel %vm1171_vm2, 1.0, %v2515_v39 }
 0x259   : > { %v2119_v49 = vpop.f32.mrf.mxu1  ;;  %vm1174_vm5 = vcmp.lt.s32.totalorder %v1157_v45, %v2870_v32 }
 0x25a   : > { %v917_v51 = vadd.f32 %v2119_v49, %v1813_v34  ;;  %2144 = vmatprep.mubr.bf16.mxu0 %v968_v47  ;;  %v956_v57 = vmax.f32 %v906_v50, 0.0 }
 0x25b   : > { %v908_v53 = vpop.f32.mrf.mxu1  ;;  %2145 = vmatmul.mubr.bf16.vlgmr.msra.gmra.mxu0 %v969_v48  ;;  %v1158_v48 = vadd.s32 48, %v2866_v28 }
 0x25c   : > { %v909_v54 = vadd.f32 %v1813_v34, %v908_v53  ;;  %v959_v55 = vmax.f32 %v917_v51, 0.0 }
 0x25d   : > { %v2122_v56 = vpop.f32.mrf.mxu1  ;;  %vm1175_vm6 = vcmp.lt.s32.totalorder %v1158_v48, %v2870_v32  ;;  %v1167_v48 = vadd.s32 120, %v2866_v28 }
 0x25e   : > { %v957_v58 = vmax.f32 %v909_v54, 0.0  ;;  %v971_v62 = vpack.c.bf16 %v959_v55, %v958_v59  ;;  %v930_v2 = vadd.f32 %v2122_v56, %v1813_v34  ;;  %v1159_v54 = vadd.s32 56, %v2866_v28 }
 0x25f   : > { %v921_v60 = vpop.f32.mrf.mxu1  ;;  %vm1184_vm15 = vcmp.lt.s32.totalorder %v1167_v48, %v2870_v32 }
 0x260   : > { %v970_v61 = vpack.c.bf16 %v957_v58, %v956_v57  ;;  %v922_v0 = vadd.f32 %v1813_v34, %v921_v60  ;;  %v962_v9 = vmax.f32 %v930_v2, 0.0  ;;  %v2925_v58 = vsel %vm1173_vm4, 1.0, %v2515_v39 }
 0x261   : > { %v2123_v63 = vpop.f32.mrf.mxu1  ;;  %vm1176_vm7 = vcmp.lt.s32.totalorder %v1159_v54, %v2870_v32 }
 0x262   : > { %v933_v1 = vadd.f32 %v2123_v63, %v1813_v34  ;;  %2148 = vmatprep.mubr.bf16.mxu0 %v970_v61  ;;  %v960_v7 = vmax.f32 %v922_v0, 0.0  ;;  %v2933_v0 = vsel %vm1174_vm5, 1.0, %v2515_v39 }
 0x263   : > { %v924_v3 = vpop.f32.mrf.mxu1  ;;  %2149 = vmatmul.mubr.bf16.gmra.mxu0 %v971_v62  ;;  %v1160_v62 = vadd.s32 64, %v2866_v28 }
 0x264   : > { %v925_v4 = vadd.f32 %v1813_v34, %v924_v3  ;;  %v963_v5 = vmax.f32 %v933_v1, 0.0  ;;  %v1161_v1 = vadd.s32 72, %v2866_v28 }
 0x265   : > { %v2126_v6 = vpop.f32.mrf.mxu1  ;;  %vm1177_vm8 = vcmp.lt.s32.totalorder %v1160_v62, %v2870_v32 }
 0x266   : > { %v961_v8 = vmax.f32 %v925_v4, 0.0  ;;  %v973_v12 = vpack.c.bf16 %v963_v5, %v962_v9  ;;  %v946_v16 = vadd.f32 %v2126_v6, %v1813_v34  ;;  %v2945_v6 = vsel %vm1175_vm6, 1.0, %v2515_v39 }
 0x267   : > { %v937_v10 = vpop.f32.mrf.mxu1  ;;  %vm1178_vm9 = vcmp.lt.s32.totalorder %v1161_v1, %v2870_v32 }
 0x268   : > { %v972_v11 = vpack.c.bf16 %v961_v8, %v960_v7  ;;  %v938_v14 = vadd.f32 %v1813_v34, %v937_v10  ;;  %v966_v22 = vmax.f32 %v946_v16, 0.0  ;;  %v1162_v8 = vadd.s32 80, %v2866_v28 }
 0x269   : > { %v2127_v13 = vpop.f32.mrf.mxu1 }
 0x26a   : > { %v949_v15 = vadd.f32 %v2127_v13, %v1813_v34  ;;  %2152 = vmatprep.mubr.bf16.mxu1 %v972_v11  ;;  %v964_v20 = vmax.f32 %v938_v14, 0.0  ;;  %v1163_v14 = vadd.s32 88, %v2866_v28  ;;  %vm1179_vm10 = vcmp.lt.s32.totalorder %v1162_v8, %v2870_v32 }
 0x26b   : > { %v940_v17 = vpop.f32.mrf.mxu1  ;;  %2153 = vmatmul.mubr.bf16.vlgmr.msra.gmra.mxu1 %v973_v12  ;;  %v2955_v12 = vsel %vm1176_vm7, 1.0, %v2515_v39  ;;  %v2985_v31 = vsel %vm1179_vm10, 1.0, %v2515_v39  ;;  %v3028_v8 = vsel %vm1184_vm15, 1.0, %v2515_v39 }
 0x26c   : > { %v941_v18 = vadd.f32 %v1813_v34, %v940_v17  ;;  %v967_v19 = vmax.f32 %v949_v15, 0.0  ;;  %v1155_v34 = vadd.s32 24, %v2866_v28  ;;  %vm1180_vm11 = vcmp.lt.s32.totalorder %v1163_v14, %v2870_v32 }
 0x26d   : > { %v2995_v45 = vsel %vm1180_vm11, 1.0, %v2515_v39 }
 0x26e   : > { %v965_v21 = vmax.f32 %v941_v18, 0.0  ;;  %v975_v24 = vpack.c.bf16 %v967_v19, %v966_v22  ;;  %vm1172_vm3 = vcmp.lt.s32.totalorder %v1155_v34, %v2870_v32  ;;  %v2965_v18 = vsel %vm1177_vm8, 1.0, %v2515_v39 }
 0x26f   : > { %v2915_v52 = vsel %vm1172_vm3, 1.0, %v2515_v39  ;;  %v1164_v22 = vadd.s32 96, %v2866_v28  ;;  %v1166_v34 = vadd.s32 112, %v2866_v28 }
 0x270   : > { %v974_v23 = vpack.c.bf16 %v965_v21, %v964_v20 }
 0x271   : > { %vm1181_vm12 = vcmp.lt.s32.totalorder %v1164_v22, %v2870_v32  ;;  %vm1183_vm14 = vcmp.lt.s32.totalorder %v1166_v34, %v2870_v32 }
 0x272   : > { %2156 = vmatprep.mubr.bf16.mxu1 %v974_v23  ;;  %v3005_v54 = vsel %vm1181_vm12, 1.0, %v2515_v39 }
 0x273   : > { %2157 = vmatmul.mubr.bf16.gmra.mxu1 %v975_v24  ;;  %v2973_v24 = vsel %vm1178_vm9, 1.0, %v2515_v39 }
 0x31b   : > { %v2146_v30 = vpop.f32.mrf.mxu0 }
 0x31c   : > { %v2895_v43 = vadd.f32 %v2146_v30, %v2881_v35 }
 0x31d   : > { %v1081_v33 = vpop.f32.mrf.mxu0 }
 0x31e   : > { %v2885_v37 = vadd.f32 %v2881_v35, %v1081_v33  ;;  %v1219_v55 = vmul.f32 %v2903_v46, %v2895_v43 }
 0x31f   : > { %v2147_v36 = vpop.f32.mrf.mxu0 }
 0x320   : > { %v1217_v49 = vmul.f32 %v2889_v40, %v2885_v37  ;;  %v2909_v50 = vadd.f32 %v2147_v36, %v2881_v35 }
 0x321   : > { %v1084_v41 = vpop.f32.mrf.mxu0 }
 0x322   : > { %v2899_v44 = vadd.f32 %v2881_v35, %v1084_v41  ;;  %v1220_v60 = vmul.f32 %v2915_v52, %v2909_v50 }
 0x323   : > { %v2150_v47 = vpop.f32.mrf.mxu0 }
 0x324   : > { %v1218_v51 = vmul.f32 %v2892_v42, %v2899_v44  ;;  %v2937_v2 = vadd.f32 %v2150_v47, %v2881_v35 }
 0x325   : > { %v1097_v53 = vpop.f32.mrf.mxu0 }
 0x326   : > { %v1233_v56 = vadd.f32 %v1218_v51, %v1217_v49  ;;  %v2921_v57 = vadd.f32 %v2881_v35, %v1097_v53  ;;  %v1223_v15 = vmul.f32 %v2945_v6, %v2937_v2 }
 0x327   : > { %v2151_v59 = vpop.f32.mrf.mxu0 }
 0x328   : > { %v1234_v61 = vadd.f32 %v1233_v56, %v1219_v55  ;;  %v1221_v3 = vmul.f32 %v2925_v58, %v2921_v57  ;;  %v2949_v10 = vadd.f32 %v2151_v59, %v2881_v35 }
 0x329   : > { %v1100_v63 = vpop.f32.mrf.mxu0 }
 0x32a   : > { %v1235_v4 = vadd.f32 %v1234_v61, %v1220_v60  ;;  %v2942_v5 = vadd.f32 %v2881_v35, %v1100_v63  ;;  %v1224_v20 = vmul.f32 %v2955_v12, %v2949_v10  ;;  %v3012_v60 = vsel %vm1182_vm13, 1.0, %v2515_v39 }
 0x32b   : > { %v2154_v7 = vpop.f32.mrf.mxu1 }
 0x32c   : > { %v1236_v9 = vadd.f32 %v1235_v4, %v1221_v3  ;;  %v1222_v11 = vmul.f32 %v2933_v0, %v2942_v5  ;;  %v2977_v26 = vadd.f32 %v2154_v7, %v2881_v35  ;;  %v3021_v3 = vsel %vm1183_vm14, 1.0, %v2515_v39 }
 0x32d   : > { %v1113_v13 = vpop.f32.mrf.mxu1  ;;  %v1254_v39 = vstv %s3034_s12 }
 0x32e   : > { %v1237_v16 = vadd.f32 %v1236_v9, %v1222_v11  ;;  %v2961_v17 = vadd.f32 %v2881_v35, %v1113_v13  ;;  %v1227_v49 = vmul.f32 %v2985_v31, %v2977_v26 }
 0x32f   : > { %v2155_v19 = vpop.f32.mrf.mxu1 }
 0x330   : > { %v1238_v21 = vadd.f32 %v1237_v16, %v1223_v15  ;;  %v1225_v27 = vmul.f32 %v2965_v18, %v2961_v17  ;;  %v2989_v38 = vadd.f32 %v2155_v19, %v2881_v35 }
 0x331   : > { %v1116_v23 = vpop.f32.mrf.mxu1 }
 0x332   : > { %v1239_v29 = vadd.f32 %v1238_v21, %v1224_v20  ;;  %v2982_v30 = vadd.f32 %v2881_v35, %v1116_v23  ;;  %v1228_v56 = vmul.f32 %v2995_v45, %v2989_v38 }
 0x333   : > { %v2158_v33 = vpop.f32.mrf.mxu1 }
 0x334   : > { %v1240_v36 = vadd.f32 %v1239_v29, %v1225_v27  ;;  %v1226_v41 = vmul.f32 %v2973_v24, %v2982_v30  ;;  %v3015_v61 = vadd.f32 %v2158_v33, %v2881_v35 }
 0x335   : > { %v1129_v47 = vpop.f32.mrf.mxu1 }
 0x336   : > { %v1241_v51 = vadd.f32 %v1240_v36, %v1226_v41  ;;  %v3001_v53 = vadd.f32 %v2881_v35, %v1129_v47  ;;  %v1231_v9 = vmul.f32 %v3021_v3, %v3015_v61 }
 0x337   : > { %v2159_v55 = vpop.f32.mrf.mxu1 }
 0x338   : > { %v1242_v59 = vadd.f32 %v1241_v51, %v1227_v49  ;;  %v1229_v62 = vmul.f32 %v3005_v54, %v3001_v53  ;;  %v3024_v7 = vadd.f32 %v2159_v55, %v2881_v35 }
 0x339   : > { %v1132_v28 = vpop.f32.mrf.mxu1 }
 0x33a   : > { %v1243_v63 = vadd.f32 %v1242_v59, %v1228_v56  ;;  %v1133_v1 = vadd.f32 %v2881_v35, %v1132_v28  ;;  %v1232_v13 = vmul.f32 %v3028_v8, %v3024_v7 }
 0x33c   : > { %v1244_v4 = vadd.f32 %v1243_v63, %v1229_v62  ;;  %v1230_v32 = vmul.f32 %v3012_v60, %v1133_v1 }
 0x33e   : > { %v1245_v11 = vadd.f32 %v1244_v4, %v1230_v32 }
 0x340   : > { %v1246_v14 = vadd.f32 %v1245_v11, %v1231_v9 }
 0x342   : > { %v1247_v15 = vadd.f32 %v1246_v14, %v1232_v13 }
 0x344   : > { %v1248_v16 = vrot.slane %v1247_v15, 4 }
 0x346   : > { %v1249_v19 = vadd.f32 %v1248_v16, %v1247_v15 }
 0x348   : > { %v1250_v20 = vrot.slane %v1249_v19, 2 }
 0x34a   : > { %v1251_v35 = vadd.f32 %v1250_v20, %v1249_v19 }
 0x34c   : > { %v1252_v21 = vrot.slane %v1251_v35, 1 }
 0x34e   : > { %v1253_v22 = vadd.f32 %v1252_v21, %v1251_v35 }
 0x350   : > { %v1255_v23 = vmul.f32 %v1254_v39, %v1253_v22 }
 0x352   : > { %v3040_v25 = vsub.f32 %v2885_v37, %v1255_v23  ;;  %v3043_v27 = vsub.f32 %v2899_v44, %v1255_v23  ;;  %v3046_v29 = vsub.f32 %v2895_v43, %v1255_v23  ;;  %v3053_v36 = vsub.f32 %v2909_v50, %v1255_v23 }
 0x353   : > { %v3056_v41 = vsub.f32 %v2921_v57, %v1255_v23  ;;  %v3061_v43 = vsub.f32 %v2942_v5, %v1255_v23  ;;  %v3066_v49 = vsub.f32 %v2937_v2, %v1255_v23  ;;  %v3071_v55 = vsub.f32 %v2949_v10, %v1255_v23 }
 0x354   : > { %v1272_v33 = vmul.f32 %v2889_v40, %v3040_v25  ;;  %v1273_v34 = vmul.f32 %v2892_v42, %v3043_v27  ;;  %v1274_v37 = vmul.f32 %v2903_v46, %v3046_v29  ;;  %v1275_v48 = vmul.f32 %v2915_v52, %v3053_v36 }
 0x355   : > { %v1276_v50 = vmul.f32 %v2925_v58, %v3056_v41  ;;  %v1277_v56 = vmul.f32 %v2933_v0, %v3061_v43  ;;  %v1264_v28 = vsub.f32 %v2961_v17, %v1255_v23  ;;  %v1278_v62 = vmul.f32 %v2945_v6, %v3066_v49 }
 0x356   : > { %v1288_v44 = vmul.f32 %v1272_v33, %v1272_v33  ;;  %v1289_v47 = vmul.f32 %v1273_v34, %v1273_v34  ;;  %v1290_v51 = vmul.f32 %v1274_v37, %v1274_v37  ;;  %v1291_v59 = vmul.f32 %v1275_v48, %v1275_v48 }
 0x357   : > { %v1292_v2 = vmul.f32 %v1276_v50, %v1276_v50  ;;  %v1265_v4 = vsub.f32 %v2982_v30, %v1255_v23  ;;  %v1279_v32 = vmul.f32 %v2955_v12, %v3071_v55  ;;  %v1293_v9 = vmul.f32 %v1277_v56, %v1277_v56 }
 0x358   : > { %v1304_v57 = vadd.f32 %v1289_v47, %v1288_v44  ;;  %v1266_v11 = vsub.f32 %v2977_v26, %v1255_v23  ;;  %v1280_v13 = vmul.f32 %v2965_v18, %v1264_v28  ;;  %v1294_v14 = vmul.f32 %v1278_v62, %v1278_v62 }
 0x359   : > { %v1267_v17 = vsub.f32 %v2989_v38, %v1255_v23  ;;  %v1281_v16 = vmul.f32 %v2973_v24, %v1265_v4  ;;  %v1295_v19 = vmul.f32 %v1279_v32, %v1279_v32  ;;  %v1268_v35 = vsub.f32 %v3001_v53, %v1255_v23 }
 0x35a   : > { %v1305_v5 = vadd.f32 %v1304_v57, %v1290_v51  ;;  %v1282_v30 = vmul.f32 %v2985_v31, %v1266_v11  ;;  %v1296_v21 = vmul.f32 %v1280_v13, %v1280_v13  ;;  %v1269_v33 = vsub.f32 %v1133_v1, %v1255_v23 }
 0x35b   : > { %v1283_v34 = vmul.f32 %v2995_v45, %v1267_v17  ;;  %v1297_v26 = vmul.f32 %v1281_v16, %v1281_v16  ;;  %v1270_v44 = vsub.f32 %v3015_v61, %v1255_v23  ;;  %v1284_v47 = vmul.f32 %v3005_v54, %v1268_v35 }
 0x35c   : > { %v1306_v63 = vadd.f32 %v1305_v5, %v1291_v59  ;;  %v1298_v38 = vmul.f32 %v1282_v30, %v1282_v30  ;;  %v1271_v50 = vsub.f32 %v3024_v7, %v1255_v23  ;;  %v1285_v51 = vmul.f32 %v3012_v60, %v1269_v33 }
 0x35d   : > { %v1299_v53 = vmul.f32 %v1283_v34, %v1283_v34  ;;  %v1286_v56 = vmul.f32 %v3021_v3, %v1270_v44  ;;  %v1300_v59 = vmul.f32 %v1284_v47, %v1284_v47 }
 0x35e   : > { %v1307_v10 = vadd.f32 %v1306_v63, %v1292_v2  ;;  %v1287_v5 = vmul.f32 %v3028_v8, %v1271_v50  ;;  %v1301_v62 = vmul.f32 %v1285_v51, %v1285_v51 }
 0x35f   : > { %v1302_v61 = vmul.f32 %v1286_v56, %v1286_v56 }
 0x360   : > { %v1308_v15 = vadd.f32 %v1307_v10, %v1293_v9  ;;  %v1303_v32 = vmul.f32 %v1287_v5, %v1287_v5 }
 0x362   : > { %v1309_v20 = vadd.f32 %v1308_v15, %v1294_v14 }
 0x364   : > { %v1310_v22 = vadd.f32 %v1309_v20, %v1295_v19 }
 0x366   : > { %v1311_v37 = vadd.f32 %v1310_v22, %v1296_v21 }
 0x368   : > { %v1312_v48 = vadd.f32 %v1311_v37, %v1297_v26 }
 0x36a   : > { %v1313_v57 = vadd.f32 %v1312_v48, %v1298_v38 }
 0x36c   : > { %v1314_v1 = vadd.f32 %v1313_v57, %v1299_v53 }
 0x36e   : > { %v1315_v2 = vadd.f32 %v1314_v1, %v1300_v59 }
 0x370   : > { %v1316_v63 = vadd.f32 %v1315_v2, %v1301_v62 }
 0x372   : > { %v1317_v9 = vadd.f32 %v1316_v63, %v1302_v61 }
 0x374   : > { %v1318_v10 = vadd.f32 %v1317_v9, %v1303_v32 }
 0x376   : > { %v1319_v13 = vrot.slane %v1318_v10, 4 }
 0x378   : > { %v1320_v7 = vadd.f32 %v1319_v13, %v1318_v10 }
 0x37a   : > { %v1321_v23 = vrot.slane %v1320_v7, 2 }
 0x37c   : > { %v1322_v14 = vadd.f32 %v1321_v23, %v1320_v7 }
 0x37e   : > { %v1323_v15 = vrot.slane %v1322_v14, 1 }
 0x380   : > { %v1324_v16 = vadd.f32 %v1323_v15, %v1322_v14 }
 0x382   : > { %v1325_v19 = vmul.f32 %v1324_v16, %v1254_v39  ;;  %v1847_v39 = vld [vmem:[%s494_s23] ss:$0 sm:$0xff] }
 0x384   : > { %v1326_v20 = vadd.f32 1e-05, %v1325_v19 }
 0x386   : > { %2296 = vrsqrt.f32 %v1326_v20 }
 0x393   : > { %v2297_v30 = vpop.eup %2296 }
 0x394   : > { %v1328_v21 = vmul.f32 %v2297_v30, %v3040_v25  ;;  %v1329_v22 = vmul.f32 %v2297_v30, %v3043_v27  ;;  %v1330_v34 = vmul.f32 %v2297_v30, %v3046_v29  ;;  %v1331_v26 = vmul.f32 %v2297_v30, %v3053_v36 }
 0x395   : > { %v1332_v37 = vmul.f32 %v2297_v30, %v3056_v41  ;;  %v1333_v47 = vmul.f32 %v2297_v30, %v3061_v43  ;;  %v1334_v38 = vmul.f32 %v2297_v30, %v3066_v49  ;;  %v1335_v48 = vmul.f32 %v2297_v30, %v3071_v55 }
 0x396   : > { %v1336_v25 = vmul.f32 %v2297_v30, %v1264_v28  ;;  %v1337_v27 = vmul.f32 %v2297_v30, %v1265_v4  ;;  %v1338_v51 = vmul.f32 %v2297_v30, %v1266_v11  ;;  %v1339_v29 = vmul.f32 %v2297_v30, %v1267_v17  ;;  %v1848_v28 = vld [vmem:[%s497_s26] ss:$0 sm:$0xff] }
 0x397   : > { %v1340_v53 = vmul.f32 %v2297_v30, %v1268_v35  ;;  %v1341_v36 = vmul.f32 %v2297_v30, %v1269_v33  ;;  %v1342_v57 = vmul.f32 %v2297_v30, %v1270_v44  ;;  %v1343_v41 = vmul.f32 %v2297_v30, %v1271_v50 }
 0x398   : > { %v1351_v56 = vmul.f32 %v1847_v39, %v1328_v21  ;;  %v1352_v43 = vmul.f32 %v1847_v39, %v1329_v22  ;;  %v1353_v59 = vmul.f32 %v1847_v39, %v1330_v34  ;;  %v1354_v49 = vmul.f32 %v1847_v39, %v1331_v26 }
 0x399   : > { %v1355_v1 = vmul.f32 %v1847_v39, %v1332_v37  ;;  %v1356_v55 = vmul.f32 %v1847_v39, %v1333_v47  ;;  %v1357_v5 = vmul.f32 %v1847_v39, %v1334_v38  ;;  %v1358_v62 = vmul.f32 %v1847_v39, %v1335_v48 }
 0x39a   : > { %v1359_v4 = vmul.f32 %v1847_v39, %v1336_v25  ;;  %v1360_v11 = vmul.f32 %v1847_v39, %v1337_v27  ;;  %v1361_v17 = vmul.f32 %v1847_v39, %v1338_v51  ;;  %v1362_v35 = vmul.f32 %v1847_v39, %v1339_v29 }
 0x39b   : > { %v1363_v33 = vmul.f32 %v1847_v39, %v1340_v53  ;;  %v1364_v44 = vmul.f32 %v1847_v39, %v1341_v36  ;;  %v1365_v50 = vmul.f32 %v1847_v39, %v1342_v57  ;;  %v1366_v2 = vmul.f32 %v1847_v39, %v1343_v41  ;;  %1394 = sbr.rel (%p1849_p7) target bundleno = 942 (0x3ae), region = 84 }
 0x39c   : > { %v3114_v61 = vadd.f32 %v1848_v28, %v1351_v56  ;;  %v3116_v63 = vadd.f32 %v1848_v28, %v1352_v43  ;;  %v3118_v32 = vadd.f32 %v1848_v28, %v1353_v59  ;;  %v3120_v9 = vadd.f32 %v1848_v28, %v1354_v49 }
 0x39d   : > { %v3122_v10 = vadd.f32 %v1848_v28, %v1355_v1  ;;  %v3124_v13 = vadd.f32 %v1848_v28, %v1356_v55  ;;  %v3126_v7 = vadd.f32 %v1848_v28, %v1357_v5  ;;  %v3128_v23 = vadd.f32 %v1848_v28, %v1358_v62 }
 0x39e   : > { %v3130_v14 = vadd.f32 %v1848_v28, %v1359_v4  ;;  %v3132_v15 = vadd.f32 %v1848_v28, %v1360_v11  ;;  %v3134_v16 = vadd.f32 %v1848_v28, %v1361_v17  ;;  %v3136_v19 = vadd.f32 %v1848_v28, %v1362_v35 }
 0x39f   : > { %v3138_v20 = vadd.f32 %v1848_v28, %v1363_v33  ;;  %v3140_v30 = vadd.f32 %v1848_v28, %v1364_v44  ;;  %v3142_v21 = vadd.f32 %v1848_v28, %v1365_v50  ;;  %v3144_v22 = vadd.f32 %v1848_v28, %v1366_v2 }
 0x3a0   : > { %v1395_v34 = vmax.f32 %v3114_v61, 0.0  ;;  %v1396_v26 = vmax.f32 %v3116_v63, 0.0  ;;  %v1397_v37 = vmax.f32 %v3118_v32, 0.0  ;;  %v1398_v47 = vmax.f32 %v3120_v9, 0.0 }
 0x3a1   : > { %v1399_v38 = vmax.f32 %v3122_v10, 0.0  ;;  %v1400_v48 = vmax.f32 %v3124_v13, 0.0  ;;  %v1401_v39 = vmax.f32 %v3126_v7, 0.0  ;;  %v1402_v25 = vmax.f32 %v3128_v23, 0.0 }
 0x3a2   : > { %v1411_v27 = vmul.f32 %v2889_v40, %v1395_v34  ;;  %v1412_v51 = vmul.f32 %v2892_v42, %v1396_v26  ;;  %v1413_v29 = vmul.f32 %v2903_v46, %v1397_v37  ;;  %v1414_v53 = vmul.f32 %v2915_v52, %v1398_v47 }
 0x3a3   : > { %v1415_v36 = vmul.f32 %v2925_v58, %v1399_v38  ;;  %v1416_v57 = vmul.f32 %v2933_v0, %v1400_v48  ;;  %v1417_v41 = vmul.f32 %v2945_v6, %v1401_v39  ;;  %v1418_v56 = vmul.f32 %v2955_v12, %v1402_v25 }
 0x3a4   : > { %v1925_v43 = vpack.c.bf16 %v1412_v51, %v1411_v27  ;;  %v1930_v59 = vpack.c.bf16 %v1414_v53, %v1413_v29  ;;  %v1403_v49 = vmax.f32 %v3130_v14, 0.0  ;;  %v1404_v1 = vmax.f32 %v3132_v15, 0.0 }
 0x3a5   : > { %v1935_v55 = vpack.c.bf16 %v1416_v57, %v1415_v36  ;;  %v1940_v5 = vpack.c.bf16 %v1418_v56, %v1417_v41  ;;  %v1405_v62 = vmax.f32 %v3134_v16, 0.0  ;;  %v1406_v28 = vmax.f32 %v3136_v19, 0.0 }
 0x3a6   : > { %1926 = vst [vmem:[#allocation2] sm:$0xff] %v1925_v43   ;;  %2002 = vst [vmem:[#allocation2 + $0x8] sm:$0xff] %v1930_v59   ;;  %v1419_v4 = vmul.f32 %v2965_v18, %v1403_v49  ;;  %v1420_v11 = vmul.f32 %v2973_v24, %v1404_v1  ;;  %v1407_v17 = vmax.f32 %v3138_v20, 0.0  ;;  %v1408_v35 = vmax.f32 %v3140_v30, 0.0 }
 0x3a7   : > { %2003 = vst [vmem:[#allocation2 + $0x10] sm:$0xff] %v1935_v55   ;;  %2004 = vst [vmem:[#allocation2 + $0x18] sm:$0xff] %v1940_v5   ;;  %v1421_v33 = vmul.f32 %v2985_v31, %v1405_v62  ;;  %v1422_v44 = vmul.f32 %v2995_v45, %v1406_v28  ;;  %v1409_v50 = vmax.f32 %v3142_v21, 0.0  ;;  %v1410_v2 = vmax.f32 %v3144_v22, 0.0 }
 0x3a8   : > { %v1945_v34 = vpack.c.bf16 %v1420_v11, %v1419_v4  ;;  %v1423_v26 = vmul.f32 %v3005_v54, %v1407_v17  ;;  %v1424_v37 = vmul.f32 %v3012_v60, %v1408_v35 }
 0x3a9   : > { %v1950_v47 = vpack.c.bf16 %v1422_v44, %v1421_v33  ;;  %v1425_v38 = vmul.f32 %v3021_v3, %v1409_v50  ;;  %v1426_v48 = vmul.f32 %v3028_v8, %v1410_v2 }
 0x3aa   : > { %2005 = vst [vmem:[#allocation2 + $0x20] sm:$0xff] %v1945_v34   ;;  %v1955_v39 = vpack.c.bf16 %v1424_v37, %v1423_v26 }
 0x3ab   : > { %2006 = vst [vmem:[#allocation2 + $0x28] sm:$0xff] %v1950_v47   ;;  %v1960_v25 = vpack.c.bf16 %v1426_v48, %v1425_v38 }
 0x3ac   : > { %2007 = vst [vmem:[#allocation2 + $0x30] sm:$0xff] %v1955_v39  }
 0x3ad   : > { %2008 = vst [vmem:[#allocation2 + $0x38] sm:$0xff] %v1960_v25  }
 0x3ae PF: > { %p1866_p11 = scmp.ne.s32.totalorder %s2596_s0, 2 }
 0x3b0   : > { %1509 = sbr.rel (%p1866_p11) target bundleno = 963 (0x3c3), region = 88 }
 0x3b5   : > { %v1510_v27 = vmul.f32 %v2889_v40, %v3114_v61  ;;  %v1511_v51 = vmul.f32 %v2892_v42, %v3116_v63  ;;  %v1512_v29 = vmul.f32 %v2903_v46, %v3118_v32  ;;  %v1513_v53 = vmul.f32 %v2915_v52, %v3120_v9 }
 0x3b6   : > { %v1514_v36 = vmul.f32 %v2925_v58, %v3122_v10  ;;  %v1515_v57 = vmul.f32 %v2933_v0, %v3124_v13  ;;  %v1516_v41 = vmul.f32 %v2945_v6, %v3126_v7  ;;  %v1517_v40 = vmul.f32 %v2955_v12, %v3128_v23 }
 0x3b7   : > { %v1965_v61 = vpack.c.bf16 %v1511_v51, %v1510_v27  ;;  %1606 = vst [vmem:[#allocation13] sm:$0xff] %v1510_v27  ;;  %1607 = vst [vmem:[#allocation13 + $0x8] sm:$0xff] %v1511_v51  ;;  %v1970_v42 = vpack.c.bf16 %v1513_v53, %v1512_v29  ;;  %v1518_v46 = vmul.f32 %v2965_v18, %v3130_v14 }
 0x3b8   : > { %1608 = vst [vmem:[#allocation13 + $0x10] sm:$0xff] %v1512_v29  ;;  %1609 = vst [vmem:[#allocation13 + $0x18] sm:$0xff] %v1513_v53  ;;  %v1519_v52 = vmul.f32 %v2973_v24, %v3132_v15  ;;  %v1975_v58 = vpack.c.bf16 %v1515_v57, %v1514_v36  ;;  %v1980_v0 = vpack.c.bf16 %v1517_v40, %v1516_v41 }
 0x3b9   : > { %1610 = vst [vmem:[#allocation13 + $0x20] sm:$0xff] %v1514_v36  ;;  %1611 = vst [vmem:[#allocation13 + $0x28] sm:$0xff] %v1515_v57  ;;  %v1520_v6 = vmul.f32 %v2985_v31, %v3134_v16  ;;  %v1521_v12 = vmul.f32 %v2995_v45, %v3136_v19  ;;  %v1522_v18 = vmul.f32 %v3005_v54, %v3138_v20 }
 0x3ba   : > { %1612 = vst [vmem:[#allocation13 + $0x30] sm:$0xff] %v1516_v41  ;;  %1613 = vst [vmem:[#allocation13 + $0x38] sm:$0xff] %v1517_v40  ;;  %v1985_v63 = vpack.c.bf16 %v1519_v52, %v1518_v46  ;;  %v1523_v24 = vmul.f32 %v3012_v60, %v3140_v30  ;;  %v1524_v32 = vmul.f32 %v3021_v3, %v3142_v21 }
 0x3bb   : > { %1966 = vst [vmem:[#allocation2] sm:$0xff] %v1965_v61   ;;  %2009 = vst [vmem:[#allocation2 + $0x8] sm:$0xff] %v1970_v42   ;;  %v1990_v31 = vpack.c.bf16 %v1521_v12, %v1520_v6  ;;  %v1525_v45 = vmul.f32 %v3028_v8, %v3144_v22 }
 0x3bc   : > { %1614 = vst [vmem:[#allocation13 + $0x40] sm:$0xff] %v1518_v46  ;;  %1615 = vst [vmem:[#allocation13 + $0x48] sm:$0xff] %v1519_v52  ;;  %v1995_v9 = vpack.c.bf16 %v1523_v24, %v1522_v18 }
 0x3bd   : > { %2010 = vst [vmem:[#allocation2 + $0x10] sm:$0xff] %v1975_v58   ;;  %2011 = vst [vmem:[#allocation2 + $0x18] sm:$0xff] %v1980_v0   ;;  %v2000_v54 = vpack.c.bf16 %v1525_v45, %v1524_v32 }
 0x3be   : > { %1616 = vst [vmem:[#allocation13 + $0x50] sm:$0xff] %v1520_v6  ;;  %1617 = vst [vmem:[#allocation13 + $0x58] sm:$0xff] %v1521_v12 }
 0x3bf   : > { %2012 = vst [vmem:[#allocation2 + $0x20] sm:$0xff] %v1985_v63   ;;  %1618 = vst [vmem:[#allocation13 + $0x60] sm:$0xff] %v1522_v18 }
 0x3c0   : > { %1619 = vst [vmem:[#allocation13 + $0x68] sm:$0xff] %v1523_v24  ;;  %1620 = vst [vmem:[#allocation13 + $0x70] sm:$0xff] %v1524_v32 }
 0x3c1   : > { %2013 = vst [vmem:[#allocation2 + $0x28] sm:$0xff] %v1990_v31   ;;  %1621 = vst [vmem:[#allocation13 + $0x78] sm:$0xff] %v1525_v45 }
 0x3c2   : > { %2014 = vst [vmem:[#allocation2 + $0x30] sm:$0xff] %v1995_v9   ;;  %2015 = vst [vmem:[#allocation2 + $0x38] sm:$0xff] %v2000_v54  }
 0x3c3 PF: > { %s2516_s15 = smov [#allocation13]  }
 0x3c4   : > { %s1628_s23 = sshll.u32 %s2516_s15, 4  ;;  %s1629_s23 = int_to_ptr.vmem [resolvable:$true] %s1628_s23 }
 0x3c5   : > { %s2434_s21 = scalar_lea.vmem %s1629_s23, 2048  ;;  %p2441_p5 = scmp.lt.s32.totalorder %s1629_s23, %s1629_s23 }
 0x3c6   : > { %p2435_p4 = scmp.ne.s32.totalorder %s1629_s23, %s2434_s21  ;;  %p2442_p10 = scmp.lt.s32.totalorder %s2434_s21, %s2434_s21 }
 0x3c8   : > { %p2436_p9 = pnand %p2435_p4, %p1849_p7  ;;  %p2443_p12 = por %p2442_p10, %p2441_p5 }
 0x3ca   : > { %p2437_p8 = pneg %p2436_p9 }
 0x3cc   : > { %p2444_p1 = pnand %p2443_p12, %p2437_p8 }
 0x3ce   : > { %2447 = shalt.err (!%p2444_p1)
}
 0x3cf   : > { %s2517_s19 = smov 128   ;;  %s2518_s29 = smov 8  }
 0x3d0   : > { %s3284_s9 = sld [smem:[#allocation22_spill]] }
 0x3d6   : > { %2193 = dma.vmem_to_hbm [thread:$0]  (%p1849_p7), %s1629_s23, 2048, %s3284_s9, [#allocation7], %s2517_s19, %s2517_s19, %s2518_s29  }
 0x3d7   : > { %2487 = dma.done.wait (%p1849_p7), [#allocation7], 2048  }
 0x3d8   : > { %2489 = vsyncadd (%p1849_p7), [#allocation7], 4294965248 }
 0x3d9 PF: > { %s3285_s18 = sld [smem:[#allocation18_spill]]  ;;  %s3287_s15 = smov %s2496_s16 }
 0x3da   : > { %s3286_s14 = sld [smem:[#allocation19_spill]]  ;;  %s3288_s16 = smov %s2500_s17 }
 0x3df   : > { %p21_p13 = scmp.ge.s32.totalorder %s3285_s18, 5  }
 0x3e0   : > { %s3289_s17 = smov %s3286_s14 }
 0x3e1   :  { %23 = sbr.rel (!%p21_p13) target bundleno = 9 (0x9), region = 146 }
 0x3e6   :  { %1644 = vsyncpa [#allocation6], 1 }
 0x3e7   :  { %1646 = vsyncpa [#allocation6 + $0x1], 1 }
 0x3e8   :  { %1647 = vsyncpa [#allocation9], 1 }
 0x3e9   :  { %1648 = vsyncpa [#allocation7], 1 }
 0x3ea   :  { %1650 = vsyncpa [#allocation7 + $0x1], 1 }

// kernel: tpu_custom_call.1
= control target key start
LH: loop header
LB: loop body
LE: loop exit
PB: predicated region body
PF: predicated region fallthrough
CT: control target
= control target key end

     0   :  { %s3238_s0 = inlined_call_operand.<no memory space> [shape: s32[1], index: 0, kind: input, shape index: {}]   ;;  %s3239_s1 = inlined_call_operand.hbm [shape: bf16[128,128], index: 1, kind: input, shape index: {}]   ;;  %s3240_s2 = inlined_call_operand.hbm [shape: bf16[128,128], index: 2, kind: input, shape index: {}]   ;;  %s3241_s3 = inlined_call_operand.hbm [shape: f32[3,128,128], index: 3, kind: input, shape index: {}]   ;;  %s3242_s4 = inlined_call_operand.hbm [shape: bf16[3,128,128], index: 4, kind: input, shape index: {}]   ;;  %s3243_s5 = inlined_call_operand.vmem [shape: f32[3,1,128], index: 5, kind: input, shape index: {}]   ;;  %s3244_s6 = inlined_call_operand.hbm [shape: bf16[3,128,128], index: 6, kind: input, shape index: {}]   ;;  %s3245_s7 = inlined_call_operand.vmem [shape: f32[3,1,128], index: 7, kind: input, shape index: {}]   ;;  %s3246_s8 = inlined_call_operand.vmem [shape: f32[3,1,128], index: 8, kind: input, shape index: {}]   ;;  %s3247_s9 = inlined_call_operand.vmem [shape: f32[3,1,128], index: 9, kind: input, shape index: {}]   ;;  %s3248_s10 = inlined_call_operand.hbm [shape: f32[128,128], index: 10, kind: output, shape index: {}]  }
   0x1   :  { %3259 = sst [smem:[#allocation20_spill]] %s3246_s8 }
   0x2   :  { %3260 = sst [smem:[#allocation21_spill]] %s3247_s9 }
   0x3   :  { %3261 = sst [smem:[#allocation22_spill]] %s3248_s10 }
   0x4   :  { %15 = sst [smem:[#allocation4]] %s3238_s0 }
   0x5   :  { %16 = vsyncpa [#allocation6], 0 }
   0x6   :  { %17 = vsyncpa [#allocation9], 0 }
   0x7   :  { %18 = vsyncpa [#allocation7], 0  ;;  %s2577_s15 = smov 0   ;;  %s2579_s16 = smov 0  }
   0x8   :  { %s2581_s17 = smov 0   ;;  %s2583_s18 = smov 0  }
   0x9 LB: > { %s2596_s0 = sadd.s32 4294967295, %s2504_s18   ;;  %s2599_s19 = sadd.s32 1, %s2504_s18   ;;  %s2504_s18 = sphi %s2583_s18, %s3285_s18   ;;  %s2500_s17 = sphi %s2581_s17, %s3289_s17   ;;  %s2496_s16 = sphi %s2579_s16, %s3288_s16   ;;  %s2492_s15 = sphi %s2577_s15, %s3287_s15  }
   0xa   : > { %3262 = sst [smem:[#allocation18_spill]] %s2599_s19  ;;  %s70_s20 = ssub.s32 %s2504_s18, %s2599_s19 }
   0xb   : > { %s73_s21 = sadd.s32 1, %s2500_s17  ;;  %p71_p0 = scmp.eq.s32.totalorder %s70_s20, 0 }
   0xc   : > { %p80_p1 = scmp.ne.s32.totalorder %s2500_s17, %s2496_s16  ;;  %p81_p2 = scmp.eq.s32.totalorder %s2504_s18, 0 }
   0xd   : > { %p86_p3 = scmp.ne.s32.totalorder %s2496_s16, %s2492_s15  ;;  %p3249_p5 = scmp.eq.s32.totalorder %s2596_s0, 0 }
   0xe   : > { %s2609_s22 = scalar_select %p71_p0, %s2500_s17, %s73_s21  }
   0xf   : > { %p2611_p4 = por %p81_p2, %p80_p1  ;;  %p1777_p6 = scmp.ge.s32.totalorder %s2504_s18, 1 }
  0x10   : > { %3263 = sst [smem:[#allocation19_spill]] %s2609_s22  ;;  %p274_p7 = scmp.lt.s32.totalorder %s2504_s18, 4 }
  0x11   : > { %p2620_p8 = por %p3249_p5, %p86_p3  ;;  %s2506_s26 = smov [#allocation5]  }
  0x12   : > { %p2625_p10 = pnand %p1777_p6, %p274_p7  ;;  %s286_s27 = sshll.u32 %s2506_s26, 4  ;;  %s287_s27 = int_to_ptr.vmem [resolvable:$true] %s286_s27 }
  0x13   : > { %s3265_s24 = scalar_select %p2620_p8, 1, 0 }
  0x14   : > { %s3266_s25 = scalar_select %p2625_p10, 1, 0 }
  0x15   : > { %p2196_p11 = pneg %p2625_p10  ;;  %p2215_p13 = scmp.lt.s32.totalorder %s2504_s18, 3 }
  0x16   : > { %s313_s29 = sand.u32 1, %s2504_s18   ;;  %s315_s30 = sand.u32 1, %s2500_s17  }
  0x17   : > { %p2633_p12 = pnand %p2196_p11, %p3249_p5  ;;  %p2642_p0 = pnand %p2215_p13, %p2611_p4 }
  0x18   : > { %s2309_s12 = scalar_lea.vmem %s287_s27, 1024  ;;  %p2317_p7 = scmp.lt.s32.totalorder %s287_s27, %s287_s27 }
  0x19   : > { %s3267_s28 = scalar_select %p2633_p12, 1, 0 }
  0x1a   : > { %p3252_p1 = pneg %p2633_p12  ;;  %p2310_p2 = scmp.ne.s32.totalorder %s287_s27, %s2309_s12 }
  0x1b   : > { %p2318_p11 = scmp.lt.s32.totalorder %s2309_s12, %s2309_s12 }
  0x1c   : > { %p2312_p3 = pnand %p2310_p2, %p3252_p1 }
  0x1d   : > { %p2319_p9 = por %p2318_p11, %p2317_p7 }
  0x1e   : > { %p2313_p6 = pneg %p2312_p3 }
  0x20   : > { %p2320_p5 = pnand %p2319_p9, %p2313_p6 }
  0x22   : > { %2323 = shalt.err (!%p2320_p5)
}
  0x23   : > { %s3257_s13 = smov 64   ;;  %s2508_s14 = smov 4  }
  0x24   : > { %2199 = dma.hbm_to_vmem [thread:$0]  (!%p2633_p12), %s3239_s1, 1024, %s287_s27, [#allocation6], %s3257_s13, %s3257_s13, %s2508_s14  }
  0x25   : > { %s1781_s21 = sshll.u32 %s315_s30, 7  ;;  %s1887_s23 = sshll.u32 %s2504_s18, 11 }
  0x26   : > { %s2665_s22 = scalar_lea.hbm %s3241_s3, %s1887_s23  ;;  %s317_s19 = scalar_lea.vmem [#allocation10], %s1781_s21 }
  0x27   : > { %s324_s10 = sshll.u32 %s317_s19, 4  ;;  %s2669_s9 = scalar_lea.sflag [#allocation6], %s313_s29  ;;  %s2667_s10 = int_to_ptr.vmem [resolvable:$true] %s324_s10 }
  0x28   : > { %s2324_s8 = scalar_lea.hbm %s2665_s22, 2048  ;;  %p2675_p5 = pneg %p2642_p0 }
  0x29   : > { %p2325_p4 = scmp.ne.s32.totalorder %s2665_s22, %s2324_s8  ;;  %s2329_s21 = scalar_lea.hbm %s3241_s3, 6144 }
  0x2a   : > { %p2330_p2 = scmp.lt.s32.totalorder %s2665_s22, %s3241_s3  ;;  %p2331_p3 = scmp.lt.s32.totalorder %s2329_s21, %s2324_s8 }
  0x2b   : > { %p2327_p9 = pnand %p2675_p5, %p2325_p4 }
  0x2c   : > { %p2332_p6 = por %p2331_p3, %p2330_p2 }
  0x2d   : > { %p2328_p13 = pneg %p2327_p9 }
  0x2f   : > { %p2333_p7 = pnand %p2332_p6, %p2328_p13 }
  0x31   : > { %2336 = shalt.err (!%p2333_p7)
}
  0x32   : > { %s2337_s29 = scalar_lea.vmem %s2667_s10, 2048  ;;  %s2509_s26 = smov [#allocation10]  }
  0x33   : > { %p2338_p11 = scmp.ne.s32.totalorder %s2667_s10, %s2337_s29  ;;  %s2342_s12 = sshll.u32 %s2509_s26, 4  ;;  %s2343_s12 = int_to_ptr.vmem [resolvable:$false] %s2342_s12 }
  0x34   : > { %s2344_s15 = scalar_lea.vmem %s2343_s12, 4096  ;;  %p2345_p1 = scmp.lt.s32.totalorder %s2667_s10, %s2343_s12 }
  0x35   : > { %p2340_p4 = pnand %p2338_p11, %p2675_p5  ;;  %p2346_p8 = scmp.lt.s32.totalorder %s2344_s15, %s2337_s29 }
  0x37   : > { %p2341_p9 = pneg %p2340_p4  ;;  %p2347_p10 = por %p2346_p8, %p2345_p1 }
  0x39   : > { %p2348_p12 = pnand %p2347_p10, %p2341_p9 }
  0x3b   : > { %2351 = shalt.err (!%p2348_p12)
}
  0x3c   : > { %s2510_s8 = smov 128   ;;  %s2511_s20 = smov 8  }
  0x3d   : > { %2206 = dma.hbm_to_vmem [thread:$0]  (!%p2642_p0), %s2665_s22, 2048, %s2667_s10, %s2669_s9, %s2510_s8, %s2510_s8, %s2511_s20  }
  0x3e   : > { %s2700_s21 = sshll.u32 %s315_s30, 6  ;;  %s1888_s19 = sshll.u32 %s2504_s18, 10 }
  0x3f   : > { %s2708_s26 = scalar_lea.hbm %s3242_s4, %s1888_s19  ;;  %s338_s12 = scalar_lea.vmem [#allocation11], %s2700_s21 }
  0x40   : > { %s345_s15 = sshll.u32 %s338_s12, 4  ;;  %s2512_s13 = smov [#allocation8]   ;;  %s2711_s15 = int_to_ptr.vmem [resolvable:$true] %s345_s15 }
  0x41   : > { %s2713_s10 = sshll.u32 %s2512_s13, 4  ;;  %s2352_s22 = scalar_lea.hbm %s2708_s26, 1024  ;;  %s300_s10 = int_to_ptr.vmem [resolvable:$true] %s2713_s10 }
  0x42   : > { %p2353_p8 = scmp.ne.s32.totalorder %s2708_s26, %s2352_s22  ;;  %s2357_s20 = scalar_lea.hbm %s3242_s4, 3072 }
  0x43   : > { %p2358_p1 = scmp.lt.s32.totalorder %s2708_s26, %s3242_s4  ;;  %p2359_p13 = scmp.lt.s32.totalorder %s2357_s20, %s2352_s22 }
  0x44   : > { %p2355_p10 = pnand %p2353_p8, %p2675_p5 }
  0x45   : > { %p2360_p2 = por %p2359_p13, %p2358_p1 }
  0x46   : > { %p2356_p12 = pneg %p2355_p10 }
  0x48   : > { %p2361_p3 = pnand %p2360_p2, %p2356_p12 }
  0x4a   : > { %2364 = shalt.err (!%p2361_p3)
}
  0x4b   : > { %s2365_s13 = scalar_lea.vmem %s2711_s15, 1024  ;;  %s2513_s12 = smov [#allocation11]  }
  0x4c   : > { %p2366_p6 = scmp.ne.s32.totalorder %s2711_s15, %s2365_s13  ;;  %s2370_s30 = sshll.u32 %s2513_s12, 4  ;;  %s2371_s30 = int_to_ptr.vmem [resolvable:$false] %s2370_s30 }
  0x4d   : > { %s2372_s8 = scalar_lea.vmem %s2371_s30, 2048  ;;  %p2373_p4 = scmp.lt.s32.totalorder %s2711_s15, %s2371_s30 }
  0x4e   : > { %p2368_p7 = pnand %p2366_p6, %p2675_p5  ;;  %p2374_p9 = scmp.lt.s32.totalorder %s2372_s8, %s2365_s13 }
  0x50   : > { %p2369_p11 = pneg %p2368_p7  ;;  %p2375_p8 = por %p2374_p9, %p2373_p4 }
  0x52   : > { %p2376_p10 = pnand %p2375_p8, %p2369_p11 }
  0x54   : > { %2379 = shalt.err (!%p2376_p10)
}
  0x55   : > { %s3270_s22 = smov 64   ;;  %s2391_s20 = scalar_lea.vmem %s300_s10, 1024 }
  0x56   : > { %2209 = dma.hbm_to_vmem [thread:$0]  (!%p2642_p0), %s2708_s26, 1024, %s2711_s15, %s2669_s9, %s3270_s22, %s3270_s22, %s2508_s14  }
  0x57   : > { %p2392_p12 = scmp.ne.s32.totalorder %s300_s10, %s2391_s20  ;;  %p3271_p1 = scmp.ne.s32.totalorder %s3267_s28, 0 }
  0x58   : > { %p2399_p6 = scmp.lt.s32.totalorder %s300_s10, %s300_s10  ;;  %p2400_p7 = scmp.lt.s32.totalorder %s2391_s20, %s2391_s20 }
  0x59   : > { %p3272_p13 = pneg %p3271_p1 }
  0x5a   : > { %p2401_p11 = por %p2400_p7, %p2399_p6 }
  0x5b   : > { %p2394_p2 = pnand %p2392_p12, %p3272_p13 }
  0x5d   : > { %p2395_p3 = pneg %p2394_p2 }
  0x5f   : > { %p2402_p4 = pnand %p2401_p11, %p2395_p3 }
  0x61   : > { %2405 = shalt.err (!%p2402_p4)
}
  0x62   : > { %2202 = dma.hbm_to_vmem [thread:$0]  (!%p3271_p1), %s3240_s2, 1024, %s300_s10, [#allocation9], %s3270_s22, %s3270_s22, %s2508_s14  }
  0x63   : > { %s2756_s13 = scalar_lea.hbm %s3244_s6, %s1888_s19  ;;  %s365_s28 = scalar_lea.vmem [#allocation12], %s2700_s21 }
  0x64   : > { %s372_s12 = sshll.u32 %s365_s28, 4  ;;  %s2406_s30 = scalar_lea.hbm %s2756_s13, 1024  ;;  %s373_s12 = int_to_ptr.vmem [resolvable:$true] %s372_s12 }
  0x65   : > { %p2407_p9 = scmp.ne.s32.totalorder %s2756_s13, %s2406_s30  ;;  %s2411_s18 = scalar_lea.hbm %s3244_s6, 3072 }
  0x66   : > { %p2412_p12 = scmp.lt.s32.totalorder %s2756_s13, %s3244_s6  ;;  %p2413_p1 = scmp.lt.s32.totalorder %s2411_s18, %s2406_s30 }
  0x67   : > { %p2409_p8 = pnand %p2407_p9, %p2675_p5 }
  0x68   : > { %p2414_p13 = por %p2413_p1, %p2412_p12 }
  0x69   : > { %p2410_p10 = pneg %p2409_p8 }
  0x6b   : > { %p2415_p2 = pnand %p2414_p13, %p2410_p10 }
  0x6d   : > { %2418 = shalt.err (!%p2415_p2)
}
  0x6e   : > { %s2419_s21 = scalar_lea.vmem %s373_s12, 1024  ;;  %s2514_s19 = smov [#allocation12]  }
  0x6f   : > { %p2420_p3 = scmp.ne.s32.totalorder %s373_s12, %s2419_s21  ;;  %s2424_s29 = sshll.u32 %s2514_s19, 4  ;;  %s2425_s29 = int_to_ptr.vmem [resolvable:$false] %s2424_s29 }
  0x70   : > { %s2426_s26 = scalar_lea.vmem %s2425_s29, 2048  ;;  %p2427_p11 = scmp.lt.s32.totalorder %s373_s12, %s2425_s29 }
  0x71   : > { %p2422_p6 = pnand %p2420_p3, %p2675_p5  ;;  %p2428_p4 = scmp.lt.s32.totalorder %s2426_s26, %s2419_s21 }
  0x73   : > { %p2423_p7 = pneg %p2422_p6  ;;  %p2429_p9 = por %p2428_p4, %p2427_p11 }
  0x75   : > { %p2430_p8 = pnand %p2429_p9, %p2423_p7 }
  0x77   : > { %2433 = shalt.err (!%p2430_p8)
}
  0x78   : > { %2212 = dma.hbm_to_vmem [thread:$0]  (!%p2642_p0), %s2756_s13, 1024, %s373_s12, %s2669_s9, %s3270_s22, %s3270_s22, %s2508_s14  }
  0x79   : > { %p3273_p5 = scmp.ne.s32.totalorder %s3266_s25, 0 }
  0x7a   : > { %p3274_p10 = scmp.eq.s32.totalorder (!%p3273_p5), %s2596_s0, 0 }
  0x7b   : > { %402 = sbr.rel (%p3273_p5) target bundleno = 985 (0x3d9), region = 56 }
  0x80   : > { %2475 = dma.done.wait (%p3274_p10), [#allocation6], 1024   ;;  %p3275_p12 = pmov %p3274_p10 }
  0x81   : > { %p3276_p1 = pmov %p3274_p10 }
  0x82   : > { %2477 = vsyncadd (%p3275_p12), [#allocation6], 4294966272 }
  0x83   : > { %2479 = dma.done.wait (%p3276_p1), [#allocation9], 1024   ;;  %p3277_p13 = pmov %p3276_p1 }
  0x84   : > { %s412_s11 = sand.u32 1, %s2596_s0   ;;  %s414_s9 = sand.u32 1, %s2496_s16  }
  0x85   : > { %2481 = vsyncadd (%p3277_p13), [#allocation9], 4294966272  ;;  %s1793_s14 = sshll.u32 %s414_s9, 7  ;;  %s413_s25 = scalar_lea.sflag [#allocation6], %s412_s11 }
  0x86   : > { %s2791_s27 = scalar_lea.vmem [#allocation10], %s1793_s14  ;;  %p3278_p0 = scmp.ne.s32.totalorder %s3265_s24, 0 }
  0x88   : > { %2483 = dma.done.wait (%p3278_p0), %s413_s25, 4096  }
  0x89   : > { %2485 = vsyncadd (%p3278_p0), %s413_s25, 4294963200  ;;  %s1794_s22 = sshll.u32 %s414_s9, 6  ;;  %p486_p2 = scmp.lt.s32.totalorder %s2596_s0, 2 }
  0x8a   : > { %s3279_s10 = sld [smem:[#allocation20_spill]]  ;;  %s2817_s11 = scalar_lea.vmem [#allocation11], %s1794_s22 }
  0x8b   : > { %s2799_s15 = scalar_select %p486_p2, %s2596_s0, 2 }
  0x8c   : > { %s3280_s29 = sld [smem:[#allocation21_spill]]  ;;  %s2819_s9 = scalar_lea.vmem [#allocation12], %s1794_s22 }
  0x8d   : > { %s488_s12 = scalar_lea.vmem %s3243_s5, %s2799_s15  ;;  %s491_s20 = scalar_lea.vmem %s3245_s7, %s2799_s15 }
  0x8e   : > { %p3281_p3 = scmp.ne.s32.totalorder %s2596_s0, 0 }
  0x90   : > { %s494_s23 = scalar_lea.vmem %s3279_s10, %s2799_s15  ;;  %502 = sbr.rel (%p3281_p3) target bundleno = 154 (0x9a), region = 80 }
  0x92   : > { %s497_s26 = scalar_lea.vmem %s3280_s29, %s2799_s15 }
  0x95   : > { %v503_v0 = vld [vmem:[#allocation8] sm:$0xff]   ;;  %v505_v1 = vld [vmem:[#allocation8 + $0x8] sm:$0xff]   ;;  %v507_v2 = vld [vmem:[#allocation8 + $0x10] sm:$0xff]  }
  0x96   : > { %519 = vst [vmem:[#allocation2] sm:$0xff] %v503_v0   ;;  %521 = vst [vmem:[#allocation2 + $0x8] sm:$0xff] %v505_v1   ;;  %v509_v3 = vld [vmem:[#allocation8 + $0x18] sm:$0xff]   ;;  %v511_v4 = vld [vmem:[#allocation8 + $0x20] sm:$0xff]  }
  0x97   : > { %523 = vst [vmem:[#allocation2 + $0x10] sm:$0xff] %v507_v2   ;;  %v513_v5 = vld [vmem:[#allocation8 + $0x28] sm:$0xff]   ;;  %525 = vst [vmem:[#allocation2 + $0x18] sm:$0xff] %v509_v3   ;;  %v515_v6 = vld [vmem:[#allocation8 + $0x30] sm:$0xff]  }
  0x98   : > { %527 = vst [vmem:[#allocation2 + $0x20] sm:$0xff] %v511_v4   ;;  %529 = vst [vmem:[#allocation2 + $0x28] sm:$0xff] %v513_v5   ;;  %v517_v7 = vld [vmem:[#allocation8 + $0x38] sm:$0xff]  }
  0x99   : > { %531 = vst [vmem:[#allocation2 + $0x30] sm:$0xff] %v515_v6   ;;  %533 = vst [vmem:[#allocation2 + $0x38] sm:$0xff] %v517_v7  }
  0x9a PF: > { %v2270_v12 = vld [vmem:[#allocation5] sm:$0xff]   ;;  %v2278_v15 = vld [vmem:[%s2817_s11 + $0x38] sm:$0xff]   ;;  %v2279_v16 = vld [vmem:[%s2817_s11 + $0x30] sm:$0xff]   ;;  %p1849_p7 = scmp.eq.s32.totalorder %s2596_s0, 2 }
  0x9b   : > { %2080 = vmatprep.mubr.bf16.mxu0 %v2270_v12  ;;  %2096 = vmatprep.subr.bf16.mxu1 %v2278_v15  ;;  %v2280_v18 = vld [vmem:[%s2817_s11 + $0x28] sm:$0xff]   ;;  %v2281_v20 = vld [vmem:[%s2817_s11 + $0x20] sm:$0xff]   ;;  %v2282_v21 = vld [vmem:[%s2817_s11 + $0x18] sm:$0xff]  }
  0x9c   : > { %2097 = vmatpush3.bf16.msra.mxu1 %v2278_v15  ;;  %v2271_v22 = vld [vmem:[#allocation5 + $0x8] sm:$0xff]   ;;  %v2272_v23 = vld [vmem:[#allocation5 + $0x10] sm:$0xff]   ;;  %v2273_v24 = vld [vmem:[#allocation5 + $0x18] sm:$0xff]  }
  0x9d   : > { %v2268_v17 = vld [vmem:[#allocation2 + $0x8] sm:$0xff]   ;;  %2098 = vmatprep.subr.bf16.mxu1 %v2279_v16  ;;  %v2269_v19 = vld [vmem:[#allocation2] sm:$0xff]   ;;  %v2276_v27 = vld [vmem:[#allocation5 + $0x30] sm:$0xff]  }
  0x9e   : > { %v2266_v13 = vld [vmem:[#allocation2 + $0x18] sm:$0xff]   ;;  %v2267_v14 = vld [vmem:[#allocation2 + $0x10] sm:$0xff]   ;;  %v2274_v25 = vld [vmem:[#allocation5 + $0x20] sm:$0xff]  }
  0x9f   : > { %v2264_v10 = vld [vmem:[#allocation2 + $0x28] sm:$0xff]   ;;  %v2265_v11 = vld [vmem:[#allocation2 + $0x20] sm:$0xff]   ;;  %v2277_v28 = vld [vmem:[#allocation5 + $0x38] sm:$0xff]  }
  0xa0   : > { %v2262_v8 = vld [vmem:[#allocation2 + $0x38] sm:$0xff]   ;;  %v2263_v9 = vld [vmem:[#allocation2 + $0x30] sm:$0xff]   ;;  %2099 = vmatpush3.bf16.msra.mxu1 %v2279_v16  ;;  %v2275_v26 = vld [vmem:[#allocation5 + $0x28] sm:$0xff]  }
  0xa1   : > { %2064 = vmatprep.subr.bf16.mxu0 %v2262_v8  ;;  %2100 = vmatprep.subr.bf16.mxu1 %v2280_v18  ;;  %v2283_v29 = vld [vmem:[%s2817_s11 + $0x10] sm:$0xff]   ;;  %v2284_v30 = vld [vmem:[%s2817_s11 + $0x8] sm:$0xff]   ;;  %v2285_v31 = vld [vmem:[%s2817_s11] sm:$0xff]  }
  0xa2   : > { %2065 = vmatpush3.bf16.msra.mxu0 %v2262_v8  ;;  %v2286_v32 = vld [vmem:[%s2819_s9 + $0x38] sm:$0xff]   ;;  %v2287_v33 = vld [vmem:[%s2819_s9 + $0x30] sm:$0xff]   ;;  %v2288_v34 = vld [vmem:[%s2819_s9 + $0x28] sm:$0xff]  }
  0xa3   : > { %2066 = vmatprep.subr.bf16.mxu0 %v2263_v9  ;;  %v2289_v35 = vld [vmem:[%s2819_s9 + $0x20] sm:$0xff]   ;;  %v2836_v36 = vld [vmem:[%s2819_s9 + $0x18] sm:$0xff]   ;;  %v568_v42 = vld [vmem:[%s2791_s27 + $0x8] sm:$0xff] }
  0xa4   : > { %2101 = vmatpush3.bf16.msra.mxu1 %v2280_v18  ;;  %v570_v39 = vld [vmem:[%s2791_s27 + $0x18] sm:$0xff]  ;;  %v567_v40 = vld [vmem:[%s2791_s27] sm:$0xff]  ;;  %v569_v43 = vld [vmem:[%s2791_s27 + $0x10] sm:$0xff] }
  0xa5   : > { %2102 = vmatprep.subr.bf16.mxu1 %v2281_v20  ;;  %v574_v53 = vld [vmem:[%s2791_s27 + $0x38] sm:$0xff]  ;;  %v571_v54 = vld [vmem:[%s2791_s27 + $0x20] sm:$0xff]  ;;  %v572_v56 = vld [vmem:[%s2791_s27 + $0x28] sm:$0xff] }
  0xa6   : > { %2067 = vmatpush3.bf16.msra.mxu0 %v2263_v9  ;;  %v573_v57 = vld [vmem:[%s2791_s27 + $0x30] sm:$0xff]  ;;  %v578_v3 = vld [vmem:[%s2791_s27 + $0x58] sm:$0xff]  ;;  %v575_v4 = vld [vmem:[%s2791_s27 + $0x40] sm:$0xff] }
  0xa7   : > { %2068 = vmatprep.subr.bf16.mxu0 %v2264_v10  ;;  %v576_v6 = vld [vmem:[%s2791_s27 + $0x48] sm:$0xff]  ;;  %v577_v7 = vld [vmem:[%s2791_s27 + $0x50] sm:$0xff]  ;;  %v579_v18 = vld [vmem:[%s2791_s27 + $0x60] sm:$0xff] }
  0xa8   : > { %2103 = vmatpush3.bf16.msra.mxu1 %v2281_v20  ;;  %v580_v20 = vld [vmem:[%s2791_s27 + $0x68] sm:$0xff] }
  0xa9   : > { %2104 = vmatprep.subr.bf16.mxu1 %v2282_v21 }
  0xaa   : > { %2069 = vmatpush3.bf16.msra.mxu0 %v2264_v10 }
  0xab   : > { %2070 = vmatprep.subr.bf16.mxu0 %v2265_v11 }
  0xac   : > { %2105 = vmatpush3.bf16.msra.mxu1 %v2282_v21  ;;  %v581_v21 = vld [vmem:[%s2791_s27 + $0x70] sm:$0xff] }
  0xad   : > { %2106 = vmatprep.subr.bf16.mxu1 %v2283_v29 }
  0xae   : > { %2071 = vmatpush3.bf16.msra.mxu0 %v2265_v11 }
  0xaf   : > { %2072 = vmatprep.subr.bf16.mxu0 %v2266_v13 }
  0xb0   : > { %2107 = vmatpush3.bf16.msra.mxu1 %v2283_v29  ;;  %v2291_v29 = vld [vmem:[%s2819_s9 + $0x10] sm:$0xff]  }
  0xb1   : > { %2108 = vmatprep.subr.bf16.mxu1 %v2284_v30 }
  0xb2   : > { %2073 = vmatpush3.bf16.msra.mxu0 %v2266_v13 }
  0xb3   : > { %2074 = vmatprep.subr.bf16.mxu0 %v2267_v14 }
  0xb4   : > { %2109 = vmatpush3.bf16.msra.mxu1 %v2284_v30  ;;  %v2292_v30 = vld [vmem:[%s2819_s9 + $0x8] sm:$0xff]  }
  0xb5   : > { %2110 = vmatprep.subr.bf16.mxu1 %v2285_v31 }
  0xb6   : > { %2075 = vmatpush3.bf16.msra.mxu0 %v2267_v14 }
  0xb7   : > { %2076 = vmatprep.subr.bf16.mxu0 %v2268_v17 }
  0xb8   : > { %2111 = vmatpush3.bf16.msra.mxu1 %v2285_v31  ;;  %v2293_v31 = vld [vmem:[%s2819_s9] sm:$0xff]  }
  0xb9   : > { %2160 = vmatprep.subr.bf16.mxu1 %v2286_v32 }
  0xba   : > { %2077 = vmatpush3.bf16.msra.mxu0 %v2268_v17  ;;  %v582_v17 = vld [vmem:[%s2791_s27 + $0x78] sm:$0xff]  ;;  %s1144_s27 = sld [smem:[#allocation4]] }
  0xbb   : > { %2078 = vmatprep.subr.bf16.mxu0 %v2269_v19 }
  0xbe   : > { %2079 = vmatpush3.bf16.msra.mxu0 %v2269_v19 }
  0xbf   : > { %2128 = vmatprep.subr.bf16.mxu0 %v2286_v32 }
  0xc0   : > { %p1145_p6 = scmp.gt.s32.totalorder %s1144_s27, 1 }
  0xc1   : > { %2081 = vmatmul.mubr.bf16.vlgmr.msra.gmra.mxu0 %v2271_v22 }
  0xc2   : > { %2084 = vmatprep.mubr.bf16.mxu0 %v2272_v23  ;;  %2129 = vmatpush3.bf16.msra.mxu0 %v2286_v32  ;;  %s3291_s27 = smov (!%p1145_p6, %s1144_s27), 1 }
  0xc3   : > { %2130 = vmatprep.subr.bf16.mxu0 %v2287_v33  ;;  %s1147_s22 = scvt.s32.f32 %s3291_s27 }
  0xc6   : > { %2131 = vmatpush3.bf16.msra.mxu0 %v2287_v33 }
  0xc7   : > { %2132 = vmatprep.subr.bf16.mxu0 %v2288_v34 }
  0xc9   : > { %2085 = vmatmul.mubr.bf16.gmra.mxu0 %v2273_v24 }
  0xca   : > { %2088 = vmatprep.mubr.bf16.mxu0 %v2274_v25  ;;  %2133 = vmatpush3.bf16.msra.mxu0 %v2288_v34 }
  0xcb   : > { %2134 = vmatprep.subr.bf16.mxu0 %v2289_v35 }
  0xce   : > { %2135 = vmatpush3.bf16.msra.mxu0 %v2289_v35 }
  0xcf   : > { %2136 = vmatprep.subr.bf16.mxu0 %v2836_v36 }
  0xd1   : > { %2089 = vmatmul.mubr.bf16.gmra.mxu0 %v2275_v26 }
  0xd2   : > { %2092 = vmatprep.mubr.bf16.mxu0 %v2276_v27  ;;  %2137 = vmatpush3.bf16.msra.mxu0 %v2836_v36 }
  0xd3   : > { %2138 = vmatprep.subr.bf16.mxu0 %v2291_v29 }
  0xd6   : > { %2139 = vmatpush3.bf16.msra.mxu0 %v2291_v29 }
  0xd7   : > { %2140 = vmatprep.subr.bf16.mxu0 %v2292_v30 }
  0xd9   : > { %2093 = vmatmul.mubr.bf16.gmra.mxu0 %v2277_v28 }
  0xda   : > { %2141 = vmatpush3.bf16.msra.mxu0 %v2292_v30 }
  0xdb   : > { %2142 = vmatprep.subr.bf16.mxu0 %v2293_v31 }
  0xde   : > { %2143 = vmatpush3.bf16.msra.mxu0 %v2293_v31 }
 0x181   : > { %v2082_v37 = vpop.f32.mrf.mxu0 }
 0x182   : > { %v722_v48 = vadd.f32 %v2082_v37, %v569_v43 }
 0x183   : > { %v713_v38 = vpop.f32.mrf.mxu0 }
 0x184   : > { %v714_v46 = vadd.f32 %v713_v38, %v567_v40 }
 0x185   : > { %v2083_v41 = vpop.f32.mrf.mxu0 }
 0x186   : > { %v725_v44 = vadd.f32 %v2083_v41, %v570_v39 }
 0x187   : > { %v716_v45 = vpop.f32.mrf.mxu0 }
 0x188   : > { %v717_v47 = vadd.f32 %v716_v45, %v568_v42  ;;  %v777_v51 = vpack.c.bf16 %v725_v44, %v722_v48 }
 0x189   : > { %v2086_v49 = vpop.f32.mrf.mxu0 }
 0x18a   : > { %v776_v50 = vpack.c.bf16 %v717_v47, %v714_v46  ;;  %v738_v62 = vadd.f32 %v2086_v49, %v573_v57 }
 0x18b   : > { %v729_v52 = vpop.f32.mrf.mxu0 }
 0x18c   : > { %2112 = vmatprep.mubr.bf16.mxu1 %v776_v50  ;;  %v730_v60 = vadd.f32 %v729_v52, %v571_v54 }
 0x18d   : > { %v2087_v55 = vpop.f32.mrf.mxu0  ;;  %2113 = vmatmul.mubr.bf16.vlgmr.msra.gmra.mxu1 %v777_v51 }
 0x18e   : > { %2168 = vmatpush3.bf16.msra.mxu1 %v2286_v32  ;;  %v741_v58 = vadd.f32 %v2087_v55, %v574_v53 }
 0x18f   : > { %v732_v59 = vpop.f32.mrf.mxu0  ;;  %2161 = vmatprep.subr.bf16.mxu1 %v2287_v33 }
 0x190   : > { %v733_v61 = vadd.f32 %v732_v59, %v572_v56  ;;  %v779_v1 = vpack.c.bf16 %v741_v58, %v738_v62 }
 0x191   : > { %v2090_v63 = vpop.f32.mrf.mxu0 }
 0x192   : > { %v778_v0 = vpack.c.bf16 %v733_v61, %v730_v60  ;;  %2169 = vmatpush3.bf16.msra.mxu1 %v2287_v33  ;;  %v754_v12 = vadd.f32 %v2090_v63, %v577_v7 }
 0x193   : > { %v745_v2 = vpop.f32.mrf.mxu0  ;;  %2162 = vmatprep.subr.bf16.mxu1 %v2288_v34 }
 0x194   : > { %2116 = vmatprep.mubr.bf16.mxu1 %v778_v0  ;;  %v746_v10 = vadd.f32 %v745_v2, %v575_v4 }
 0x195   : > { %v2091_v5 = vpop.f32.mrf.mxu0  ;;  %2117 = vmatmul.mubr.bf16.gmra.mxu1 %v779_v1 }
 0x196   : > { %2170 = vmatpush3.bf16.msra.mxu1 %v2288_v34  ;;  %v757_v8 = vadd.f32 %v2091_v5, %v578_v3  ;;  %v1813_v34 = vld [vmem:[%s488_s12] ss:$0 sm:$0xff] }
 0x197   : > { %v748_v9 = vpop.f32.mrf.mxu0  ;;  %2163 = vmatprep.subr.bf16.mxu1 %v2289_v35 }
 0x198   : > { %v749_v11 = vadd.f32 %v748_v9, %v576_v6  ;;  %v781_v15 = vpack.c.bf16 %v757_v8, %v754_v12 }
 0x199   : > { %v2094_v13 = vpop.f32.mrf.mxu0 }
 0x19a   : > { %v780_v14 = vpack.c.bf16 %v749_v11, %v746_v10  ;;  %2171 = vmatpush3.bf16.msra.mxu1 %v2289_v35  ;;  %v770_v26 = vadd.f32 %v2094_v13, %v581_v21 }
 0x19b   : > { %v761_v16 = vpop.f32.mrf.mxu0  ;;  %2164 = vmatprep.subr.bf16.mxu1 %v2836_v36 }
 0x19c   : > { %2120 = vmatprep.mubr.bf16.mxu1 %v780_v14  ;;  %v762_v24 = vadd.f32 %v761_v16, %v579_v18 }
 0x19d   : > { %v2095_v19 = vpop.f32.mrf.mxu0  ;;  %2121 = vmatmul.mubr.bf16.gmra.mxu1 %v781_v15 }
 0x19e   : > { %2172 = vmatpush3.bf16.msra.mxu1 %v2836_v36  ;;  %v773_v22 = vadd.f32 %v2095_v19, %v582_v17 }
 0x19f   : > { %v764_v23 = vpop.f32.mrf.mxu0  ;;  %2165 = vmatprep.subr.bf16.mxu1 %v2291_v29 }
 0x1a0   : > { %v765_v25 = vadd.f32 %v764_v23, %v580_v20  ;;  %v783_v28 = vpack.c.bf16 %v773_v22, %v770_v26 }
 0x1a2   : > { %v782_v27 = vpack.c.bf16 %v765_v25, %v762_v24  ;;  %2173 = vmatpush3.bf16.msra.mxu1 %v2291_v29  ;;  %v1148_v25 = vstv %s1147_s22 }
 0x1a3   : > { %2166 = vmatprep.subr.bf16.mxu1 %v2292_v30  ;;  %2294 = vrcp.f32 %v1148_v25 }
 0x1a4   : > { %2124 = vmatprep.mubr.bf16.mxu1 %v782_v27  ;;  %v1151_v27 = vlaneseq }
 0x1a5   : > { %2125 = vmatmul.mubr.bf16.gmra.mxu1 %v783_v28 }
 0x1a6   : > { %2174 = vmatpush3.bf16.msra.mxu1 %v2292_v30  ;;  %v2866_v28 = vshrl.u32 %v1151_v27, 7 }
 0x1a7   : > { %2167 = vmatprep.subr.bf16.mxu1 %v2293_v31 }
 0x1a8   : > { %v1153_v29 = vadd.s32 8, %v2866_v28  ;;  %v1165_v25 = vadd.s32 104, %v2866_v28 }
 0x1aa   : > { %2175 = vmatpush3.bf16.msra.mxu1 %v2293_v31  ;;  %v1154_v31 = vadd.s32 16, %v2866_v28 }
 0x1b0   : > { %v2295_v26 = vpop.eup %2294 }
 0x1b1   : > { %2176 = vpush %v2295_v26 }
 0x1e2   : > { %s3034_s12 = spop %2176 }
 0x24d   : > { %v2114_v32 = vpop.f32.mrf.mxu1 }
 0x24e   : > { %v898_v38 = vadd.f32 %v2114_v32, %v1813_v34  ;;  %v2870_v32 = vstv %s3291_s27 }
 0x24f   : > { %v889_v33 = vpop.f32.mrf.mxu1  ;;  %vm1169_vm0 = vcmp.lt.s32.totalorder %v2866_v28, %v2870_v32  ;;  %vm1170_vm1 = vcmp.lt.s32.totalorder %v1153_v29, %v2870_v32  ;;  %vm1171_vm2 = vcmp.lt.s32.totalorder %v1154_v31, %v2870_v32  ;;  %vm1182_vm13 = vcmp.lt.s32.totalorder %v1165_v25, %v2870_v32 }
 0x250   : > { %v890_v36 = vadd.f32 %v1813_v34, %v889_v33  ;;  %v954_v45 = vmax.f32 %v898_v38, 0.0  ;;  %v1156_v38 = vadd.s32 32, %v2866_v28 }
 0x251   : > { %v2115_v35 = vpop.f32.mrf.mxu1 }
 0x252   : > { %v901_v37 = vadd.f32 %v2115_v35, %v1813_v34  ;;  %v952_v43 = vmax.f32 %v890_v36, 0.0  ;;  %v2881_v35 = vld [vmem:[%s491_s20] ss:$0 sm:$0xff]  ;;  %vm1173_vm4 = vcmp.lt.s32.totalorder %v1156_v38, %v2870_v32 }
 0x253   : > { %v892_v39 = vpop.f32.mrf.mxu1 }
 0x254   : > { %v893_v40 = vadd.f32 %v1813_v34, %v892_v39  ;;  %v955_v41 = vmax.f32 %v901_v37, 0.0  ;;  %v2515_v39 = vmov 0.0  }
 0x255   : > { %v2118_v42 = vpop.f32.mrf.mxu1 }
 0x256   : > { %v953_v44 = vmax.f32 %v893_v40, 0.0  ;;  %v969_v48 = vpack.c.bf16 %v955_v41, %v954_v45  ;;  %v914_v52 = vadd.f32 %v2118_v42, %v1813_v34  ;;  %v2889_v40 = vsel %vm1169_vm0, 1.0, %v2515_v39 }
 0x257   : > { %v905_v46 = vpop.f32.mrf.mxu1  ;;  %v2892_v42 = vsel %vm1170_vm1, 1.0, %v2515_v39  ;;  %v1157_v45 = vadd.s32 40, %v2866_v28 }
 0x258   : > { %v968_v47 = vpack.c.bf16 %v953_v44, %v952_v43  ;;  %v906_v50 = vadd.f32 %v1813_v34, %v905_v46  ;;  %v958_v59 = vmax.f32 %v914_v52, 0.0  ;;  %v2903_v46 = vsel %vm1171_vm2, 1.0, %v2515_v39 }
 0x259   : > { %v2119_v49 = vpop.f32.mrf.mxu1  ;;  %vm1174_vm5 = vcmp.lt.s32.totalorder %v1157_v45, %v2870_v32 }
 0x25a   : > { %v917_v51 = vadd.f32 %v2119_v49, %v1813_v34  ;;  %2144 = vmatprep.mubr.bf16.mxu0 %v968_v47  ;;  %v956_v57 = vmax.f32 %v906_v50, 0.0 }
 0x25b   : > { %v908_v53 = vpop.f32.mrf.mxu1  ;;  %2145 = vmatmul.mubr.bf16.vlgmr.msra.gmra.mxu0 %v969_v48  ;;  %v1158_v48 = vadd.s32 48, %v2866_v28 }
 0x25c   : > { %v909_v54 = vadd.f32 %v1813_v34, %v908_v53  ;;  %v959_v55 = vmax.f32 %v917_v51, 0.0 }
 0x25d   : > { %v2122_v56 = vpop.f32.mrf.mxu1  ;;  %vm1175_vm6 = vcmp.lt.s32.totalorder %v1158_v48, %v2870_v32  ;;  %v1167_v48 = vadd.s32 120, %v2866_v28 }
 0x25e   : > { %v957_v58 = vmax.f32 %v909_v54, 0.0  ;;  %v971_v62 = vpack.c.bf16 %v959_v55, %v958_v59  ;;  %v930_v2 = vadd.f32 %v2122_v56, %v1813_v34  ;;  %v1159_v54 = vadd.s32 56, %v2866_v28 }
 0x25f   : > { %v921_v60 = vpop.f32.mrf.mxu1  ;;  %vm1184_vm15 = vcmp.lt.s32.totalorder %v1167_v48, %v2870_v32 }
 0x260   : > { %v970_v61 = vpack.c.bf16 %v957_v58, %v956_v57  ;;  %v922_v0 = vadd.f32 %v1813_v34, %v921_v60  ;;  %v962_v9 = vmax.f32 %v930_v2, 0.0  ;;  %v2925_v58 = vsel %vm1173_vm4, 1.0, %v2515_v39 }
 0x261   : > { %v2123_v63 = vpop.f32.mrf.mxu1  ;;  %vm1176_vm7 = vcmp.lt.s32.totalorder %v1159_v54, %v2870_v32 }
 0x262   : > { %v933_v1 = vadd.f32 %v2123_v63, %v1813_v34  ;;  %2148 = vmatprep.mubr.bf16.mxu0 %v970_v61  ;;  %v960_v7 = vmax.f32 %v922_v0, 0.0  ;;  %v2933_v0 = vsel %vm1174_vm5, 1.0, %v2515_v39 }
 0x263   : > { %v924_v3 = vpop.f32.mrf.mxu1  ;;  %2149 = vmatmul.mubr.bf16.gmra.mxu0 %v971_v62  ;;  %v1160_v62 = vadd.s32 64, %v2866_v28 }
 0x264   : > { %v925_v4 = vadd.f32 %v1813_v34, %v924_v3  ;;  %v963_v5 = vmax.f32 %v933_v1, 0.0  ;;  %v1161_v1 = vadd.s32 72, %v2866_v28 }
 0x265   : > { %v2126_v6 = vpop.f32.mrf.mxu1  ;;  %vm1177_vm8 = vcmp.lt.s32.totalorder %v1160_v62, %v2870_v32 }
 0x266   : > { %v961_v8 = vmax.f32 %v925_v4, 0.0  ;;  %v973_v12 = vpack.c.bf16 %v963_v5, %v962_v9  ;;  %v946_v16 = vadd.f32 %v2126_v6, %v1813_v34  ;;  %v2945_v6 = vsel %vm1175_vm6, 1.0, %v2515_v39 }
 0x267   : > { %v937_v10 = vpop.f32.mrf.mxu1  ;;  %vm1178_vm9 = vcmp.lt.s32.totalorder %v1161_v1, %v2870_v32 }
 0x268   : > { %v972_v11 = vpack.c.bf16 %v961_v8, %v960_v7  ;;  %v938_v14 = vadd.f32 %v1813_v34, %v937_v10  ;;  %v966_v22 = vmax.f32 %v946_v16, 0.0  ;;  %v1162_v8 = vadd.s32 80, %v2866_v28 }
 0x269   : > { %v2127_v13 = vpop.f32.mrf.mxu1 }
 0x26a   : > { %v949_v15 = vadd.f32 %v2127_v13, %v1813_v34  ;;  %2152 = vmatprep.mubr.bf16.mxu1 %v972_v11  ;;  %v964_v20 = vmax.f32 %v938_v14, 0.0  ;;  %v1163_v14 = vadd.s32 88, %v2866_v28  ;;  %vm1179_vm10 = vcmp.lt.s32.totalorder %v1162_v8, %v2870_v32 }
 0x26b   : > { %v940_v17 = vpop.f32.mrf.mxu1  ;;  %2153 = vmatmul.mubr.bf16.vlgmr.msra.gmra.mxu1 %v973_v12  ;;  %v2955_v12 = vsel %vm1176_vm7, 1.0, %v2515_v39  ;;  %v2985_v31 = vsel %vm1179_vm10, 1.0, %v2515_v39  ;;  %v3028_v8 = vsel %vm1184_vm15, 1.0, %v2515_v39 }
 0x26c   : > { %v941_v18 = vadd.f32 %v1813_v34, %v940_v17  ;;  %v967_v19 = vmax.f32 %v949_v15, 0.0  ;;  %v1155_v34 = vadd.s32 24, %v2866_v28  ;;  %vm1180_vm11 = vcmp.lt.s32.totalorder %v1163_v14, %v2870_v32 }
 0x26d   : > { %v2995_v45 = vsel %vm1180_vm11, 1.0, %v2515_v39 }
 0x26e   : > { %v965_v21 = vmax.f32 %v941_v18, 0.0  ;;  %v975_v24 = vpack.c.bf16 %v967_v19, %v966_v22  ;;  %vm1172_vm3 = vcmp.lt.s32.totalorder %v1155_v34, %v2870_v32  ;;  %v2965_v18 = vsel %vm1177_vm8, 1.0, %v2515_v39 }
 0x26f   : > { %v2915_v52 = vsel %vm1172_vm3, 1.0, %v2515_v39  ;;  %v1164_v22 = vadd.s32 96, %v2866_v28  ;;  %v1166_v34 = vadd.s32 112, %v2866_v28 }
 0x270   : > { %v974_v23 = vpack.c.bf16 %v965_v21, %v964_v20 }
 0x271   : > { %vm1181_vm12 = vcmp.lt.s32.totalorder %v1164_v22, %v2870_v32  ;;  %vm1183_vm14 = vcmp.lt.s32.totalorder %v1166_v34, %v2870_v32 }
 0x272   : > { %2156 = vmatprep.mubr.bf16.mxu1 %v974_v23  ;;  %v3005_v54 = vsel %vm1181_vm12, 1.0, %v2515_v39 }
 0x273   : > { %2157 = vmatmul.mubr.bf16.gmra.mxu1 %v975_v24  ;;  %v2973_v24 = vsel %vm1178_vm9, 1.0, %v2515_v39 }
 0x31b   : > { %v2146_v30 = vpop.f32.mrf.mxu0 }
 0x31c   : > { %v2895_v43 = vadd.f32 %v2146_v30, %v2881_v35 }
 0x31d   : > { %v1081_v33 = vpop.f32.mrf.mxu0 }
 0x31e   : > { %v2885_v37 = vadd.f32 %v2881_v35, %v1081_v33  ;;  %v1219_v55 = vmul.f32 %v2903_v46, %v2895_v43 }
 0x31f   : > { %v2147_v36 = vpop.f32.mrf.mxu0 }
 0x320   : > { %v1217_v49 = vmul.f32 %v2889_v40, %v2885_v37  ;;  %v2909_v50 = vadd.f32 %v2147_v36, %v2881_v35 }
 0x321   : > { %v1084_v41 = vpop.f32.mrf.mxu0 }
 0x322   : > { %v2899_v44 = vadd.f32 %v2881_v35, %v1084_v41  ;;  %v1220_v60 = vmul.f32 %v2915_v52, %v2909_v50 }
 0x323   : > { %v2150_v47 = vpop.f32.mrf.mxu0 }
 0x324   : > { %v1218_v51 = vmul.f32 %v2892_v42, %v2899_v44  ;;  %v2937_v2 = vadd.f32 %v2150_v47, %v2881_v35 }
 0x325   : > { %v1097_v53 = vpop.f32.mrf.mxu0 }
 0x326   : > { %v1233_v56 = vadd.f32 %v1218_v51, %v1217_v49  ;;  %v2921_v57 = vadd.f32 %v2881_v35, %v1097_v53  ;;  %v1223_v15 = vmul.f32 %v2945_v6, %v2937_v2 }
 0x327   : > { %v2151_v59 = vpop.f32.mrf.mxu0 }
 0x328   : > { %v1234_v61 = vadd.f32 %v1233_v56, %v1219_v55  ;;  %v1221_v3 = vmul.f32 %v2925_v58, %v2921_v57  ;;  %v2949_v10 = vadd.f32 %v2151_v59, %v2881_v35 }
 0x329   : > { %v1100_v63 = vpop.f32.mrf.mxu0 }
 0x32a   : > { %v1235_v4 = vadd.f32 %v1234_v61, %v1220_v60  ;;  %v2942_v5 = vadd.f32 %v2881_v35, %v1100_v63  ;;  %v1224_v20 = vmul.f32 %v2955_v12, %v2949_v10  ;;  %v3012_v60 = vsel %vm1182_vm13, 1.0, %v2515_v39 }
 0x32b   : > { %v2154_v7 = vpop.f32.mrf.mxu1 }
 0x32c   : > { %v1236_v9 = vadd.f32 %v1235_v4, %v1221_v3  ;;  %v1222_v11 = vmul.f32 %v2933_v0, %v2942_v5  ;;  %v2977_v26 = vadd.f32 %v2154_v7, %v2881_v35  ;;  %v3021_v3 = vsel %vm1183_vm14, 1.0, %v2515_v39 }
 0x32d   : > { %v1113_v13 = vpop.f32.mrf.mxu1  ;;  %v1254_v39 = vstv %s3034_s12 }
 0x32e   : > { %v1237_v16 = vadd.f32 %v1236_v9, %v1222_v11  ;;  %v2961_v17 = vadd.f32 %v2881_v35, %v1113_v13  ;;  %v1227_v49 = vmul.f32 %v2985_v31, %v2977_v26 }
 0x32f   : > { %v2155_v19 = vpop.f32.mrf.mxu1 }
 0x330   : > { %v1238_v21 = vadd.f32 %v1237_v16, %v1223_v15  ;;  %v1225_v27 = vmul.f32 %v2965_v18, %v2961_v17  ;;  %v2989_v38 = vadd.f32 %v2155_v19, %v2881_v35 }
 0x331   : > { %v1116_v23 = vpop.f32.mrf.mxu1 }
 0x332   : > { %v1239_v29 = vadd.f32 %v1238_v21, %v1224_v20  ;;  %v2982_v30 = vadd.f32 %v2881_v35, %v1116_v23  ;;  %v1228_v56 = vmul.f32 %v2995_v45, %v2989_v38 }
 0x333   : > { %v2158_v33 = vpop.f32.mrf.mxu1 }
 0x334   : > { %v1240_v36 = vadd.f32 %v1239_v29, %v1225_v27  ;;  %v1226_v41 = vmul.f32 %v2973_v24, %v2982_v30  ;;  %v3015_v61 = vadd.f32 %v2158_v33, %v2881_v35 }
 0x335   : > { %v1129_v47 = vpop.f32.mrf.mxu1 }
 0x336   : > { %v1241_v51 = vadd.f32 %v1240_v36, %v1226_v41  ;;  %v3001_v53 = vadd.f32 %v2881_v35, %v1129_v47  ;;  %v1231_v9 = vmul.f32 %v3021_v3, %v3015_v61 }
 0x337   : > { %v2159_v55 = vpop.f32.mrf.mxu1 }
 0x338   : > { %v1242_v59 = vadd.f32 %v1241_v51, %v1227_v49  ;;  %v1229_v62 = vmul.f32 %v3005_v54, %v3001_v53  ;;  %v3024_v7 = vadd.f32 %v2159_v55, %v2881_v35 }
 0x339   : > { %v1132_v28 = vpop.f32.mrf.mxu1 }
 0x33a   : > { %v1243_v63 = vadd.f32 %v1242_v59, %v1228_v56  ;;  %v1133_v1 = vadd.f32 %v2881_v35, %v1132_v28  ;;  %v1232_v13 = vmul.f32 %v3028_v8, %v3024_v7 }
 0x33c   : > { %v1244_v4 = vadd.f32 %v1243_v63, %v1229_v62  ;;  %v1230_v32 = vmul.f32 %v3012_v60, %v1133_v1 }
 0x33e   : > { %v1245_v11 = vadd.f32 %v1244_v4, %v1230_v32 }
 0x340   : > { %v1246_v14 = vadd.f32 %v1245_v11, %v1231_v9 }
 0x342   : > { %v1247_v15 = vadd.f32 %v1246_v14, %v1232_v13 }
 0x344   : > { %v1248_v16 = vrot.slane %v1247_v15, 4 }
 0x346   : > { %v1249_v19 = vadd.f32 %v1248_v16, %v1247_v15 }
 0x348   : > { %v1250_v20 = vrot.slane %v1249_v19, 2 }
 0x34a   : > { %v1251_v35 = vadd.f32 %v1250_v20, %v1249_v19 }
 0x34c   : > { %v1252_v21 = vrot.slane %v1251_v35, 1 }
 0x34e   : > { %v1253_v22 = vadd.f32 %v1252_v21, %v1251_v35 }
 0x350   : > { %v1255_v23 = vmul.f32 %v1254_v39, %v1253_v22 }
 0x352   : > { %v3040_v25 = vsub.f32 %v2885_v37, %v1255_v23  ;;  %v3043_v27 = vsub.f32 %v2899_v44, %v1255_v23  ;;  %v3046_v29 = vsub.f32 %v2895_v43, %v1255_v23  ;;  %v3053_v36 = vsub.f32 %v2909_v50, %v1255_v23 }
 0x353   : > { %v3056_v41 = vsub.f32 %v2921_v57, %v1255_v23  ;;  %v3061_v43 = vsub.f32 %v2942_v5, %v1255_v23  ;;  %v3066_v49 = vsub.f32 %v2937_v2, %v1255_v23  ;;  %v3071_v55 = vsub.f32 %v2949_v10, %v1255_v23 }
 0x354   : > { %v1272_v33 = vmul.f32 %v2889_v40, %v3040_v25  ;;  %v1273_v34 = vmul.f32 %v2892_v42, %v3043_v27  ;;  %v1274_v37 = vmul.f32 %v2903_v46, %v3046_v29  ;;  %v1275_v48 = vmul.f32 %v2915_v52, %v3053_v36 }
 0x355   : > { %v1276_v50 = vmul.f32 %v2925_v58, %v3056_v41  ;;  %v1277_v56 = vmul.f32 %v2933_v0, %v3061_v43  ;;  %v1264_v28 = vsub.f32 %v2961_v17, %v1255_v23  ;;  %v1278_v62 = vmul.f32 %v2945_v6, %v3066_v49 }
 0x356   : > { %v1288_v44 = vmul.f32 %v1272_v33, %v1272_v33  ;;  %v1289_v47 = vmul.f32 %v1273_v34, %v1273_v34  ;;  %v1290_v51 = vmul.f32 %v1274_v37, %v1274_v37  ;;  %v1291_v59 = vmul.f32 %v1275_v48, %v1275_v48 }
 0x357   : > { %v1292_v2 = vmul.f32 %v1276_v50, %v1276_v50  ;;  %v1265_v4 = vsub.f32 %v2982_v30, %v1255_v23  ;;  %v1279_v32 = vmul.f32 %v2955_v12, %v3071_v55  ;;  %v1293_v9 = vmul.f32 %v1277_v56, %v1277_v56 }
 0x358   : > { %v1304_v57 = vadd.f32 %v1289_v47, %v1288_v44  ;;  %v1266_v11 = vsub.f32 %v2977_v26, %v1255_v23  ;;  %v1280_v13 = vmul.f32 %v2965_v18, %v1264_v28  ;;  %v1294_v14 = vmul.f32 %v1278_v62, %v1278_v62 }
 0x359   : > { %v1267_v17 = vsub.f32 %v2989_v38, %v1255_v23  ;;  %v1281_v16 = vmul.f32 %v2973_v24, %v1265_v4  ;;  %v1295_v19 = vmul.f32 %v1279_v32, %v1279_v32  ;;  %v1268_v35 = vsub.f32 %v3001_v53, %v1255_v23 }
 0x35a   : > { %v1305_v5 = vadd.f32 %v1304_v57, %v1290_v51  ;;  %v1282_v30 = vmul.f32 %v2985_v31, %v1266_v11  ;;  %v1296_v21 = vmul.f32 %v1280_v13, %v1280_v13  ;;  %v1269_v33 = vsub.f32 %v1133_v1, %v1255_v23 }
 0x35b   : > { %v1283_v34 = vmul.f32 %v2995_v45, %v1267_v17  ;;  %v1297_v26 = vmul.f32 %v1281_v16, %v1281_v16  ;;  %v1270_v44 = vsub.f32 %v3015_v61, %v1255_v23  ;;  %v1284_v47 = vmul.f32 %v3005_v54, %v1268_v35 }
 0x35c   : > { %v1306_v63 = vadd.f32 %v1305_v5, %v1291_v59  ;;  %v1298_v38 = vmul.f32 %v1282_v30, %v1282_v30  ;;  %v1271_v50 = vsub.f32 %v3024_v7, %v1255_v23  ;;  %v1285_v51 = vmul.f32 %v3012_v60, %v1269_v33 }
 0x35d   : > { %v1299_v53 = vmul.f32 %v1283_v34, %v1283_v34  ;;  %v1286_v56 = vmul.f32 %v3021_v3, %v1270_v44  ;;  %v1300_v59 = vmul.f32 %v1284_v47, %v1284_v47 }
 0x35e   : > { %v1307_v10 = vadd.f32 %v1306_v63, %v1292_v2  ;;  %v1287_v5 = vmul.f32 %v3028_v8, %v1271_v50  ;;  %v1301_v62 = vmul.f32 %v1285_v51, %v1285_v51 }
 0x35f   : > { %v1302_v61 = vmul.f32 %v1286_v56, %v1286_v56 }
 0x360   : > { %v1308_v15 = vadd.f32 %v1307_v10, %v1293_v9  ;;  %v1303_v32 = vmul.f32 %v1287_v5, %v1287_v5 }
 0x362   : > { %v1309_v20 = vadd.f32 %v1308_v15, %v1294_v14 }
 0x364   : > { %v1310_v22 = vadd.f32 %v1309_v20, %v1295_v19 }
 0x366   : > { %v1311_v37 = vadd.f32 %v1310_v22, %v1296_v21 }
 0x368   : > { %v1312_v48 = vadd.f32 %v1311_v37, %v1297_v26 }
 0x36a   : > { %v1313_v57 = vadd.f32 %v1312_v48, %v1298_v38 }
 0x36c   : > { %v1314_v1 = vadd.f32 %v1313_v57, %v1299_v53 }
 0x36e   : > { %v1315_v2 = vadd.f32 %v1314_v1, %v1300_v59 }
 0x370   : > { %v1316_v63 = vadd.f32 %v1315_v2, %v1301_v62 }
 0x372   : > { %v1317_v9 = vadd.f32 %v1316_v63, %v1302_v61 }
 0x374   : > { %v1318_v10 = vadd.f32 %v1317_v9, %v1303_v32 }
 0x376   : > { %v1319_v13 = vrot.slane %v1318_v10, 4 }
 0x378   : > { %v1320_v7 = vadd.f32 %v1319_v13, %v1318_v10 }
 0x37a   : > { %v1321_v23 = vrot.slane %v1320_v7, 2 }
 0x37c   : > { %v1322_v14 = vadd.f32 %v1321_v23, %v1320_v7 }
 0x37e   : > { %v1323_v15 = vrot.slane %v1322_v14, 1 }
 0x380   : > { %v1324_v16 = vadd.f32 %v1323_v15, %v1322_v14 }
 0x382   : > { %v1325_v19 = vmul.f32 %v1324_v16, %v1254_v39  ;;  %v1847_v39 = vld [vmem:[%s494_s23] ss:$0 sm:$0xff] }
 0x384   : > { %v1326_v20 = vadd.f32 1e-05, %v1325_v19 }
 0x386   : > { %2296 = vrsqrt.f32 %v1326_v20 }
 0x393   : > { %v2297_v30 = vpop.eup %2296 }
 0x394   : > { %v1328_v21 = vmul.f32 %v2297_v30, %v3040_v25  ;;  %v1329_v22 = vmul.f32 %v2297_v30, %v3043_v27  ;;  %v1330_v34 = vmul.f32 %v2297_v30, %v3046_v29  ;;  %v1331_v26 = vmul.f32 %v2297_v30, %v3053_v36 }
 0x395   : > { %v1332_v37 = vmul.f32 %v2297_v30, %v3056_v41  ;;  %v1333_v47 = vmul.f32 %v2297_v30, %v3061_v43  ;;  %v1334_v38 = vmul.f32 %v2297_v30, %v3066_v49  ;;  %v1335_v48 = vmul.f32 %v2297_v30, %v3071_v55 }
 0x396   : > { %v1336_v25 = vmul.f32 %v2297_v30, %v1264_v28  ;;  %v1337_v27 = vmul.f32 %v2297_v30, %v1265_v4  ;;  %v1338_v51 = vmul.f32 %v2297_v30, %v1266_v11  ;;  %v1339_v29 = vmul.f32 %v2297_v30, %v1267_v17  ;;  %v1848_v28 = vld [vmem:[%s497_s26] ss:$0 sm:$0xff] }
 0x397   : > { %v1340_v53 = vmul.f32 %v2297_v30, %v1268_v35  ;;  %v1341_v36 = vmul.f32 %v2297_v30, %v1269_v33  ;;  %v1342_v57 = vmul.f32 %v2297_v30, %v1270_v44  ;;  %v1343_v41 = vmul.f32 %v2297_v30, %v1271_v50 }
 0x398   : > { %v1351_v56 = vmul.f32 %v1847_v39, %v1328_v21  ;;  %v1352_v43 = vmul.f32 %v1847_v39, %v1329_v22  ;;  %v1353_v59 = vmul.f32 %v1847_v39, %v1330_v34  ;;  %v1354_v49 = vmul.f32 %v1847_v39, %v1331_v26 }
 0x399   : > { %v1355_v1 = vmul.f32 %v1847_v39, %v1332_v37  ;;  %v1356_v55 = vmul.f32 %v1847_v39, %v1333_v47  ;;  %v1357_v5 = vmul.f32 %v1847_v39, %v1334_v38  ;;  %v1358_v62 = vmul.f32 %v1847_v39, %v1335_v48 }
 0x39a   : > { %v1359_v4 = vmul.f32 %v1847_v39, %v1336_v25  ;;  %v1360_v11 = vmul.f32 %v1847_v39, %v1337_v27  ;;  %v1361_v17 = vmul.f32 %v1847_v39, %v1338_v51  ;;  %v1362_v35 = vmul.f32 %v1847_v39, %v1339_v29 }
 0x39b   : > { %v1363_v33 = vmul.f32 %v1847_v39, %v1340_v53  ;;  %v1364_v44 = vmul.f32 %v1847_v39, %v1341_v36  ;;  %v1365_v50 = vmul.f32 %v1847_v39, %v1342_v57  ;;  %v1366_v2 = vmul.f32 %v1847_v39, %v1343_v41  ;;  %1394 = sbr.rel (%p1849_p7) target bundleno = 942 (0x3ae), region = 84 }
 0x39c   : > { %v3114_v61 = vadd.f32 %v1848_v28, %v1351_v56  ;;  %v3116_v63 = vadd.f32 %v1848_v28, %v1352_v43  ;;  %v3118_v32 = vadd.f32 %v1848_v28, %v1353_v59  ;;  %v3120_v9 = vadd.f32 %v1848_v28, %v1354_v49 }
 0x39d   : > { %v3122_v10 = vadd.f32 %v1848_v28, %v1355_v1  ;;  %v3124_v13 = vadd.f32 %v1848_v28, %v1356_v55  ;;  %v3126_v7 = vadd.f32 %v1848_v28, %v1357_v5  ;;  %v3128_v23 = vadd.f32 %v1848_v28, %v1358_v62 }
 0x39e   : > { %v3130_v14 = vadd.f32 %v1848_v28, %v1359_v4  ;;  %v3132_v15 = vadd.f32 %v1848_v28, %v1360_v11  ;;  %v3134_v16 = vadd.f32 %v1848_v28, %v1361_v17  ;;  %v3136_v19 = vadd.f32 %v1848_v28, %v1362_v35 }
 0x39f   : > { %v3138_v20 = vadd.f32 %v1848_v28, %v1363_v33  ;;  %v3140_v30 = vadd.f32 %v1848_v28, %v1364_v44  ;;  %v3142_v21 = vadd.f32 %v1848_v28, %v1365_v50  ;;  %v3144_v22 = vadd.f32 %v1848_v28, %v1366_v2 }
 0x3a0   : > { %v1395_v34 = vmax.f32 %v3114_v61, 0.0  ;;  %v1396_v26 = vmax.f32 %v3116_v63, 0.0  ;;  %v1397_v37 = vmax.f32 %v3118_v32, 0.0  ;;  %v1398_v47 = vmax.f32 %v3120_v9, 0.0 }
 0x3a1   : > { %v1399_v38 = vmax.f32 %v3122_v10, 0.0  ;;  %v1400_v48 = vmax.f32 %v3124_v13, 0.0  ;;  %v1401_v39 = vmax.f32 %v3126_v7, 0.0  ;;  %v1402_v25 = vmax.f32 %v3128_v23, 0.0 }
 0x3a2   : > { %v1411_v27 = vmul.f32 %v2889_v40, %v1395_v34  ;;  %v1412_v51 = vmul.f32 %v2892_v42, %v1396_v26  ;;  %v1413_v29 = vmul.f32 %v2903_v46, %v1397_v37  ;;  %v1414_v53 = vmul.f32 %v2915_v52, %v1398_v47 }
 0x3a3   : > { %v1415_v36 = vmul.f32 %v2925_v58, %v1399_v38  ;;  %v1416_v57 = vmul.f32 %v2933_v0, %v1400_v48  ;;  %v1417_v41 = vmul.f32 %v2945_v6, %v1401_v39  ;;  %v1418_v56 = vmul.f32 %v2955_v12, %v1402_v25 }
 0x3a4   : > { %v1925_v43 = vpack.c.bf16 %v1412_v51, %v1411_v27  ;;  %v1930_v59 = vpack.c.bf16 %v1414_v53, %v1413_v29  ;;  %v1403_v49 = vmax.f32 %v3130_v14, 0.0  ;;  %v1404_v1 = vmax.f32 %v3132_v15, 0.0 }
 0x3a5   : > { %v1935_v55 = vpack.c.bf16 %v1416_v57, %v1415_v36  ;;  %v1940_v5 = vpack.c.bf16 %v1418_v56, %v1417_v41  ;;  %v1405_v62 = vmax.f32 %v3134_v16, 0.0  ;;  %v1406_v28 = vmax.f32 %v3136_v19, 0.0 }
 0x3a6   : > { %1926 = vst [vmem:[#allocation2] sm:$0xff] %v1925_v43   ;;  %2002 = vst [vmem:[#allocation2 + $0x8] sm:$0xff] %v1930_v59   ;;  %v1419_v4 = vmul.f32 %v2965_v18, %v1403_v49  ;;  %v1420_v11 = vmul.f32 %v2973_v24, %v1404_v1  ;;  %v1407_v17 = vmax.f32 %v3138_v20, 0.0  ;;  %v1408_v35 = vmax.f32 %v3140_v30, 0.0 }
 0x3a7   : > { %2003 = vst [vmem:[#allocation2 + $0x10] sm:$0xff] %v1935_v55   ;;  %2004 = vst [vmem:[#allocation2 + $0x18] sm:$0xff] %v1940_v5   ;;  %v1421_v33 = vmul.f32 %v2985_v31, %v1405_v62  ;;  %v1422_v44 = vmul.f32 %v2995_v45, %v1406_v28  ;;  %v1409_v50 = vmax.f32 %v3142_v21, 0.0  ;;  %v1410_v2 = vmax.f32 %v3144_v22, 0.0 }
 0x3a8   : > { %v1945_v34 = vpack.c.bf16 %v1420_v11, %v1419_v4  ;;  %v1423_v26 = vmul.f32 %v3005_v54, %v1407_v17  ;;  %v1424_v37 = vmul.f32 %v3012_v60, %v1408_v35 }
 0x3a9   : > { %v1950_v47 = vpack.c.bf16 %v1422_v44, %v1421_v33  ;;  %v1425_v38 = vmul.f32 %v3021_v3, %v1409_v50  ;;  %v1426_v48 = vmul.f32 %v3028_v8, %v1410_v2 }
 0x3aa   : > { %2005 = vst [vmem:[#allocation2 + $0x20] sm:$0xff] %v1945_v34   ;;  %v1955_v39 = vpack.c.bf16 %v1424_v37, %v1423_v26 }
 0x3ab   : > { %2006 = vst [vmem:[#allocation2 + $0x28] sm:$0xff] %v1950_v47   ;;  %v1960_v25 = vpack.c.bf16 %v1426_v48, %v1425_v38 }
 0x3ac   : > { %2007 = vst [vmem:[#allocation2 + $0x30] sm:$0xff] %v1955_v39  }
 0x3ad   : > { %2008 = vst [vmem:[#allocation2 + $0x38] sm:$0xff] %v1960_v25  }
 0x3ae PF: > { %p1866_p11 = scmp.ne.s32.totalorder %s2596_s0, 2 }
 0x3b0   : > { %1509 = sbr.rel (%p1866_p11) target bundleno = 963 (0x3c3), region = 88 }
 0x3b5   : > { %v1510_v27 = vmul.f32 %v2889_v40, %v3114_v61  ;;  %v1511_v51 = vmul.f32 %v2892_v42, %v3116_v63  ;;  %v1512_v29 = vmul.f32 %v2903_v46, %v3118_v32  ;;  %v1513_v53 = vmul.f32 %v2915_v52, %v3120_v9 }
 0x3b6   : > { %v1514_v36 = vmul.f32 %v2925_v58, %v3122_v10  ;;  %v1515_v57 = vmul.f32 %v2933_v0, %v3124_v13  ;;  %v1516_v41 = vmul.f32 %v2945_v6, %v3126_v7  ;;  %v1517_v40 = vmul.f32 %v2955_v12, %v3128_v23 }
 0x3b7   : > { %v1965_v61 = vpack.c.bf16 %v1511_v51, %v1510_v27  ;;  %1606 = vst [vmem:[#allocation13] sm:$0xff] %v1510_v27  ;;  %1607 = vst [vmem:[#allocation13 + $0x8] sm:$0xff] %v1511_v51  ;;  %v1970_v42 = vpack.c.bf16 %v1513_v53, %v1512_v29  ;;  %v1518_v46 = vmul.f32 %v2965_v18, %v3130_v14 }
 0x3b8   : > { %1608 = vst [vmem:[#allocation13 + $0x10] sm:$0xff] %v1512_v29  ;;  %1609 = vst [vmem:[#allocation13 + $0x18] sm:$0xff] %v1513_v53  ;;  %v1519_v52 = vmul.f32 %v2973_v24, %v3132_v15  ;;  %v1975_v58 = vpack.c.bf16 %v1515_v57, %v1514_v36  ;;  %v1980_v0 = vpack.c.bf16 %v1517_v40, %v1516_v41 }
 0x3b9   : > { %1610 = vst [vmem:[#allocation13 + $0x20] sm:$0xff] %v1514_v36  ;;  %1611 = vst [vmem:[#allocation13 + $0x28] sm:$0xff] %v1515_v57  ;;  %v1520_v6 = vmul.f32 %v2985_v31, %v3134_v16  ;;  %v1521_v12 = vmul.f32 %v2995_v45, %v3136_v19  ;;  %v1522_v18 = vmul.f32 %v3005_v54, %v3138_v20 }
 0x3ba   : > { %1612 = vst [vmem:[#allocation13 + $0x30] sm:$0xff] %v1516_v41  ;;  %1613 = vst [vmem:[#allocation13 + $0x38] sm:$0xff] %v1517_v40  ;;  %v1985_v63 = vpack.c.bf16 %v1519_v52, %v1518_v46  ;;  %v1523_v24 = vmul.f32 %v3012_v60, %v3140_v30  ;;  %v1524_v32 = vmul.f32 %v3021_v3, %v3142_v21 }
 0x3bb   : > { %1966 = vst [vmem:[#allocation2] sm:$0xff] %v1965_v61   ;;  %2009 = vst [vmem:[#allocation2 + $0x8] sm:$0xff] %v1970_v42   ;;  %v1990_v31 = vpack.c.bf16 %v1521_v12, %v1520_v6  ;;  %v1525_v45 = vmul.f32 %v3028_v8, %v3144_v22 }
 0x3bc   : > { %1614 = vst [vmem:[#allocation13 + $0x40] sm:$0xff] %v1518_v46  ;;  %1615 = vst [vmem:[#allocation13 + $0x48] sm:$0xff] %v1519_v52  ;;  %v1995_v9 = vpack.c.bf16 %v1523_v24, %v1522_v18 }
 0x3bd   : > { %2010 = vst [vmem:[#allocation2 + $0x10] sm:$0xff] %v1975_v58   ;;  %2011 = vst [vmem:[#allocation2 + $0x18] sm:$0xff] %v1980_v0   ;;  %v2000_v54 = vpack.c.bf16 %v1525_v45, %v1524_v32 }
 0x3be   : > { %1616 = vst [vmem:[#allocation13 + $0x50] sm:$0xff] %v1520_v6  ;;  %1617 = vst [vmem:[#allocation13 + $0x58] sm:$0xff] %v1521_v12 }
 0x3bf   : > { %2012 = vst [vmem:[#allocation2 + $0x20] sm:$0xff] %v1985_v63   ;;  %1618 = vst [vmem:[#allocation13 + $0x60] sm:$0xff] %v1522_v18 }
 0x3c0   : > { %1619 = vst [vmem:[#allocation13 + $0x68] sm:$0xff] %v1523_v24  ;;  %1620 = vst [vmem:[#allocation13 + $0x70] sm:$0xff] %v1524_v32 }
 0x3c1   : > { %2013 = vst [vmem:[#allocation2 + $0x28] sm:$0xff] %v1990_v31   ;;  %1621 = vst [vmem:[#allocation13 + $0x78] sm:$0xff] %v1525_v45 }
 0x3c2   : > { %2014 = vst [vmem:[#allocation2 + $0x30] sm:$0xff] %v1995_v9   ;;  %2015 = vst [vmem:[#allocation2 + $0x38] sm:$0xff] %v2000_v54  }
 0x3c3 PF: > { %s2516_s15 = smov [#allocation13]  }
 0x3c4   : > { %s1628_s23 = sshll.u32 %s2516_s15, 4  ;;  %s1629_s23 = int_to_ptr.vmem [resolvable:$true] %s1628_s23 }
 0x3c5   : > { %s2434_s21 = scalar_lea.vmem %s1629_s23, 2048  ;;  %p2441_p5 = scmp.lt.s32.totalorder %s1629_s23, %s1629_s23 }
 0x3c6   : > { %p2435_p4 = scmp.ne.s32.totalorder %s1629_s23, %s2434_s21  ;;  %p2442_p10 = scmp.lt.s32.totalorder %s2434_s21, %s2434_s21 }
 0x3c8   : > { %p2436_p9 = pnand %p2435_p4, %p1849_p7  ;;  %p2443_p12 = por %p2442_p10, %p2441_p5 }
 0x3ca   : > { %p2437_p8 = pneg %p2436_p9 }
 0x3cc   : > { %p2444_p1 = pnand %p2443_p12, %p2437_p8 }
 0x3ce   : > { %2447 = shalt.err (!%p2444_p1)
}
 0x3cf   : > { %s2517_s19 = smov 128   ;;  %s2518_s29 = smov 8  }
 0x3d0   : > { %s3284_s9 = sld [smem:[#allocation22_spill]] }
 0x3d6   : > { %2193 = dma.vmem_to_hbm [thread:$0]  (%p1849_p7), %s1629_s23, 2048, %s3284_s9, [#allocation7], %s2517_s19, %s2517_s19, %s2518_s29  }
 0x3d7   : > { %2487 = dma.done.wait (%p1849_p7), [#allocation7], 2048  }
 0x3d8   : > { %2489 = vsyncadd (%p1849_p7), [#allocation7], 4294965248 }
 0x3d9 PF: > { %s3285_s18 = sld [smem:[#allocation18_spill]]  ;;  %s3287_s15 = smov %s2496_s16 }
 0x3da   : > { %s3286_s14 = sld [smem:[#allocation19_spill]]  ;;  %s3288_s16 = smov %s2500_s17 }
 0x3df   : > { %p21_p13 = scmp.ge.s32.totalorder %s3285_s18, 5  }
 0x3e0   : > { %s3289_s17 = smov %s3286_s14 }
 0x3e1   :  { %23 = sbr.rel (!%p21_p13) target bundleno = 9 (0x9), region = 146 }
 0x3e6   :  { %1644 = vsyncpa [#allocation6], 1 }
 0x3e7   :  { %1646 = vsyncpa [#allocation6 + $0x1], 1 }
 0x3e8   :  { %1647 = vsyncpa [#allocation9], 1 }
 0x3e9   :  { %1648 = vsyncpa [#allocation7], 1 }
 0x3ea   :  { %1650 = vsyncpa [#allocation7 + $0x1], 1 }

</bundles_post_ra>
